<compile_context>
chip_gen: v6e
topology: v6e:2x2x1
jax: 0.10.0
libtpu: 0.0.40
codegen_flags: <defaults>
</compile_context>

<pallas_src>
import functools

import jax
import jax.numpy as jnp
from jax import lax
from jax.experimental import pallas as pl
from jax.experimental.pallas import tpu as pltpu

EPS = 1e-5
LANE = 128
TM_MATMUL = 512          # M tile for the 1x1-conv matmul kernels (v7x-safe)


# ------------------------------- small helpers --------------------------------

def _round_up(x, m):
    return (x + m - 1) // m * m


def _pad_axis(a, target, axis):
    pad = target - a.shape[axis]
    if pad == 0:
        return a
    cfg = [(0, 0)] * a.ndim
    cfg[axis] = (0, pad)
    return jnp.pad(a, cfg)


@functools.lru_cache(maxsize=None)
def _vmem_budget():
    # Generation-aware scoped-VMEM budget: ~half of physical VMEM
    # (128 MiB v5e/v6e -> 64 MiB; 64 MiB per-TC v7x -> 32 MiB).
    try:
        cap = int(pltpu.get_tpu_info().vmem_capacity_bytes)
    except Exception:
        cap = 64 * 1024 * 1024
    return min(max(cap // 2, 24 * 1024 * 1024), 96 * 1024 * 1024)


@functools.lru_cache(maxsize=None)
def _tm_elementwise():
    # Bigger M tiles for the mem-bound elementwise passes on 128-MiB-VMEM parts.
    return 1024 if _vmem_budget() >= 48 * 1024 * 1024 else 512


def _pick_tm(m, cap):
    return m if m <= cap else cap


def _pick_row_tile(ho, cap=16):
    if ho <= cap:
        return ho
    for t in range(cap, 0, -1):
        if ho % t == 0:
            return t
    return ho


def _compiler_params(sem):
    return pltpu.CompilerParams(dimension_semantics=sem,
                                vmem_limit_bytes=_vmem_budget())


# ----------------------------- Pallas kernels ---------------------------------

def mm_stats_kernel(*refs, m_total, tm, fuse, ragged):
    """1x1-conv matmul (full K resident) + per-M-tile BN (sum, sum_sq) stats.

    fuse=True: the previous layer's BN scale/shift + ReLU are applied to the
    input tile before the matmul (used for conv3, fusing the bn2-apply pass)."""
    if fuse:
        x_ref, w_ref, sc_ref, sh_ref, y_ref, stats_ref = refs
    else:
        x_ref, w_ref, y_ref, stats_ref = refs

    x = x_ref[...]
    if fuse:
        x = jnp.maximum(x.astype(jnp.float32) * sc_ref[...] + sh_ref[...],
                        0.0).astype(w_ref.dtype)
    acc = jnp.dot(x, w_ref[...], preferred_element_type=jnp.float32)
    y_ref[...] = acc.astype(y_ref.dtype)

    def write_stats(a):
        stats_ref[0, 0:1, :] = jnp.sum(a, axis=0, keepdims=True)
        stats_ref[0, 1:2, :] = jnp.sum(a * a, axis=0, keepdims=True)

    if ragged:
        # Only the last M tile has rows past m_total; gate the mask there.
        i = pl.program_id(0)
        last = pl.num_programs(0) - 1

        @pl.when(i == last)
        def _():
            row = i * tm + lax.broadcasted_iota(jnp.int32, (tm, 1), 0)
            write_stats(jnp.where(row < m_total, acc, 0.0))

        @pl.when(i != last)
        def _():
            write_stats(acc)
    else:
        write_stats(acc)


def bn_relu_pad_kernel(y_ref, sc_ref, sh_ref, o_ref):
    """bn1-apply + ReLU, written directly into the spatially zero-padded slab."""
    h = y_ref.shape[1]
    w = y_ref.shape[2]
    o_ref[...] = jnp.zeros(o_ref.shape, o_ref.dtype)
    a = jnp.maximum(y_ref[...].astype(jnp.float32) * sc_ref[...] + sh_ref[...],
                    0.0)
    o_ref[:, 1:h + 1, 1:w + 1, :] = a.astype(o_ref.dtype)


def conv3x3_stats_kernel(xf_ref, w_ref, y_ref, stats_ref, *, stride, th, wo,
                         cin_p):
    """3x3 conv (pad=1, stride s) on one output-row tile of one image.

    xf_ref holds the whole spatially padded image in the stride-folded layout
    (1, (H+2)/s, s, (W+2)/s, s*Cp); its block index only changes with the batch
    axis, so the pipeline re-DMAs it once per image while the row-tile axis
    advances.  The three kw taps of each kh row are concatenated along channels
    so each MXU call sees K = 3*Cp (fills the 256-wide MXU on v6e/v7x)."""
    s = stride
    cout = y_ref.shape[-1]
    r0 = pl.program_id(1) * th
    acc = jnp.zeros((th * wo, cout), jnp.float32)
    for kh in range(3):
        taps = []
        for kw in range(3):
            taps.append(
                xf_ref[0, pl.ds(r0 + kh // s, th), kh % s,
                       pl.ds(kw // s, wo), pl.ds((kw % s) * cin_p, cin_p)])
        lhs = jnp.concatenate(taps, axis=-1).reshape(th * wo, 3 * cin_p)
        acc = acc + jnp.dot(lhs, w_ref[kh], preferred_element_type=jnp.float32)
    y_ref[0] = acc.reshape(th, wo, cout).astype(y_ref.dtype)
    stats_ref[0, 0, 0:1, :] = jnp.sum(acc, axis=0, keepdims=True)
    stats_ref[0, 0, 1:2, :] = jnp.sum(acc * acc, axis=0, keepdims=True)


def shortcut_stats_kernel(xf_ref, w_ref, y_ref, stats_ref):
    """Strided 1x1 shortcut conv; the stride-s spatial subsample is done by the
    BlockSpec over the folded layout (sub-row 0 / channel block 0)."""
    _, hof, _, wof, cin_p = xf_ref.shape
    xv = xf_ref[0, :, 0, :, :]                                   # (hof, wof, Cp)
    acc = jnp.dot(xv.reshape(hof * wof, cin_p), w_ref[...],
                  preferred_element_type=jnp.float32)
    y_ref[0] = acc.astype(y_ref.dtype)
    stats_ref[0, 0:1, :] = jnp.sum(acc, axis=0, keepdims=True)
    stats_ref[0, 1:2, :] = jnp.sum(acc * acc, axis=0, keepdims=True)


def residual_bn_relu_kernel(y_ref, s1_ref, b1_ref, r_ref, s2_ref, b2_ref, o_ref):
    """Fused epilogue: bn3(y3) + bn_sc(shortcut), residual add, final ReLU."""
    a = y_ref[...].astype(jnp.float32) * s1_ref[...] + b1_ref[...]
    b = r_ref[...].astype(jnp.float32) * s2_ref[...] + b2_ref[...]
    o_ref[...] = jnp.maximum(a + b, 0.0).astype(o_ref.dtype)


# ----------------------------- pallas_call wrappers ---------------------------

def _mm_stats(x2d, w2d, out_dtype, scale=None, shift=None):
    m, k = x2d.shape
    cout = w2d.shape[1]
    tm = _pick_tm(m, TM_MATMUL)
    nm = pl.cdiv(m, tm)
    ragged = (m % tm) != 0
    fuse = scale is not None
    kern = functools.partial(mm_stats_kernel, m_total=m, tm=tm, fuse=fuse,
                             ragged=ragged)
    in_specs = [
        pl.BlockSpec((tm, k), lambda i: (i, 0)),
        pl.BlockSpec((k, cout), lambda i: (0, 0)),
    ]
    args = [x2d, w2d]
    if fuse:
        in_specs += [pl.BlockSpec((1, k), lambda i: (0, 0)),
                     pl.BlockSpec((1, k), lambda i: (0, 0))]
        args += [scale, shift]
    y, stats = pl.pallas_call(
        kern,
        grid=(nm,),
        in_specs=in_specs,
        out_specs=[pl.BlockSpec((tm, cout), lambda i: (i, 0)),
                   pl.BlockSpec((1, 2, cout), lambda i: (i, 0, 0))],
        out_shape=[jax.ShapeDtypeStruct((m, cout), out_dtype),
                   jax.ShapeDtypeStruct((nm, 2, cout), jnp.float32)],
        compiler_params=_compiler_params(("parallel",)),
    )(*args)
    counts = jnp.minimum(tm, m - tm * jnp.arange(nm)).astype(jnp.float32)
    return y, stats, counts


def _bn_relu_pad(y2d, scale, shift, n, h, w, out_dtype):
    c = y2d.shape[1]
    y4 = y2d.reshape(n, h, w, c)                                 # free reshape
    return pl.pallas_call(
        bn_relu_pad_kernel,
        grid=(n,),
        in_specs=[
            pl.BlockSpec((1, h, w, c), lambda b: (b, 0, 0, 0)),
            pl.BlockSpec((1, c), lambda b: (0, 0)),
            pl.BlockSpec((1, c), lambda b: (0, 0)),
        ],
        out_specs=pl.BlockSpec((1, h + 2, w + 2, c), lambda b: (b, 0, 0, 0)),
        out_shape=jax.ShapeDtypeStruct((n, h + 2, w + 2, c), out_dtype),
        compiler_params=_compiler_params(("parallel",)),
    )(y4, scale, shift)


def _conv3x3_stats(xf, w3r, stride, ho, wo, out_dtype):
    n, hf, sdim, wf, scp = xf.shape
    cin_p = scp // sdim
    cout = w3r.shape[-1]
    th = _pick_row_tile(ho)
    nrt = ho // th
    kern = functools.partial(conv3x3_stats_kernel, stride=stride, th=th, wo=wo,
                             cin_p=cin_p)
    y, stats = pl.pallas_call(
        kern,
        grid=(n, nrt),
        in_specs=[
            pl.BlockSpec((1, hf, sdim, wf, scp), lambda b, r: (b, 0, 0, 0, 0)),
            pl.BlockSpec((3, 3 * cin_p, cout), lambda b, r: (0, 0, 0)),
        ],
        out_specs=[
            pl.BlockSpec((1, th, wo, cout), lambda b, r: (b, r, 0, 0)),
            pl.BlockSpec((1, 1, 2, cout), lambda b, r: (b, r, 0, 0)),
        ],
        out_shape=[
            jax.ShapeDtypeStruct((n, ho, wo, cout), out_dtype),
            jax.ShapeDtypeStruct((n, nrt, 2, cout), jnp.float32),
        ],
        compiler_params=_compiler_params(("parallel", "parallel")),
    )(xf, w3r)
    counts = jnp.full((n * nrt,), th * wo, jnp.float32)
    return (y.reshape(n * ho * wo, cout),
            stats.reshape(n * nrt, 2, cout), counts)


def _shortcut_stats(xf, w2d, out_dtype):
    n, hof, sdim, wof, scp = xf.shape
    cin_p = scp // sdim
    cout = w2d.shape[1]
    y, stats = pl.pallas_call(
        shortcut_stats_kernel,
        grid=(n,),
        in_specs=[
            # picks sub-row 0 and channel block 0 -> the stride-s subsample
            pl.BlockSpec((1, hof, 1, wof, cin_p), lambda b: (b, 0, 0, 0, 0)),
            pl.BlockSpec((cin_p, cout), lambda b: (0, 0)),
        ],
        out_specs=[
            pl.BlockSpec((1, hof * wof, cout), lambda b: (b, 0, 0)),
            pl.BlockSpec((1, 2, cout), lambda b: (b, 0, 0)),
        ],
        out_shape=[
            jax.ShapeDtypeStruct((n, hof * wof, cout), out_dtype),
            jax.ShapeDtypeStruct((n, 2, cout), jnp.float32),
        ],
        compiler_params=_compiler_params(("parallel",)),
    )(xf, w2d)
    counts = jnp.full((n,), hof * wof, jnp.float32)
    return y.reshape(n * hof * wof, cout), stats, counts


def _residual_bn_relu(y2d, s1, b1, r2d, s2, b2, out_dtype):
    m, c = y2d.shape
    tm = _pick_tm(m, _tm_elementwise())
    nm = pl.cdiv(m, tm)
    return pl.pallas_call(
        residual_bn_relu_kernel,
        grid=(nm,),
        in_specs=[
            pl.BlockSpec((tm, c), lambda i: (i, 0)),
            pl.BlockSpec((1, c), lambda i: (0, 0)),
            pl.BlockSpec((1, c), lambda i: (0, 0)),
            pl.BlockSpec((tm, c), lambda i: (i, 0)),
            pl.BlockSpec((1, c), lambda i: (0, 0)),
            pl.BlockSpec((1, c), lambda i: (0, 0)),
        ],
        out_specs=pl.BlockSpec((tm, c), lambda i: (i, 0)),
        out_shape=jax.ShapeDtypeStruct((m, c), out_dtype),
        compiler_params=_compiler_params(("parallel",)),
    )(y2d, s1, b1, r2d, s2, b2)


# ------------------------------- BN reduction ---------------------------------

def _bn_scale_shift(stats_parts, counts, gamma_p, beta_p):
    """Combine per-tile (sum, sum_sq) partials into per-channel scale/shift using
    Chan's parallel-variance formula (numerically stable, unlike E[x^2]-mean^2
    over the full M)."""
    s = stats_parts.astype(jnp.float32)                 # (T, 2, C)
    cnt = counts.astype(jnp.float32).reshape(-1, 1)     # (T, 1)
    total = jnp.sum(cnt)
    sum_t, sumsq_t = s[:, 0, :], s[:, 1, :]
    mean_t = sum_t / cnt
    m2_t = sumsq_t - sum_t * mean_t
    mean = jnp.sum(sum_t, axis=0) / total
    m2 = jnp.sum(m2_t, axis=0) + jnp.sum(cnt * (mean_t - mean) ** 2, axis=0)
    var = jnp.maximum(m2 / total, 0.0)
    inv = lax.rsqrt(var + EPS)
    scale = gamma_p * inv
    shift = beta_p - mean * scale
    return scale.reshape(1, -1), shift.reshape(1, -1)


# ----------------------------- Bottleneck module ------------------------------

def init_params(key, in_planes, planes, stride):
    """Deterministic synthetic parameters (PyTorch conv weight layout OIHW)."""
    exp = 4 * planes
    ks = jax.random.split(key, 12)
    p = {
        "w1": 0.1 * jax.random.normal(ks[0], (planes, in_planes, 1, 1), jnp.float32),
        "g1": 1.0 + 0.1 * jax.random.normal(ks[1], (planes,), jnp.float32),
        "b1": 0.05 * jax.random.normal(ks[2], (planes,), jnp.float32),
        "w2": 0.1 * jax.random.normal(ks[3], (planes, planes, 3, 3), jnp.float32),
        "g2": 1.0 + 0.1 * jax.random.normal(ks[4], (planes,), jnp.float32),
        "b2": 0.05 * jax.random.normal(ks[5], (planes,), jnp.float32),
        "w3": 0.1 * jax.random.normal(ks[6], (exp, planes, 1, 1), jnp.float32),
        "g3": 1.0 + 0.1 * jax.random.normal(ks[7], (exp,), jnp.float32),
        "b3": 0.05 * jax.random.normal(ks[8], (exp,), jnp.float32),
    }
    if stride != 1 or in_planes != exp:
        p["ws"] = 0.1 * jax.random.normal(ks[9], (exp, in_planes, 1, 1), jnp.float32)
        p["gs"] = 1.0 + 0.1 * jax.random.normal(ks[10], (exp,), jnp.float32)
        p["bs"] = 0.05 * jax.random.normal(ks[11], (exp,), jnp.float32)
    return p


def bottleneck_forward(params, x_nchw, stride, compute_dtype=jnp.bfloat16):
    # TODO(synk): NCHW<->NHWC transposes, channel pad and the bf16 cast remain
    # XLA layout glue; fusing them into the first/last kernels needs a
    # transposing gather that is not worthwhile at these channel counts.
    x = jnp.transpose(x_nchw, (0, 2, 3, 1))                      # NCHW -> NHWC
    n, h, w, cin = x.shape
    planes = params["w1"].shape[0]
    exp = params["w3"].shape[0]
    s = stride
    assert s in (1, 2)
    if s == 2:
        assert h % 2 == 0 and w % 2 == 0

    cin_p = _round_up(cin, LANE)
    p_p = _round_up(planes, LANE)
    e_p = _round_up(exp, LANE)
    f32 = jnp.float32

    # Weights / BN params, zero-padded to lane-dense channel counts.
    # gamma/beta are zero on padded lanes -> BN scale = shift = 0 there, so padded
    # channels stay exactly 0 through every stage (they feed later convs and are
    # only sliced off at the very end).
    w1 = _pad_axis(_pad_axis(jnp.transpose(params["w1"].reshape(planes, cin), (1, 0)),
                             cin_p, 0), p_p, 1).astype(compute_dtype)
    w2 = jnp.transpose(params["w2"], (2, 3, 1, 0))               # (kh, kw, ci, co)
    w2 = _pad_axis(_pad_axis(w2, p_p, 2), p_p, 3)
    w2rows = w2.reshape(3, 3 * p_p, p_p).astype(compute_dtype)   # kh major, kw within
    w3 = _pad_axis(_pad_axis(jnp.transpose(params["w3"].reshape(exp, planes), (1, 0)),
                             p_p, 0), e_p, 1).astype(compute_dtype)
    g1, b1 = (_pad_axis(params["g1"].astype(f32), p_p, 0),
              _pad_axis(params["b1"].astype(f32), p_p, 0))
    g2, b2 = (_pad_axis(params["g2"].astype(f32), p_p, 0),
              _pad_axis(params["b2"].astype(f32), p_p, 0))
    g3, b3 = (_pad_axis(params["g3"].astype(f32), e_p, 0),
              _pad_axis(params["b3"].astype(f32), e_p, 0))

    xp = _pad_axis(x, cin_p, 3).astype(compute_dtype)            # (N, H, W, Cin_p)
    x0 = xp.reshape(n * h * w, cin_p)
    ho = (h - 1) // s + 1
    wo = (w - 1) // s + 1

    # conv1 (1x1) pass-1: matmul + BN stats
    y1, st1, cnt1 = _mm_stats(x0, w1, compute_dtype)
    sc1, sh1 = _bn_scale_shift(st1, cnt1, g1, b1)
    # bn1-apply + ReLU fused with the spatial zero-pad conv2 needs (no XLA pad).
    a1_pad = _bn_relu_pad(y1, sc1, sh1, n, h, w, compute_dtype)  # (N, H+2, W+2, Cp)
    a1_fold = a1_pad.reshape(n, (h + 2) // s, s, (w + 2) // s, s * p_p)  # free

    # conv2 (3x3, stride, pad=1) pass-1: implicit im2col, output-row tiled
    y2, st2, cnt2 = _conv3x3_stats(a1_fold, w2rows, s, ho, wo, compute_dtype)
    sc2, sh2 = _bn_scale_shift(st2, cnt2, g2, b2)

    # conv3 (1x1) pass-1 with bn2-apply + ReLU fused on the input side
    y3, st3, cnt3 = _mm_stats(y2, w3, compute_dtype, scale=sc2, shift=sh2)
    sc3, sh3 = _bn_scale_shift(st3, cnt3, g3, b3)

    # shortcut branch
    if "ws" in params:
        ws = _pad_axis(_pad_axis(jnp.transpose(params["ws"].reshape(exp, cin), (1, 0)),
                                 cin_p, 0), e_p, 1).astype(compute_dtype)
        gs = _pad_axis(params["gs"].astype(f32), e_p, 0)
        bs = _pad_axis(params["bs"].astype(f32), e_p, 0)
        x_fold = xp.reshape(n, h // s, s, w // s, s * cin_p)     # free reshape
        ysc, sts, cnts = _shortcut_stats(x_fold, ws, compute_dtype)
        scs, shs = _bn_scale_shift(sts, cnts, gs, bs)
    else:
        # stride == 1 and cin == exp  =>  identity shortcut (cin_p == e_p)
        ysc = x0
        scs = jnp.ones((1, e_p), f32)
        shs = jnp.zeros((1, e_p), f32)

    # fused epilogue: bn3-apply + shortcut-BN-apply + residual add + final ReLU
    out = _residual_bn_relu(y3, sc3, sh3, ysc, scs, shs, compute_dtype)
    out = out[:, :exp].reshape(n, ho, wo, exp)
    return jnp.transpose(out, (0, 3, 1, 2))                      # NHWC -> NCHW


# --------------------------- pure-JAX reference --------------------------------

def _ref_bn(y_nhwc, gamma, beta):
    mean = jnp.mean(y_nhwc, axis=(0, 1, 2), keepdims=True)
    var = jnp.mean((y_nhwc - mean) ** 2, axis=(0, 1, 2), keepdims=True)
    return (y_nhwc - mean) * lax.rsqrt(var + EPS) * gamma + beta


def _ref_conv(x_nhwc, w_oihw, stride, padding):
    w = jnp.transpose(w_oihw, (2, 3, 1, 0))           # OIHW -> HWIO
    return lax.conv_general_dilated(
        x_nhwc, w, (stride, stride), [(padding, padding)] * 2,
        dimension_numbers=("NHWC", "HWIO", "NHWC"),
        precision=lax.Precision.HIGHEST)


def bottleneck_reference(params, x_nchw, stride):
    x = jnp.transpose(x_nchw, (0, 2, 3, 1))
    out = jax.nn.relu(_ref_bn(_ref_conv(x, params["w1"], 1, 0), params["g1"], params["b1"]))
    out = jax.nn.relu(_ref_bn(_ref_conv(out, params["w2"], stride, 1), params["g2"], params["b2"]))
    out = _ref_bn(_ref_conv(out, params["w3"], 1, 0), params["g3"], params["b3"])
    if "ws" in params:
        sc = _ref_bn(_ref_conv(x, params["ws"], stride, 0), params["gs"], params["bs"])
    else:
        sc = x
    return jnp.transpose(jax.nn.relu(out + sc), (0, 3, 1, 2))


# ----------------------------------- main --------------------------------------

if __name__ == "__main__":
    in_planes, planes, stride = 4, 4, 2
    N, H, W = 2, 16, 16

    key = jax.random.PRNGKey(0)
    k_x, k_p = jax.random.split(key)
    x = jax.random.normal(k_x, (N, in_planes, H, W), dtype=jnp.float32)
    params = init_params(k_p, in_planes, planes, stride)

    # primary (optimized) run: bf16 MXU inputs, f32 accumulation / BN math
    fwd_bf16 = jax.jit(functools.partial(bottleneck_forward, stride=stride,
                                         compute_dtype=jnp.bfloat16))
    out_bf16 = jax.block_until_ready(fwd_bf16(params, x))
    assert out_bf16.shape == (N, 4 * planes, H // stride, W // stride), out_bf16.shape

    ref = bottleneck_reference(params, x, stride)

    # strict correctness gate: identical pipeline with f32 MXU inputs
    fwd_f32 = jax.jit(functools.partial(bottleneck_forward, stride=stride,
                                        compute_dtype=jnp.float32))
    out_f32 = jax.block_until_ready(fwd_f32(params, x))
    err_f32 = float(jnp.max(jnp.abs(out_f32.astype(jnp.float32) - ref)))
    assert err_f32 < 3e-2, f"f32 path max abs error vs reference: {err_f32}"

    # bf16-MXU sanity bound: with only 4 real channels, BatchNorm divides by
    # per-channel stds from very low-fan-in convs, amplifying bf16 rounding.
    err_bf16 = float(jnp.max(jnp.abs(out_bf16.astype(jnp.float32) - ref)))
    assert err_bf16 < 3e-1, f"bf16 path max abs error vs reference: {err_bf16}"

    print("KERNEL_OK")
</pallas_src>

<mosaic_0001>
module attributes {stable_mosaic.version = 11 : i64} {
  func.func @bn_relu_pad_kernel(%arg0: i32, %arg1: memref<1x16x16x128xbf16, #tpu.memory_space<vmem>>, %arg2: memref<1x128xf32, #tpu.memory_space<vmem>>, %arg3: memref<1x128xf32, #tpu.memory_space<vmem>>, %arg4: memref<1x18x18x128xbf16, #tpu.memory_space<vmem>>) attributes {dimension_semantics = [#tpu.dimension_semantics<parallel>], iteration_bounds = array<i64: 2>, scalar_prefetch = 0 : i64, scratch_operands = 0 : i64, tpu.core_type = #tpu.core_type<tc>, window_params = [{transform_indices = @transform_0, window_bounds = array<i64: 1, 16, 16, 128>}, {pipeline_mode = #tpu.pipeline_mode<synchronous>, transform_indices = @transform_1, window_bounds = array<i64: 1, 128>}, {pipeline_mode = #tpu.pipeline_mode<synchronous>, transform_indices = @transform_2, window_bounds = array<i64: 1, 128>}, {transform_indices = @transform_3, window_bounds = array<i64: 1, 18, 18, 128>}]} {
    %cst = arith.constant 0.000000e+00 : bf16
    %0 = vector.broadcast %cst : bf16 to vector<1x18x18x128xbf16>
    %c0 = arith.constant 0 : index
    %c0_0 = arith.constant 0 : index
    %c0_1 = arith.constant 0 : index
    %c0_2 = arith.constant 0 : index
    %1 = vector.load %arg4[%c0, %c0_0, %c0_1, %c0_2] : memref<1x18x18x128xbf16, #tpu.memory_space<vmem>>, vector<1x18x18x128xbf16>
    tpu.vector_store %arg4[%c0, %c0_0, %c0_1, %c0_2], %0 {strides = array<i32>} : memref<1x18x18x128xbf16, #tpu.memory_space<vmem>>, vector<1x18x18x128xbf16>,
    %c0_3 = arith.constant 0 : index
    %c0_4 = arith.constant 0 : index
    %c0_5 = arith.constant 0 : index
    %c0_6 = arith.constant 0 : index
    %2 = vector.load %arg1[%c0_3, %c0_4, %c0_5, %c0_6] : memref<1x16x16x128xbf16, #tpu.memory_space<vmem>>, vector<1x16x16x128xbf16>
    %3 = arith.extf %2 : vector<1x16x16x128xbf16> to vector<1x16x16x128xf32>
    %c0_7 = arith.constant 0 : index
    %c0_8 = arith.constant 0 : index
    %4 = vector.load %arg2[%c0_7, %c0_8] : memref<1x128xf32, #tpu.memory_space<vmem>>, vector<1x128xf32>
    %5 = vector.shape_cast %4 : vector<1x128xf32> to vector<1x1x1x128xf32>
    %6 = vector.broadcast %5 : vector<1x1x1x128xf32> to vector<1x16x16x128xf32>
    %7 = arith.mulf %3, %6 : vector<1x16x16x128xf32>
    %c0_9 = arith.constant 0 : index
    %c0_10 = arith.constant 0 : index
    %8 = vector.load %arg3[%c0_9, %c0_10] : memref<1x128xf32, #tpu.memory_space<vmem>>, vector<1x128xf32>
    %9 = vector.shape_cast %8 : vector<1x128xf32> to vector<1x1x1x128xf32>
    %10 = vector.broadcast %9 : vector<1x1x1x128xf32> to vector<1x16x16x128xf32>
    %11 = arith.addf %7, %10 : vector<1x16x16x128xf32>
    %cst_11 = arith.constant 0.000000e+00 : f32
    %12 = vector.broadcast %cst_11 : f32 to vector<1x16x16x128xf32>
    %13 = arith.maximumf %11, %12 : vector<1x16x16x128xf32>
    %14 = arith.truncf %13 : vector<1x16x16x128xf32> to vector<1x16x16x128xbf16>
    %c0_12 = arith.constant 0 : index
    %c1 = arith.constant 1 : index
    %c1_13 = arith.constant 1 : index
    %c0_14 = arith.constant 0 : index
    %15 = vector.load %arg4[%c0_12, %c1, %c1_13, %c0_14] : memref<1x18x18x128xbf16, #tpu.memory_space<vmem>>, vector<1x16x16x128xbf16>
    tpu.vector_store %arg4[%c0_12, %c1, %c1_13, %c0_14], %14 {strides = array<i32>} : memref<1x18x18x128xbf16, #tpu.memory_space<vmem>>, vector<1x16x16x128xbf16>,
    return
  }
  func.func @transform_0(%arg0: i32) -> (i32, i32, i32, i32) {
    %c0_i32 = arith.constant 0 : i32
    %c0_i32_0 = arith.constant 0 : i32
    %c0_i32_1 = arith.constant 0 : i32
    %c0_i32_2 = arith.constant 0 : i32
    return %arg0, %c0_i32, %c0_i32_0, %c0_i32_1 : i32, i32, i32, i32
  }
  func.func @transform_1(%arg0: i32) -> (i32, i32) {
    %c0_i32 = arith.constant 0 : i32
    %c0_i32_0 = arith.constant 0 : i32
    %c0_i32_1 = arith.constant 0 : i32
    return %c0_i32, %c0_i32_0 : i32, i32
  }
  func.func @transform_2(%arg0: i32) -> (i32, i32) {
    %c0_i32 = arith.constant 0 : i32
    %c0_i32_0 = arith.constant 0 : i32
    %c0_i32_1 = arith.constant 0 : i32
    return %c0_i32, %c0_i32_0 : i32, i32
  }
  func.func @transform_3(%arg0: i32) -> (i32, i32, i32, i32) {
    %c0_i32 = arith.constant 0 : i32
    %c0_i32_0 = arith.constant 0 : i32
    %c0_i32_1 = arith.constant 0 : i32
    %c0_i32_2 = arith.constant 0 : i32
    return %arg0, %c0_i32, %c0_i32_0, %c0_i32_1 : i32, i32, i32, i32
  }
}

module attributes {stable_mosaic.version = 11 : i64} {
  func.func @mm_stats_kernel(%arg0: i32, %arg1: memref<512x128xbf16, #tpu.memory_space<vmem>>, %arg2: memref<128x128xbf16, #tpu.memory_space<vmem>>, %arg3: memref<512x128xbf16, #tpu.memory_space<vmem>>, %arg4: memref<1x2x128xf32, #tpu.memory_space<vmem>>) attributes {dimension_semantics = [#tpu.dimension_semantics<parallel>], iteration_bounds = array<i64: 1>, scalar_prefetch = 0 : i64, scratch_operands = 0 : i64, tpu.core_type = #tpu.core_type<tc>, window_params = [{transform_indices = @transform_0, window_bounds = array<i64: 512, 128>}, {pipeline_mode = #tpu.pipeline_mode<synchronous>, transform_indices = @transform_1, window_bounds = array<i64: 128, 128>}, {transform_indices = @transform_2, window_bounds = array<i64: 512, 128>}, {transform_indices = @transform_3, window_bounds = array<i64: 1, 2, 128>}]} {
    %c0 = arith.constant 0 : index
    %c0_0 = arith.constant 0 : index
    %0 = vector.load %arg1[%c0, %c0_0] : memref<512x128xbf16, #tpu.memory_space<vmem>>, vector<512x128xbf16>
    %c0_1 = arith.constant 0 : index
    %c0_2 = arith.constant 0 : index
    %1 = vector.load %arg2[%c0_1, %c0_2] : memref<128x128xbf16, #tpu.memory_space<vmem>>, vector<128x128xbf16>
    %cst = arith.constant dense<0.000000e+00> : vector<512x128xf32>
    %2 = tpu.matmul %0, %1, %cst {dimension_numbers = #tpu.dot_dimension_numbers<[1], [0], [0], [1], [0, 0, 1, 1], [], []>} : vector<512x128xbf16>, vector<128x128xbf16>, vector<512x128xf32> -> vector<512x128xf32>
    %3 = arith.truncf %2 : vector<512x128xf32> to vector<512x128xbf16>
    %c0_3 = arith.constant 0 : index
    %c0_4 = arith.constant 0 : index
    %4 = vector.load %arg3[%c0_3, %c0_4] : memref<512x128xbf16, #tpu.memory_space<vmem>>, vector<512x128xbf16>
    tpu.vector_store %arg3[%c0_3, %c0_4], %3 {strides = array<i32>} : memref<512x128xbf16, #tpu.memory_space<vmem>>, vector<512x128xbf16>,
    %cst_5 = arith.constant dense<0.000000e+00> : vector<128xf32>
    %5 = vector.multi_reduction <add>, %2, %cst_5 [0] : vector<512x128xf32> to vector<128xf32>
    %6 = vector.shape_cast %5 : vector<128xf32> to vector<1x128xf32>
    %c0_6 = arith.constant 0 : index
    %c0_7 = arith.constant 0 : index
    %c0_8 = arith.constant 0 : index
    %7 = vector.load %arg4[%c0_6, %c0_7, %c0_8] : memref<1x2x128xf32, #tpu.memory_space<vmem>>, vector<1x1x128xf32>
    %8 = vector.shape_cast %7 : vector<1x1x128xf32> to vector<1x128xf32>
    %9 = vector.shape_cast %6 : vector<1x128xf32> to vector<1x1x128xf32>
    tpu.vector_store %arg4[%c0_6, %c0_7, %c0_8], %9 {strides = array<i32>} : memref<1x2x128xf32, #tpu.memory_space<vmem>>, vector<1x1x128xf32>,
    %10 = arith.mulf %2, %2 : vector<512x128xf32>
    %cst_9 = arith.constant dense<0.000000e+00> : vector<128xf32>
    %11 = vector.multi_reduction <add>, %10, %cst_9 [0] : vector<512x128xf32> to vector<128xf32>
    %12 = vector.shape_cast %11 : vector<128xf32> to vector<1x128xf32>
    %c0_10 = arith.constant 0 : index
    %c1 = arith.constant 1 : index
    %c0_11 = arith.constant 0 : index
    %13 = vector.load %arg4[%c0_10, %c1, %c0_11] : memref<1x2x128xf32, #tpu.memory_space<vmem>>, vector<1x1x128xf32>
    %14 = vector.shape_cast %13 : vector<1x1x128xf32> to vector<1x128xf32>
    %15 = vector.shape_cast %12 : vector<1x128xf32> to vector<1x1x128xf32>
    tpu.vector_store %arg4[%c0_10, %c1, %c0_11], %15 {strides = array<i32>} : memref<1x2x128xf32, #tpu.memory_space<vmem>>, vector<1x1x128xf32>,
    return
  }
  func.func @transform_0(%arg0: i32) -> (i32, i32) {
    %c0_i32 = arith.constant 0 : i32
    %c0_i32_0 = arith.constant 0 : i32
    return %arg0, %c0_i32 : i32, i32
  }
  func.func @transform_1(%arg0: i32) -> (i32, i32) {
    %c0_i32 = arith.constant 0 : i32
    %c0_i32_0 = arith.constant 0 : i32
    %c0_i32_1 = arith.constant 0 : i32
    return %c0_i32, %c0_i32_0 : i32, i32
  }
  func.func @transform_2(%arg0: i32) -> (i32, i32) {
    %c0_i32 = arith.constant 0 : i32
    %c0_i32_0 = arith.constant 0 : i32
    return %arg0, %c0_i32 : i32, i32
  }
  func.func @transform_3(%arg0: i32) -> (i32, i32, i32) {
    %c0_i32 = arith.constant 0 : i32
    %c0_i32_0 = arith.constant 0 : i32
    %c0_i32_1 = arith.constant 0 : i32
    return %arg0, %c0_i32, %c0_i32_0 : i32, i32, i32
  }
}

module attributes {stable_mosaic.version = 11 : i64} {
  func.func @shortcut_stats_kernel(%arg0: i32, %arg1: memref<1x8x1x8x128xbf16, #tpu.memory_space<vmem>>, %arg2: memref<128x128xbf16, #tpu.memory_space<vmem>>, %arg3: memref<1x64x128xbf16, #tpu.memory_space<vmem>>, %arg4: memref<1x2x128xf32, #tpu.memory_space<vmem>>) attributes {dimension_semantics = [#tpu.dimension_semantics<parallel>], iteration_bounds = array<i64: 2>, scalar_prefetch = 0 : i64, scratch_operands = 0 : i64, tpu.core_type = #tpu.core_type<tc>, window_params = [{transform_indices = @transform_0, window_bounds = array<i64: 1, 8, 1, 8, 128>}, {pipeline_mode = #tpu.pipeline_mode<synchronous>, transform_indices = @transform_1, window_bounds = array<i64: 128, 128>}, {transform_indices = @transform_2, window_bounds = array<i64: 1, 64, 128>}, {transform_indices = @transform_3, window_bounds = array<i64: 1, 2, 128>}]} {
    %c0 = arith.constant 0 : index
    %c0_0 = arith.constant 0 : index
    %c0_1 = arith.constant 0 : index
    %c0_2 = arith.constant 0 : index
    %c0_3 = arith.constant 0 : index
    %0 = vector.load %arg1[%c0, %c0_0, %c0_1, %c0_2, %c0_3] : memref<1x8x1x8x128xbf16, #tpu.memory_space<vmem>>, vector<1x8x1x8x128xbf16>
    %1 = vector.shape_cast %0 : vector<1x8x1x8x128xbf16> to vector<8x8x128xbf16>
    %2 = vector.shape_cast %1 : vector<8x8x128xbf16> to vector<64x128xbf16>
    %c0_4 = arith.constant 0 : index
    %c0_5 = arith.constant 0 : index
    %3 = vector.load %arg2[%c0_4, %c0_5] : memref<128x128xbf16, #tpu.memory_space<vmem>>, vector<128x128xbf16>
    %cst = arith.constant dense<0.000000e+00> : vector<64x128xf32>
    %4 = tpu.matmul %2, %3, %cst {dimension_numbers = #tpu.dot_dimension_numbers<[1], [0], [0], [1], [0, 0, 1, 1], [], []>} : vector<64x128xbf16>, vector<128x128xbf16>, vector<64x128xf32> -> vector<64x128xf32>
    %5 = arith.truncf %4 : vector<64x128xf32> to vector<64x128xbf16>
    %c0_6 = arith.constant 0 : index
    %c0_7 = arith.constant 0 : index
    %c0_8 = arith.constant 0 : index
    %6 = vector.load %arg3[%c0_6, %c0_7, %c0_8] : memref<1x64x128xbf16, #tpu.memory_space<vmem>>, vector<1x64x128xbf16>
    %7 = vector.shape_cast %6 : vector<1x64x128xbf16> to vector<64x128xbf16>
    %8 = vector.shape_cast %5 : vector<64x128xbf16> to vector<1x64x128xbf16>
    tpu.vector_store %arg3[%c0_6, %c0_7, %c0_8], %8 {strides = array<i32>} : memref<1x64x128xbf16, #tpu.memory_space<vmem>>, vector<1x64x128xbf16>,
    %cst_9 = arith.constant dense<0.000000e+00> : vector<128xf32>
    %9 = vector.multi_reduction <add>, %4, %cst_9 [0] : vector<64x128xf32> to vector<128xf32>
    %10 = vector.shape_cast %9 : vector<128xf32> to vector<1x128xf32>
    %c0_10 = arith.constant 0 : index
    %c0_11 = arith.constant 0 : index
    %c0_12 = arith.constant 0 : index
    %11 = vector.load %arg4[%c0_10, %c0_11, %c0_12] : memref<1x2x128xf32, #tpu.memory_space<vmem>>, vector<1x1x128xf32>
    %12 = vector.shape_cast %11 : vector<1x1x128xf32> to vector<1x128xf32>
    %13 = vector.shape_cast %10 : vector<1x128xf32> to vector<1x1x128xf32>
    tpu.vector_store %arg4[%c0_10, %c0_11, %c0_12], %13 {strides = array<i32>} : memref<1x2x128xf32, #tpu.memory_space<vmem>>, vector<1x1x128xf32>,
    %14 = arith.mulf %4, %4 : vector<64x128xf32>
    %cst_13 = arith.constant dense<0.000000e+00> : vector<128xf32>
    %15 = vector.multi_reduction <add>, %14, %cst_13 [0] : vector<64x128xf32> to vector<128xf32>
    %16 = vector.shape_cast %15 : vector<128xf32> to vector<1x128xf32>
    %c0_14 = arith.constant 0 : index
    %c1 = arith.constant 1 : index
    %c0_15 = arith.constant 0 : index
    %17 = vector.load %arg4[%c0_14, %c1, %c0_15] : memref<1x2x128xf32, #tpu.memory_space<vmem>>, vector<1x1x128xf32>
    %18 = vector.shape_cast %17 : vector<1x1x128xf32> to vector<1x128xf32>
    %19 = vector.shape_cast %16 : vector<1x128xf32> to vector<1x1x128xf32>
    tpu.vector_store %arg4[%c0_14, %c1, %c0_15], %19 {strides = array<i32>} : memref<1x2x128xf32, #tpu.memory_space<vmem>>, vector<1x1x128xf32>,
    return
  }
  func.func @transform_0(%arg0: i32) -> (i32, i32, i32, i32, i32) {
    %c0_i32 = arith.constant 0 : i32
    %c0_i32_0 = arith.constant 0 : i32
    %c0_i32_1 = arith.constant 0 : i32
    %c0_i32_2 = arith.constant 0 : i32
    %c0_i32_3 = arith.constant 0 : i32
    return %arg0, %c0_i32, %c0_i32_0, %c0_i32_1, %c0_i32_2 : i32, i32, i32, i32, i32
  }
  func.func @transform_1(%arg0: i32) -> (i32, i32) {
    %c0_i32 = arith.constant 0 : i32
    %c0_i32_0 = arith.constant 0 : i32
    %c0_i32_1 = arith.constant 0 : i32
    return %c0_i32, %c0_i32_0 : i32, i32
  }
  func.func @transform_2(%arg0: i32) -> (i32, i32, i32) {
    %c0_i32 = arith.constant 0 : i32
    %c0_i32_0 = arith.constant 0 : i32
    %c0_i32_1 = arith.constant 0 : i32
    return %arg0, %c0_i32, %c0_i32_0 : i32, i32, i32
  }
  func.func @transform_3(%arg0: i32) -> (i32, i32, i32) {
    %c0_i32 = arith.constant 0 : i32
    %c0_i32_0 = arith.constant 0 : i32
    %c0_i32_1 = arith.constant 0 : i32
    return %arg0, %c0_i32, %c0_i32_0 : i32, i32, i32
  }
}

module attributes {stable_mosaic.version = 11 : i64} {
  func.func @conv3x3_stats_kernel(%arg0: i32, %arg1: i32, %arg2: memref<1x9x2x9x256xbf16, #tpu.memory_space<vmem>>, %arg3: memref<3x384x128xbf16, #tpu.memory_space<vmem>>, %arg4: memref<1x8x8x128xbf16, #tpu.memory_space<vmem>>, %arg5: memref<1x1x2x128xf32, #tpu.memory_space<vmem>>) attributes {dimension_semantics = [#tpu.dimension_semantics<parallel>, #tpu.dimension_semantics<parallel>], iteration_bounds = array<i64: 2, 1>, scalar_prefetch = 0 : i64, scratch_operands = 0 : i64, tpu.core_type = #tpu.core_type<tc>, window_params = [{transform_indices = @transform_0, window_bounds = array<i64: 1, 9, 2, 9, 256>}, {pipeline_mode = #tpu.pipeline_mode<synchronous>, transform_indices = @transform_1, window_bounds = array<i64: 3, 384, 128>}, {transform_indices = @transform_2, window_bounds = array<i64: 1, 8, 8, 128>}, {transform_indices = @transform_3, window_bounds = array<i64: 1, 1, 2, 128>}]} {
    %c8_i32 = arith.constant 8 : i32
    %0 = arith.muli %arg1, %c8_i32 : i32
    %cst = arith.constant 0.000000e+00 : f32
    %1 = vector.broadcast %cst : f32 to vector<64x128xf32>
    %c0_i32 = arith.constant 0 : i32
    %2 = arith.addi %0, %c0_i32 : i32
    %c0 = arith.constant 0 : index
    %3 = arith.index_cast %2 : i32 to index
    %c0_0 = arith.constant 0 : index
    %c0_1 = arith.constant 0 : index
    %c0_2 = arith.constant 0 : index
    %4 = vector.load %arg2[%c0, %3, %c0_0, %c0_1, %c0_2] : memref<1x9x2x9x256xbf16, #tpu.memory_space<vmem>>, vector<1x8x1x8x128xbf16>
    %5 = vector.shape_cast %4 : vector<1x8x1x8x128xbf16> to vector<8x8x128xbf16>
    %c0_i32_3 = arith.constant 0 : i32
    %6 = arith.addi %0, %c0_i32_3 : i32
    %c0_4 = arith.constant 0 : index
    %7 = arith.index_cast %6 : i32 to index
    %c0_5 = arith.constant 0 : index
    %c0_6 = arith.constant 0 : index
    %c128 = arith.constant 128 : index
    %8 = vector.load %arg2[%c0_4, %7, %c0_5, %c0_6, %c128] : memref<1x9x2x9x256xbf16, #tpu.memory_space<vmem>>, vector<1x8x1x8x128xbf16>
    %9 = vector.shape_cast %8 : vector<1x8x1x8x128xbf16> to vector<8x8x128xbf16>
    %c0_i32_7 = arith.constant 0 : i32
    %10 = arith.addi %0, %c0_i32_7 : i32
    %c0_8 = arith.constant 0 : index
    %11 = arith.index_cast %10 : i32 to index
    %c0_9 = arith.constant 0 : index
    %c1 = arith.constant 1 : index
    %c0_10 = arith.constant 0 : index
    %12 = vector.load %arg2[%c0_8, %11, %c0_9, %c1, %c0_10] : memref<1x9x2x9x256xbf16, #tpu.memory_space<vmem>>, vector<1x8x1x8x128xbf16>
    %13 = vector.shape_cast %12 : vector<1x8x1x8x128xbf16> to vector<8x8x128xbf16>
    %14 = tpu.concatenate %5, %9, %13 in 2 : vector<8x8x128xbf16>, vector<8x8x128xbf16>, vector<8x8x128xbf16> -> vector<8x8x384xbf16>
    %15 = vector.shape_cast %14 : vector<8x8x384xbf16> to vector<64x384xbf16>
    %c0_11 = arith.constant 0 : index
    %c0_12 = arith.constant 0 : index
    %c0_13 = arith.constant 0 : index
    %16 = vector.load %arg3[%c0_11, %c0_12, %c0_13] : memref<3x384x128xbf16, #tpu.memory_space<vmem>>, vector<1x384x128xbf16>
    %17 = vector.shape_cast %16 : vector<1x384x128xbf16> to vector<384x128xbf16>
    %cst_14 = arith.constant dense<0.000000e+00> : vector<64x128xf32>
    %18 = tpu.matmul %15, %17, %cst_14 {dimension_numbers = #tpu.dot_dimension_numbers<[1], [0], [0], [1], [0, 0, 1, 1], [], []>} : vector<64x384xbf16>, vector<384x128xbf16>, vector<64x128xf32> -> vector<64x128xf32>
    %19 = arith.addf %1, %18 : vector<64x128xf32>
    %c0_i32_15 = arith.constant 0 : i32
    %20 = arith.addi %0, %c0_i32_15 : i32
    %c0_16 = arith.constant 0 : index
    %21 = arith.index_cast %20 : i32 to index
    %c1_17 = arith.constant 1 : index
    %c0_18 = arith.constant 0 : index
    %c0_19 = arith.constant 0 : index
    %22 = vector.load %arg2[%c0_16, %21, %c1_17, %c0_18, %c0_19] : memref<1x9x2x9x256xbf16, #tpu.memory_space<vmem>>, vector<1x8x1x8x128xbf16>
    %23 = vector.shape_cast %22 : vector<1x8x1x8x128xbf16> to vector<8x8x128xbf16>
    %c0_i32_20 = arith.constant 0 : i32
    %24 = arith.addi %0, %c0_i32_20 : i32
    %c0_21 = arith.constant 0 : index
    %25 = arith.index_cast %24 : i32 to index
    %c1_22 = arith.constant 1 : index
    %c0_23 = arith.constant 0 : index
    %c128_24 = arith.constant 128 : index
    %26 = vector.load %arg2[%c0_21, %25, %c1_22, %c0_23, %c128_24] : memref<1x9x2x9x256xbf16, #tpu.memory_space<vmem>>, vector<1x8x1x8x128xbf16>
    %27 = vector.shape_cast %26 : vector<1x8x1x8x128xbf16> to vector<8x8x128xbf16>
    %c0_i32_25 = arith.constant 0 : i32
    %28 = arith.addi %0, %c0_i32_25 : i32
    %c0_26 = arith.constant 0 : index
    %29 = arith.index_cast %28 : i32 to index
    %c1_27 = arith.constant 1 : index
    %c1_28 = arith.constant 1 : index
    %c0_29 = arith.constant 0 : index
    %30 = vector.load %arg2[%c0_26, %29, %c1_27, %c1_28, %c0_29] : memref<1x9x2x9x256xbf16, #tpu.memory_space<vmem>>, vector<1x8x1x8x128xbf16>
    %31 = vector.shape_cast %30 : vector<1x8x1x8x128xbf16> to vector<8x8x128xbf16>
    %32 = tpu.concatenate %23, %27, %31 in 2 : vector<8x8x128xbf16>, vector<8x8x128xbf16>, vector<8x8x128xbf16> -> vector<8x8x384xbf16>
    %33 = vector.shape_cast %32 : vector<8x8x384xbf16> to vector<64x384xbf16>
    %c1_30 = arith.constant 1 : index
    %c0_31 = arith.constant 0 : index
    %c0_32 = arith.constant 0 : index
    %34 = vector.load %arg3[%c1_30, %c0_31, %c0_32] : memref<3x384x128xbf16, #tpu.memory_space<vmem>>, vector<1x384x128xbf16>
    %35 = vector.shape_cast %34 : vector<1x384x128xbf16> to vector<384x128xbf16>
    %cst_33 = arith.constant dense<0.000000e+00> : vector<64x128xf32>
    %36 = tpu.matmul %33, %35, %cst_33 {dimension_numbers = #tpu.dot_dimension_numbers<[1], [0], [0], [1], [0, 0, 1, 1], [], []>} : vector<64x384xbf16>, vector<384x128xbf16>, vector<64x128xf32> -> vector<64x128xf32>
    %37 = arith.addf %19, %36 : vector<64x128xf32>
    %c1_i32 = arith.constant 1 : i32
    %38 = arith.addi %0, %c1_i32 : i32
    %c0_34 = arith.constant 0 : index
    %39 = arith.index_cast %38 : i32 to index
    %c0_35 = arith.constant 0 : index
    %c0_36 = arith.constant 0 : index
    %c0_37 = arith.constant 0 : index
    %40 = vector.load %arg2[%c0_34, %39, %c0_35, %c0_36, %c0_37] : memref<1x9x2x9x256xbf16, #tpu.memory_space<vmem>>, vector<1x8x1x8x128xbf16>
    %41 = vector.shape_cast %40 : vector<1x8x1x8x128xbf16> to vector<8x8x128xbf16>
    %c1_i32_38 = arith.constant 1 : i32
    %42 = arith.addi %0, %c1_i32_38 : i32
    %c0_39 = arith.constant 0 : index
    %43 = arith.index_cast %42 : i32 to index
    %c0_40 = arith.constant 0 : index
    %c0_41 = arith.constant 0 : index
    %c128_42 = arith.constant 128 : index
    %44 = vector.load %arg2[%c0_39, %43, %c0_40, %c0_41, %c128_42] : memref<1x9x2x9x256xbf16, #tpu.memory_space<vmem>>, vector<1x8x1x8x128xbf16>
    %45 = vector.shape_cast %44 : vector<1x8x1x8x128xbf16> to vector<8x8x128xbf16>
    %c1_i32_43 = arith.constant 1 : i32
    %46 = arith.addi %0, %c1_i32_43 : i32
    %c0_44 = arith.constant 0 : index
    %47 = arith.index_cast %46 : i32 to index
    %c0_45 = arith.constant 0 : index
    %c1_46 = arith.constant 1 : index
    %c0_47 = arith.constant 0 : index
    %48 = vector.load %arg2[%c0_44, %47, %c0_45, %c1_46, %c0_47] : memref<1x9x2x9x256xbf16, #tpu.memory_space<vmem>>, vector<1x8x1x8x128xbf16>
    %49 = vector.shape_cast %48 : vector<1x8x1x8x128xbf16> to vector<8x8x128xbf16>
    %50 = tpu.concatenate %41, %45, %49 in 2 : vector<8x8x128xbf16>, vector<8x8x128xbf16>, vector<8x8x128xbf16> -> vector<8x8x384xbf16>
    %51 = vector.shape_cast %50 : vector<8x8x384xbf16> to vector<64x384xbf16>
    %c2 = arith.constant 2 : index
    %c0_48 = arith.constant 0 : index
    %c0_49 = arith.constant 0 : index
    %52 = vector.load %arg3[%c2, %c0_48, %c0_49] : memref<3x384x128xbf16, #tpu.memory_space<vmem>>, vector<1x384x128xbf16>
    %53 = vector.shape_cast %52 : vector<1x384x128xbf16> to vector<384x128xbf16>
    %cst_50 = arith.constant dense<0.000000e+00> : vector<64x128xf32>
    %54 = tpu.matmul %51, %53, %cst_50 {dimension_numbers = #tpu.dot_dimension_numbers<[1], [0], [0], [1], [0, 0, 1, 1], [], []>} : vector<64x384xbf16>, vector<384x128xbf16>, vector<64x128xf32> -> vector<64x128xf32>
    %55 = arith.addf %37, %54 : vector<64x128xf32>
    %56 = vector.shape_cast %55 : vector<64x128xf32> to vector<8x8x128xf32>
    %57 = arith.truncf %56 : vector<8x8x128xf32> to vector<8x8x128xbf16>
    %c0_51 = arith.constant 0 : index
    %c0_52 = arith.constant 0 : index
    %c0_53 = arith.constant 0 : index
    %c0_54 = arith.constant 0 : index
    %58 = vector.load %arg4[%c0_51, %c0_52, %c0_53, %c0_54] : memref<1x8x8x128xbf16, #tpu.memory_space<vmem>>, vector<1x8x8x128xbf16>
    %59 = vector.shape_cast %58 : vector<1x8x8x128xbf16> to vector<8x8x128xbf16>
    %60 = vector.shape_cast %57 : vector<8x8x128xbf16> to vector<1x8x8x128xbf16>
    tpu.vector_store %arg4[%c0_51, %c0_52, %c0_53, %c0_54], %60 {strides = array<i32>} : memref<1x8x8x128xbf16, #tpu.memory_space<vmem>>, vector<1x8x8x128xbf16>,
    %cst_55 = arith.constant dense<0.000000e+00> : vector<128xf32>
    %61 = vector.multi_reduction <add>, %55, %cst_55 [0] : vector<64x128xf32> to vector<128xf32>
    %62 = vector.shape_cast %61 : vector<128xf32> to vector<1x128xf32>
    %c0_56 = arith.constant 0 : index
    %c0_57 = arith.constant 0 : index
    %c0_58 = arith.constant 0 : index
    %c0_59 = arith.constant 0 : index
    %63 = vector.load %arg5[%c0_56, %c0_57, %c0_58, %c0_59] : memref<1x1x2x128xf32, #tpu.memory_space<vmem>>, vector<1x1x1x128xf32>
    %64 = vector.shape_cast %63 : vector<1x1x1x128xf32> to vector<1x128xf32>
    %65 = vector.shape_cast %62 : vector<1x128xf32> to vector<1x1x1x128xf32>
    tpu.vector_store %arg5[%c0_56, %c0_57, %c0_58, %c0_59], %65 {strides = array<i32>} : memref<1x1x2x128xf32, #tpu.memory_space<vmem>>, vector<1x1x1x128xf32>,
    %66 = arith.mulf %55, %55 : vector<64x128xf32>
    %cst_60 = arith.constant dense<0.000000e+00> : vector<128xf32>
    %67 = vector.multi_reduction <add>, %66, %cst_60 [0] : vector<64x128xf32> to vector<128xf32>
    %68 = vector.shape_cast %67 : vector<128xf32> to vector<1x128xf32>
    %c0_61 = arith.constant 0 : index
    %c0_62 = arith.constant 0 : index
    %c1_63 = arith.constant 1 : index
    %c0_64 = arith.constant 0 : index
    %69 = vector.load %arg5[%c0_61, %c0_62, %c1_63, %c0_64] : memref<1x1x2x128xf32, #tpu.memory_space<vmem>>, vector<1x1x1x128xf32>
    %70 = vector.shape_cast %69 : vector<1x1x1x128xf32> to vector<1x128xf32>
    %71 = vector.shape_cast %68 : vector<1x128xf32> to vector<1x1x1x128xf32>
    tpu.vector_store %arg5[%c0_61, %c0_62, %c1_63, %c0_64], %71 {strides = array<i32>} : memref<1x1x2x128xf32, #tpu.memory_space<vmem>>, vector<1x1x1x128xf32>,
    return
  }
  func.func @transform_0(%arg0: i32, %arg1: i32) -> (i32, i32, i32, i32, i32) {
    %c0_i32 = arith.constant 0 : i32
    %c0_i32_0 = arith.constant 0 : i32
    %c0_i32_1 = arith.constant 0 : i32
    %c0_i32_2 = arith.constant 0 : i32
    %c0_i32_3 = arith.constant 0 : i32
    return %arg0, %c0_i32, %c0_i32_0, %c0_i32_1, %c0_i32_2 : i32, i32, i32, i32, i32
  }
  func.func @transform_1(%arg0: i32, %arg1: i32) -> (i32, i32, i32) {
    %c0_i32 = arith.constant 0 : i32
    %c0_i32_0 = arith.constant 0 : i32
    %c0_i32_1 = arith.constant 0 : i32
    %c0_i32_2 = arith.constant 0 : i32
    return %c0_i32, %c0_i32_0, %c0_i32_1 : i32, i32, i32
  }
  func.func @transform_2(%arg0: i32, %arg1: i32) -> (i32, i32, i32, i32) {
    %c0_i32 = arith.constant 0 : i32
    %c0_i32_0 = arith.constant 0 : i32
    %c0_i32_1 = arith.constant 0 : i32
    return %arg0, %arg1, %c0_i32, %c0_i32_0 : i32, i32, i32, i32
  }
  func.func @transform_3(%arg0: i32, %arg1: i32) -> (i32, i32, i32, i32) {
    %c0_i32 = arith.constant 0 : i32
    %c0_i32_0 = arith.constant 0 : i32
    %c0_i32_1 = arith.constant 0 : i32
    return %arg0, %arg1, %c0_i32, %c0_i32_0 : i32, i32, i32, i32
  }
}

module attributes {stable_mosaic.version = 11 : i64} {
  func.func @mm_stats_kernel(%arg0: i32, %arg1: memref<128x128xbf16, #tpu.memory_space<vmem>>, %arg2: memref<128x128xbf16, #tpu.memory_space<vmem>>, %arg3: memref<1x128xf32, #tpu.memory_space<vmem>>, %arg4: memref<1x128xf32, #tpu.memory_space<vmem>>, %arg5: memref<128x128xbf16, #tpu.memory_space<vmem>>, %arg6: memref<1x2x128xf32, #tpu.memory_space<vmem>>) attributes {dimension_semantics = [#tpu.dimension_semantics<parallel>], iteration_bounds = array<i64: 1>, scalar_prefetch = 0 : i64, scratch_operands = 0 : i64, tpu.core_type = #tpu.core_type<tc>, window_params = [{transform_indices = @transform_0, window_bounds = array<i64: 128, 128>}, {pipeline_mode = #tpu.pipeline_mode<synchronous>, transform_indices = @transform_1, window_bounds = array<i64: 128, 128>}, {pipeline_mode = #tpu.pipeline_mode<synchronous>, transform_indices = @transform_2, window_bounds = array<i64: 1, 128>}, {pipeline_mode = #tpu.pipeline_mode<synchronous>, transform_indices = @transform_3, window_bounds = array<i64: 1, 128>}, {transform_indices = @transform_4, window_bounds = array<i64: 128, 128>}, {transform_indices = @transform_5, window_bounds = array<i64: 1, 2, 128>}]} {
    %c0 = arith.constant 0 : index
    %c0_0 = arith.constant 0 : index
    %0 = vector.load %arg1[%c0, %c0_0] : memref<128x128xbf16, #tpu.memory_space<vmem>>, vector<128x128xbf16>
    %1 = arith.extf %0 : vector<128x128xbf16> to vector<128x128xf32>
    %c0_1 = arith.constant 0 : index
    %c0_2 = arith.constant 0 : index
    %2 = vector.load %arg3[%c0_1, %c0_2] : memref<1x128xf32, #tpu.memory_space<vmem>>, vector<1x128xf32>
    %3 = vector.broadcast %2 : vector<1x128xf32> to vector<128x128xf32>
    %4 = arith.mulf %1, %3 : vector<128x128xf32>
    %c0_3 = arith.constant 0 : index
    %c0_4 = arith.constant 0 : index
    %5 = vector.load %arg4[%c0_3, %c0_4] : memref<1x128xf32, #tpu.memory_space<vmem>>, vector<1x128xf32>
    %6 = vector.broadcast %5 : vector<1x128xf32> to vector<128x128xf32>
    %7 = arith.addf %4, %6 : vector<128x128xf32>
    %cst = arith.constant 0.000000e+00 : f32
    %8 = vector.broadcast %cst : f32 to vector<128x128xf32>
    %9 = arith.maximumf %7, %8 : vector<128x128xf32>
    %10 = arith.truncf %9 : vector<128x128xf32> to vector<128x128xbf16>
    %c0_5 = arith.constant 0 : index
    %c0_6 = arith.constant 0 : index
    %11 = vector.load %arg2[%c0_5, %c0_6] : memref<128x128xbf16, #tpu.memory_space<vmem>>, vector<128x128xbf16>
    %cst_7 = arith.constant dense<0.000000e+00> : vector<128x128xf32>
    %12 = tpu.matmul %10, %11, %cst_7 {dimension_numbers = #tpu.dot_dimension_numbers<[1], [0], [0], [1], [0, 0, 1, 1], [], []>} : vector<128x128xbf16>, vector<128x128xbf16>, vector<128x128xf32> -> vector<128x128xf32>
    %13 = arith.truncf %12 : vector<128x128xf32> to vector<128x128xbf16>
    %c0_8 = arith.constant 0 : index
    %c0_9 = arith.constant 0 : index
    %14 = vector.load %arg5[%c0_8, %c0_9] : memref<128x128xbf16, #tpu.memory_space<vmem>>, vector<128x128xbf16>
    tpu.vector_store %arg5[%c0_8, %c0_9], %13 {strides = array<i32>} : memref<128x128xbf16, #tpu.memory_space<vmem>>, vector<128x128xbf16>,
    %cst_10 = arith.constant dense<0.000000e+00> : vector<128xf32>
    %15 = vector.multi_reduction <add>, %12, %cst_10 [0] : vector<128x128xf32> to vector<128xf32>
    %16 = vector.shape_cast %15 : vector<128xf32> to vector<1x128xf32>
    %c0_11 = arith.constant 0 : index
    %c0_12 = arith.constant 0 : index
    %c0_13 = arith.constant 0 : index
    %17 = vector.load %arg6[%c0_11, %c0_12, %c0_13] : memref<1x2x128xf32, #tpu.memory_space<vmem>>, vector<1x1x128xf32>
    %18 = vector.shape_cast %17 : vector<1x1x128xf32> to vector<1x128xf32>
    %19 = vector.shape_cast %16 : vector<1x128xf32> to vector<1x1x128xf32>
    tpu.vector_store %arg6[%c0_11, %c0_12, %c0_13], %19 {strides = array<i32>} : memref<1x2x128xf32, #tpu.memory_space<vmem>>, vector<1x1x128xf32>,
    %20 = arith.mulf %12, %12 : vector<128x128xf32>
    %cst_14 = arith.constant dense<0.000000e+00> : vector<128xf32>
    %21 = vector.multi_reduction <add>, %20, %cst_14 [0] : vector<128x128xf32> to vector<128xf32>
    %22 = vector.shape_cast %21 : vector<128xf32> to vector<1x128xf32>
    %c0_15 = arith.constant 0 : index
    %c1 = arith.constant 1 : index
    %c0_16 = arith.constant 0 : index
    %23 = vector.load %arg6[%c0_15, %c1, %c0_16] : memref<1x2x128xf32, #tpu.memory_space<vmem>>, vector<1x1x128xf32>
    %24 = vector.shape_cast %23 : vector<1x1x128xf32> to vector<1x128xf32>
    %25 = vector.shape_cast %22 : vector<1x128xf32> to vector<1x1x128xf32>
    tpu.vector_store %arg6[%c0_15, %c1, %c0_16], %25 {strides = array<i32>} : memref<1x2x128xf32, #tpu.memory_space<vmem>>, vector<1x1x128xf32>,
    return
  }
  func.func @transform_0(%arg0: i32) -> (i32, i32) {
    %c0_i32 = arith.constant 0 : i32
    %c0_i32_0 = arith.constant 0 : i32
    return %arg0, %c0_i32 : i32, i32
  }
  func.func @transform_1(%arg0: i32) -> (i32, i32) {
    %c0_i32 = arith.constant 0 : i32
    %c0_i32_0 = arith.constant 0 : i32
    %c0_i32_1 = arith.constant 0 : i32
    return %c0_i32, %c0_i32_0 : i32, i32
  }
  func.func @transform_2(%arg0: i32) -> (i32, i32) {
    %c0_i32 = arith.constant 0 : i32
    %c0_i32_0 = arith.constant 0 : i32
    %c0_i32_1 = arith.constant 0 : i32
    return %c0_i32, %c0_i32_0 : i32, i32
  }
  func.func @transform_3(%arg0: i32) -> (i32, i32) {
    %c0_i32 = arith.constant 0 : i32
    %c0_i32_0 = arith.constant 0 : i32
    %c0_i32_1 = arith.constant 0 : i32
    return %c0_i32, %c0_i32_0 : i32, i32
  }
  func.func @transform_4(%arg0: i32) -> (i32, i32) {
    %c0_i32 = arith.constant 0 : i32
    %c0_i32_0 = arith.constant 0 : i32
    return %arg0, %c0_i32 : i32, i32
  }
  func.func @transform_5(%arg0: i32) -> (i32, i32, i32) {
    %c0_i32 = arith.constant 0 : i32
    %c0_i32_0 = arith.constant 0 : i32
    %c0_i32_1 = arith.constant 0 : i32
    return %arg0, %c0_i32, %c0_i32_0 : i32, i32, i32
  }
}

module attributes {stable_mosaic.version = 11 : i64} {
  func.func @residual_bn_relu_kernel(%arg0: i32, %arg1: memref<128x128xbf16, #tpu.memory_space<vmem>>, %arg2: memref<1x128xf32, #tpu.memory_space<vmem>>, %arg3: memref<1x128xf32, #tpu.memory_space<vmem>>, %arg4: memref<128x128xbf16, #tpu.memory_space<vmem>>, %arg5: memref<1x128xf32, #tpu.memory_space<vmem>>, %arg6: memref<1x128xf32, #tpu.memory_space<vmem>>, %arg7: memref<128x128xbf16, #tpu.memory_space<vmem>>) attributes {dimension_semantics = [#tpu.dimension_semantics<parallel>], iteration_bounds = array<i64: 1>, scalar_prefetch = 0 : i64, scratch_operands = 0 : i64, tpu.core_type = #tpu.core_type<tc>, window_params = [{transform_indices = @transform_0, window_bounds = array<i64: 128, 128>}, {pipeline_mode = #tpu.pipeline_mode<synchronous>, transform_indices = @transform_1, window_bounds = array<i64: 1, 128>}, {pipeline_mode = #tpu.pipeline_mode<synchronous>, transform_indices = @transform_2, window_bounds = array<i64: 1, 128>}, {transform_indices = @transform_3, window_bounds = array<i64: 128, 128>}, {pipeline_mode = #tpu.pipeline_mode<synchronous>, transform_indices = @transform_4, window_bounds = array<i64: 1, 128>}, {pipeline_mode = #tpu.pipeline_mode<synchronous>, transform_indices = @transform_5, window_bounds = array<i64: 1, 128>}, {transform_indices = @transform_6, window_bounds = array<i64: 128, 128>}]} {
    %c0 = arith.constant 0 : index
    %c0_0 = arith.constant 0 : index
    %0 = vector.load %arg1[%c0, %c0_0] : memref<128x128xbf16, #tpu.memory_space<vmem>>, vector<128x128xbf16>
    %1 = arith.extf %0 : vector<128x128xbf16> to vector<128x128xf32>
    %c0_1 = arith.constant 0 : index
    %c0_2 = arith.constant 0 : index
    %2 = vector.load %arg2[%c0_1, %c0_2] : memref<1x128xf32, #tpu.memory_space<vmem>>, vector<1x128xf32>
    %3 = vector.broadcast %2 : vector<1x128xf32> to vector<128x128xf32>
    %4 = arith.mulf %1, %3 : vector<128x128xf32>
    %c0_3 = arith.constant 0 : index
    %c0_4 = arith.constant 0 : index
    %5 = vector.load %arg3[%c0_3, %c0_4] : memref<1x128xf32, #tpu.memory_space<vmem>>, vector<1x128xf32>
    %6 = vector.broadcast %5 : vector<1x128xf32> to vector<128x128xf32>
    %7 = arith.addf %4, %6 : vector<128x128xf32>
    %c0_5 = arith.constant 0 : index
    %c0_6 = arith.constant 0 : index
    %8 = vector.load %arg4[%c0_5, %c0_6] : memref<128x128xbf16, #tpu.memory_space<vmem>>, vector<128x128xbf16>
    %9 = arith.extf %8 : vector<128x128xbf16> to vector<128x128xf32>
    %c0_7 = arith.constant 0 : index
    %c0_8 = arith.constant 0 : index
    %10 = vector.load %arg5[%c0_7, %c0_8] : memref<1x128xf32, #tpu.memory_space<vmem>>, vector<1x128xf32>
    %11 = vector.broadcast %10 : vector<1x128xf32> to vector<128x128xf32>
    %12 = arith.mulf %9, %11 : vector<128x128xf32>
    %c0_9 = arith.constant 0 : index
    %c0_10 = arith.constant 0 : index
    %13 = vector.load %arg6[%c0_9, %c0_10] : memref<1x128xf32, #tpu.memory_space<vmem>>, vector<1x128xf32>
    %14 = vector.broadcast %13 : vector<1x128xf32> to vector<128x128xf32>
    %15 = arith.addf %12, %14 : vector<128x128xf32>
    %16 = arith.addf %7, %15 : vector<128x128xf32>
    %cst = arith.constant 0.000000e+00 : f32
    %17 = vector.broadcast %cst : f32 to vector<128x128xf32>
    %18 = arith.maximumf %16, %17 : vector<128x128xf32>
    %19 = arith.truncf %18 : vector<128x128xf32> to vector<128x128xbf16>
    %c0_11 = arith.constant 0 : index
    %c0_12 = arith.constant 0 : index
    %20 = vector.load %arg7[%c0_11, %c0_12] : memref<128x128xbf16, #tpu.memory_space<vmem>>, vector<128x128xbf16>
    tpu.vector_store %arg7[%c0_11, %c0_12], %19 {strides = array<i32>} : memref<128x128xbf16, #tpu.memory_space<vmem>>, vector<128x128xbf16>,
    return
  }
  func.func @transform_0(%arg0: i32) -> (i32, i32) {
    %c0_i32 = arith.constant 0 : i32
    %c0_i32_0 = arith.constant 0 : i32
    return %arg0, %c0_i32 : i32, i32
  }
  func.func @transform_1(%arg0: i32) -> (i32, i32) {
    %c0_i32 = arith.constant 0 : i32
    %c0_i32_0 = arith.constant 0 : i32
    %c0_i32_1 = arith.constant 0 : i32
    return %c0_i32, %c0_i32_0 : i32, i32
  }
  func.func @transform_2(%arg0: i32) -> (i32, i32) {
    %c0_i32 = arith.constant 0 : i32
    %c0_i32_0 = arith.constant 0 : i32
    %c0_i32_1 = arith.constant 0 : i32
    return %c0_i32, %c0_i32_0 : i32, i32
  }
  func.func @transform_3(%arg0: i32) -> (i32, i32) {
    %c0_i32 = arith.constant 0 : i32
    %c0_i32_0 = arith.constant 0 : i32
    return %arg0, %c0_i32 : i32, i32
  }
  func.func @transform_4(%arg0: i32) -> (i32, i32) {
    %c0_i32 = arith.constant 0 : i32
    %c0_i32_0 = arith.constant 0 : i32
    %c0_i32_1 = arith.constant 0 : i32
    return %c0_i32, %c0_i32_0 : i32, i32
  }
  func.func @transform_5(%arg0: i32) -> (i32, i32) {
    %c0_i32 = arith.constant 0 : i32
    %c0_i32_0 = arith.constant 0 : i32
    %c0_i32_1 = arith.constant 0 : i32
    return %c0_i32, %c0_i32_0 : i32, i32
  }
  func.func @transform_6(%arg0: i32) -> (i32, i32) {
    %c0_i32 = arith.constant 0 : i32
    %c0_i32_0 = arith.constant 0 : i32
    return %arg0, %c0_i32 : i32, i32
  }
}

</mosaic_0001>

<bundles_post_ra>
// kernel: bottleneck_forward.7
= control target key start
LH: loop header
LB: loop body
LE: loop exit
PB: predicated region body
PF: predicated region fallthrough
CT: control target
= control target key end

     0   :  { %s1267_s12 = smov 0   ;;  %s1658_s0 = inlined_call_operand.vmem [shape: bf16[2,16,16,128], index: 0, kind: input, shape index: {}]   ;;  %s1659_s1 = inlined_call_operand.vmem [shape: f32[1,128], index: 1, kind: input, shape index: {}]   ;;  %s1660_s2 = inlined_call_operand.vmem [shape: f32[1,128], index: 2, kind: input, shape index: {}]   ;;  %s1661_s3 = inlined_call_operand.vmem [shape: bf16[2,18,18,128], index: 3, kind: output, shape index: {}]  }
   0x1 LB: > { %s992_s13 = sadd.s32 4294967295, %s1244_s12   ;;  %p996_p0 = scmp.ge.s32.totalorder %s1244_s12, 1  ;;  %s1244_s12 = sphi %s1267_s12, %s13_s12  }
   0x2   : > { %p137_p1 = scmp.lt.s32.totalorder %s1244_s12, 3 }
   0x4   : > { %p138_p2 = pnand %p996_p0, %p137_p1 }
   0x5   : > { %p161_p3 = scmp.lt.s32.totalorder (!%p138_p2), %s992_s13, 1 }
   0x6   : > { %141 = sbr.rel (%p138_p2) target bundleno = 121 (0x79), region = 32 }
   0xb   : > { %s1669_s13 = smov (!%p161_p3, %s992_s13), 1  ;;  %v1283_v0 = vld [vmem:[%s1659_s1] ss:$0 sm:$0xff]  ;;  %v1246_v4 = vmov 0   ;;  %vm820_vm0 = vcmask 1043456   ;;  %vm827_vm4 = vcmask 1040384  }
   0xc   : > { %s1228_s14 = smul.u32 216, %s1669_s13  ;;  %s1116_s15 = sshll.u32 %s1669_s13, 7  ;;  %vm821_vm1 = vsmask.f32 7938  ;;  %v1361_v10 = vld [vmem:[%s1660_s2] ss:$0 sm:$0xff] }
   0xd   : > { %s1278_s18 = scalar_lea.vmem %s1658_s0, %s1116_s15  ;;  %vm496_vm2 = vsmask.f32 256  ;;  %vm497_vm3 = vsmask.f32 4368  ;;  %vm1393_vm5 = vmand %vm820_vm0, %vm821_vm1 }
   0xe   : > { %s1288_s23 = scalar_lea.vmem %s1661_s3, %s1228_s14  ;;  %v1291_v1 = vld [vmem:[%s1278_s18] sm:$0xff]   ;;  %v1294_v2 = vld [vmem:[%s1278_s18 + $0x8] sm:$0xff]   ;;  %v1297_v3 = vld [vmem:[%s1278_s18 + $0x10] sm:$0xff]  }
   0xf   : > { %175 = vst [vmem:[%s1288_s23 + $0xc] sm:$0xf] %v1246_v4  ;;  %172 = vst [vmem:[%s1288_s23] sm:$0xf] %v1246_v4  ;;  %v1151_v5 = vunpack.c.l.bf16 %v1291_v1  ;;  %v1152_v6 = vunpack.c.h.bf16 %v1291_v1  ;;  %v1155_v7 = vunpack.c.l.bf16 %v1294_v2  ;;  %v1156_v8 = vunpack.c.h.bf16 %v1294_v2  ;;  %v1215_v9 = vld [vmem:[%s1278_s18 + $0x18] sm:$0xff]   ;;  %v1378_v27 = vld [vmem:[%s1278_s18 + $0x20] sm:$0xff]  }
  0x10   : > { %173 = vst [vmem:[%s1288_s23 + $0x4] sm:$0xf] %v1246_v4  ;;  %174 = vst [vmem:[%s1288_s23 + $0x8] sm:$0x1] %v1246_v4  ;;  %v1159_v11 = vunpack.c.l.bf16 %v1297_v3  ;;  %v1160_v12 = vunpack.c.h.bf16 %v1297_v3  ;;  %v1163_v13 = vunpack.c.l.bf16 %v1215_v9  ;;  %v1164_v14 = vunpack.c.h.bf16 %v1215_v9  ;;  %v1381_v28 = vld [vmem:[%s1278_s18 + $0x28] sm:$0xff]  }
  0x11   : > { %176 = vst [vmem:[%s1288_s23 + $0x10] sm:$0xf] %v1246_v4  ;;  %177 = vst [vmem:[%s1288_s23 + $0x14] sm:$0x1] %v1246_v4  ;;  %v297_v15 = vmul.f32 %v1151_v5, %v1283_v0  ;;  %v298_v16 = vmul.f32 %v1152_v6, %v1283_v0  ;;  %v299_v17 = vmul.f32 %v1155_v7, %v1283_v0  ;;  %v1167_v37 = vunpack.c.l.bf16 %v1378_v27 }
  0x12   : > { %178 = vst [vmem:[%s1288_s23 + $0x18] sm:$0xf] %v1246_v4  ;;  %179 = vst [vmem:[%s1288_s23 + $0x1c] sm:$0xf] %v1246_v4  ;;  %v300_v18 = vmul.f32 %v1156_v8, %v1283_v0  ;;  %v301_v19 = vmul.f32 %v1159_v11, %v1283_v0  ;;  %v302_v20 = vmul.f32 %v1160_v12, %v1283_v0  ;;  %v1168_v38 = vunpack.c.h.bf16 %v1378_v27 }
  0x13   : > { %180 = vst [vmem:[%s1288_s23 + $0x20] sm:$0x1] %v1246_v4  ;;  %181 = vst [vmem:[%s1288_s23 + $0x24] sm:$0xf] %v1246_v4  ;;  %v303_v21 = vmul.f32 %v1163_v13, %v1283_v0  ;;  %v304_v22 = vmul.f32 %v1164_v14, %v1283_v0  ;;  %v336_v23 = vadd.f32 %v1361_v10, %v297_v15  ;;  %v1171_v39 = vunpack.c.l.bf16 %v1381_v28 }
  0x14   : > { %182 = vst [vmem:[%s1288_s23 + $0x28] sm:$0xf] %v1246_v4  ;;  %183 = vst [vmem:[%s1288_s23 + $0x2c] sm:$0x1] %v1246_v4  ;;  %v337_v24 = vadd.f32 %v1361_v10, %v298_v16  ;;  %v338_v25 = vadd.f32 %v1361_v10, %v299_v17  ;;  %v339_v26 = vadd.f32 %v1361_v10, %v300_v18  ;;  %v1172_v40 = vunpack.c.h.bf16 %v1381_v28 }
  0x15   : > { %184 = vst [vmem:[%s1288_s23 + $0x30] sm:$0xf] %v1246_v4  ;;  %185 = vst [vmem:[%s1288_s23 + $0x34] sm:$0xf] %v1246_v4  ;;  %v340_v29 = vadd.f32 %v1361_v10, %v301_v19  ;;  %v341_v30 = vadd.f32 %v1361_v10, %v302_v20  ;;  %v342_v31 = vadd.f32 %v1361_v10, %v303_v21  ;;  %v368_v33 = vmax.f32 %v336_v23, 0.0 }
  0x16   : > { %186 = vst [vmem:[%s1288_s23 + $0x38] sm:$0x1] %v1246_v4  ;;  %187 = vst [vmem:[%s1288_s23 + $0x3c] sm:$0xf] %v1246_v4  ;;  %v343_v32 = vadd.f32 %v1361_v10, %v304_v22  ;;  %v369_v34 = vmax.f32 %v337_v24, 0.0  ;;  %v370_v35 = vmax.f32 %v338_v25, 0.0 }
  0x17   : > { %188 = vst [vmem:[%s1288_s23 + $0x40] sm:$0xf] %v1246_v4  ;;  %189 = vst [vmem:[%s1288_s23 + $0x44] sm:$0x1] %v1246_v4  ;;  %v371_v36 = vmax.f32 %v339_v26, 0.0  ;;  %v1117_v41 = vpack.c.bf16 %v368_v33, %v368_v33  ;;  %v372_v45 = vmax.f32 %v340_v29, 0.0 }
  0x18   : > { %190 = vst [vmem:[%s1288_s23 + $0x48] sm:$0xf] %v1246_v4  ;;  %191 = vst [vmem:[%s1288_s23 + $0x4c] sm:$0xf] %v1246_v4  ;;  %v1118_v42 = vpack.c.bf16 %v369_v34, %v369_v34  ;;  %v1119_v43 = vpack.c.bf16 %v370_v35, %v370_v35  ;;  %v373_v46 = vmax.f32 %v341_v30, 0.0  ;;  %v374_v47 = vmax.f32 %v342_v31, 0.0 }
  0x19   : > { %192 = vst [vmem:[%s1288_s23 + $0x50] sm:$0x1] %v1246_v4  ;;  %193 = vst [vmem:[%s1288_s23 + $0x54] sm:$0xf] %v1246_v4  ;;  %v1120_v44 = vpack.c.bf16 %v371_v36, %v371_v36  ;;  %v375_v48 = vmax.f32 %v343_v32, 0.0  ;;  %v500_v49 = vshrl.u32 %v1117_v41, 16  ;;  %v1121_v61 = vpack.c.bf16 %v372_v45, %v372_v45 }
  0x1a   : > { %194 = vst [vmem:[%s1288_s23 + $0x58] sm:$0xf] %v1246_v4  ;;  %195 = vst [vmem:[%s1288_s23 + $0x5c] sm:$0x1] %v1246_v4  ;;  %v503_v50 = vshll.u32 %v1117_v41, 16  ;;  %v508_v51 = vshrl.u32 %v1118_v42, 16  ;;  %v1122_v62 = vpack.c.bf16 %v373_v46, %v373_v46  ;;  %v1123_v5 = vpack.c.bf16 %v374_v47, %v374_v47 }
  0x1b   : > { %196 = vst [vmem:[%s1288_s23 + $0x60] sm:$0xf] %v1246_v4  ;;  %197 = vst [vmem:[%s1288_s23 + $0x64] sm:$0xf] %v1246_v4  ;;  %v511_v52 = vshll.u32 %v1118_v42, 16  ;;  %v517_v54 = vshrl.u32 %v1119_v43, 16  ;;  %v1124_v6 = vpack.c.bf16 %v375_v48, %v375_v48  ;;  %v305_v36 = vmul.f32 %v1167_v37, %v1283_v0 }
  0x1c   : > { %198 = vst [vmem:[%s1288_s23 + $0x68] sm:$0x1] %v1246_v4  ;;  %199 = vst [vmem:[%s1288_s23 + $0x6c] sm:$0xf] %v1246_v4  ;;  %v520_v55 = vshll.u32 %v1119_v43, 16  ;;  %v525_v56 = vshrl.u32 %v1120_v44, 16 }
  0x1d   : > { %200 = vst [vmem:[%s1288_s23 + $0x70] sm:$0xf] %v1246_v4  ;;  %201 = vst [vmem:[%s1288_s23 + $0x74] sm:$0x1] %v1246_v4  ;;  %v528_v57 = vshll.u32 %v1120_v44, 16  ;;  %v502_v58 = vrot.slane %v500_v49, 7  ;;  %v344_v48 = vadd.f32 %v1361_v10, %v305_v36  ;;  %v306_v49 = vmul.f32 %v1168_v38, %v1283_v0 }
  0x1e   : > { %202 = vst [vmem:[%s1288_s23 + $0x78] sm:$0xf] %v1246_v4  ;;  %203 = vst [vmem:[%s1288_s23 + $0x7c] sm:$0xf] %v1246_v4  ;;  %v510_v60 = vrot.slane %v508_v51, 7  ;;  %v519_v3 = vrot.slane %v517_v54, 7 }
  0x1f   : > { %204 = vst [vmem:[%s1288_s23 + $0x80] sm:$0x1] %v1246_v4  ;;  %205 = vst [vmem:[%s1288_s23 + $0x84] sm:$0xf] %v1246_v4  ;;  %v1034_v63 = vld [vmem:[%s1288_s23 + $0xc] sm:$0xf]  ;;  %v505_v7 = vor.u32 %v503_v50, %v502_v58  ;;  %v307_v50 = vmul.f32 %v1171_v39, %v1283_v0 }
  0x20   : > { %206 = vst [vmem:[%s1288_s23 + $0x88] sm:$0xf] %v1246_v4  ;;  %207 = vst [vmem:[%s1288_s23 + $0x8c] sm:$0x1] %v1246_v4  ;;  %v1037_v2 = vld [vmem:[%s1288_s23 + $0x14] sm:$0x1]  ;;  %v513_v9 = vor.u32 %v511_v52, %v510_v60  ;;  %v522_v14 = vor.u32 %v520_v55, %v519_v3 }
  0x21   : > { %208 = vst [vmem:[%s1288_s23 + $0x90] sm:$0xf] %v1246_v4  ;;  %209 = vst [vmem:[%s1288_s23 + $0x94] sm:$0xf] %v1246_v4  ;;  %v506_v8 = vrot.slane %v502_v58, 4  ;;  %v515_v11 = vrot.slane %v510_v60, 4  ;;  %v824_v18 = vsel %vm1393_vm5, %v505_v7, %v1034_v63  ;;  %v308_v7 = vmul.f32 %v1172_v40, %v1283_v0 }
  0x22   : > { %210 = vst [vmem:[%s1288_s23 + $0x98] sm:$0x1] %v1246_v4  ;;  %211 = vst [vmem:[%s1288_s23 + $0x9c] sm:$0xf] %v1246_v4  ;;  %v1039_v12 = vld [vmem:[%s1288_s23 + $0x18] sm:$0xf] }
  0x23   : > { %212 = vst [vmem:[%s1288_s23 + $0xa0] sm:$0xf] %v1246_v4  ;;  %213 = vst [vmem:[%s1288_s23 + $0xa4] sm:$0x1] %v1246_v4  ;;  %v1042_v13 = vld [vmem:[%s1288_s23 + $0x20] sm:$0x1]  ;;  %v833_v22 = vsel %vm1393_vm5, %v522_v14, %v1039_v12 }
  0x24   : > { %214 = vst [vmem:[%s1288_s23 + $0xa8] sm:$0xf] %v1246_v4  ;;  %215 = vst [vmem:[%s1288_s23 + $0xac] sm:$0xf] %v1246_v4  ;;  %v523_v15 = vrot.slane %v519_v3, 4  ;;  %v534_v21 = vshrl.u32 %v1121_v61, 16 }
  0x25   : > { %216 = vst [vmem:[%s1288_s23 + $0xb0] sm:$0x1] %v1246_v4  ;;  %217 = vst [vmem:[%s1288_s23 + $0xb4] sm:$0xf] %v1246_v4  ;;  %v537_v25 = vshll.u32 %v1121_v61, 16  ;;  %v542_v29 = vshrl.u32 %v1122_v62, 16 }
  0x26   : > { %218 = vst [vmem:[%s1288_s23 + $0xb8] sm:$0xf] %v1246_v4  ;;  %219 = vst [vmem:[%s1288_s23 + $0xbc] sm:$0x1] %v1246_v4  ;;  %v536_v26 = vrot.slane %v534_v21, 7  ;;  %v545_v30 = vshll.u32 %v1122_v62, 16  ;;  %v345_v62 = vadd.f32 %v1361_v10, %v306_v49 }
  0x27   : > { %220 = vst [vmem:[%s1288_s23 + $0xc0] sm:$0xf] %v1246_v4  ;;  %221 = vst [vmem:[%s1288_s23 + $0xc4] sm:$0xf] %v1246_v4  ;;  %v551_v31 = vshrl.u32 %v1123_v5, 16  ;;  %v554_v33 = vshll.u32 %v1123_v5, 16  ;;  %v346_v5 = vadd.f32 %v1361_v10, %v307_v50 }
  0x28   : > { %222 = vst [vmem:[%s1288_s23 + $0xc8] sm:$0x1] %v1246_v4  ;;  %223 = vst [vmem:[%s1288_s23 + $0xcc] sm:$0xf] %v1246_v4  ;;  %v1044_v32 = vld [vmem:[%s1288_s23 + $0x24] sm:$0xf]  ;;  %v539_v41 = vor.u32 %v537_v25, %v536_v26 }
  0x29   : > { %224 = vst [vmem:[%s1288_s23 + $0xd0] sm:$0xf] %v1246_v4  ;;  %225 = vst [vmem:[%s1288_s23 + $0xd4] sm:$0x1] %v1246_v4  ;;  %v527_v4 = vrot.slane %v525_v56, 7  ;;  %v559_v34 = vshrl.u32 %v1124_v6, 16 }
  0x2a   : > { %vm1399_vm6 = vmor %vm496_vm2, %vm497_vm3  ;;  %1035 = vst [vmem:[%s1288_s23 + $0xc] sm:$0xf] %v824_v18  ;;  %v562_v35 = vshll.u32 %v1124_v6, 16  ;;  %v540_v42 = vrot.slane %v536_v26, 4  ;;  %v544_v43 = vrot.slane %v542_v29, 7  ;;  %v553_v44 = vrot.slane %v551_v31, 7 }
  0x2b   : > { %vm1406_vm7 = vmand %vm827_vm4, %vm496_vm2  ;;  %v530_v16 = vor.u32 %v528_v57, %v527_v4  ;;  %v532_v17 = vrot.slane %v527_v4, 4  ;;  %v514_v19 = vsel %vm1399_vm6, %v506_v8, %v513_v9  ;;  %1040 = vst [vmem:[%s1288_s23 + $0x18] sm:$0xf] %v833_v22  ;;  %v1047_v45 = vld [vmem:[%s1288_s23 + $0x2c] sm:$0x1]  ;;  %v561_v47 = vrot.slane %v559_v34, 7 }
  0x2c   : > { %v830_v20 = vsel %vm1406_vm7, %v515_v11, %v1037_v2  ;;  %1036 = vst [vmem:[%s1288_s23 + $0x10] sm:$0xf] %v514_v19  ;;  %v1049_v46 = vld [vmem:[%s1288_s23 + $0x30] sm:$0xf]  ;;  %v840_v37 = vsel %vm1393_vm5, %v539_v41, %v1044_v32  ;;  %v547_v51 = vor.u32 %v545_v30, %v544_v43  ;;  %v549_v52 = vrot.slane %v544_v43, 4  ;;  %v1219_v63 = vld [vmem:[%s1278_s18 + $0x38] sm:$0xff]  }
  0x2d   : > { %1038 = vst [vmem:[%s1288_s23 + $0x14] sm:$0x1] %v830_v20  ;;  %v531_v23 = vsel %vm1399_vm6, %v523_v15, %v530_v16  ;;  %v837_v24 = vsel %vm1406_vm7, %v532_v17, %v1042_v13  ;;  %v556_v54 = vor.u32 %v554_v33, %v553_v44  ;;  %v1052_v55 = vld [vmem:[%s1288_s23 + $0x38] sm:$0x1]  ;;  %1045 = vst [vmem:[%s1288_s23 + $0x24] sm:$0xf] %v840_v37  ;;  %v1179_v14 = vunpack.c.l.bf16 %v1219_v63 }
  0x2e   : > { %1041 = vst [vmem:[%s1288_s23 + $0x1c] sm:$0xf] %v531_v23  ;;  %1043 = vst [vmem:[%s1288_s23 + $0x20] sm:$0x1] %v837_v24  ;;  %v557_v56 = vrot.slane %v553_v44, 4  ;;  %v564_v57 = vor.u32 %v562_v35, %v561_v47  ;;  %v566_v27 = vrot.slane %v561_v47, 4  ;;  %v548_v39 = vsel %vm1399_vm6, %v540_v42, %v547_v51 }
  0x2f   : > { %v376_v38 = vmax.f32 %v344_v48, 0.0  ;;  %v1218_v58 = vld [vmem:[%s1278_s18 + $0x30] sm:$0xff]   ;;  %v844_v60 = vsel %vm1406_vm7, %v549_v52, %v1047_v45  ;;  %v847_v61 = vsel %vm1393_vm5, %v556_v54, %v1049_v46  ;;  %1046 = vst [vmem:[%s1288_s23 + $0x28] sm:$0xf] %v548_v39  ;;  %v377_v6 = vmax.f32 %v345_v62, 0.0 }
  0x30   : > { %1048 = vst [vmem:[%s1288_s23 + $0x2c] sm:$0x1] %v844_v60  ;;  %1050 = vst [vmem:[%s1288_s23 + $0x30] sm:$0xf] %v847_v61  ;;  %v565_v2 = vsel %vm1399_vm6, %v557_v56, %v564_v57  ;;  %v851_v3 = vsel %vm1406_vm7, %v566_v27, %v1052_v55  ;;  %v1175_v8 = vunpack.c.l.bf16 %v1218_v58  ;;  %v1176_v9 = vunpack.c.h.bf16 %v1218_v58  ;;  %v1054_v40 = vld [vmem:[%s1288_s23 + $0x3c] sm:$0xf] }
  0x31   : > { %v1125_v4 = vpack.c.bf16 %v376_v38, %v376_v38  ;;  %1051 = vst [vmem:[%s1288_s23 + $0x34] sm:$0xf] %v565_v2  ;;  %1053 = vst [vmem:[%s1288_s23 + $0x38] sm:$0x1] %v851_v3  ;;  %v378_v13 = vmax.f32 %v346_v5, 0.0  ;;  %v1126_v15 = vpack.c.bf16 %v377_v6, %v377_v6  ;;  %v347_v16 = vadd.f32 %v1361_v10, %v308_v7  ;;  %v1220_v27 = vld [vmem:[%s1278_s18 + $0x40] sm:$0xff]  }
  0x32   : > { %v309_v17 = vmul.f32 %v1175_v8, %v1283_v0  ;;  %v310_v18 = vmul.f32 %v1176_v9, %v1283_v0  ;;  %v311_v21 = vmul.f32 %v1179_v14, %v1283_v0  ;;  %v1180_v28 = vunpack.c.h.bf16 %v1219_v63  ;;  %v1057_v41 = vld [vmem:[%s1288_s23 + $0x44] sm:$0x1]  ;;  %v1059_v47 = vld [vmem:[%s1288_s23 + $0x48] sm:$0xf]  ;;  %v1062_v58 = vld [vmem:[%s1288_s23 + $0x50] sm:$0x1] }
  0x33   : > { %v568_v11 = vshrl.u32 %v1125_v4, 16  ;;  %v571_v12 = vshll.u32 %v1125_v4, 16  ;;  %v1127_v20 = vpack.c.bf16 %v378_v13, %v378_v13  ;;  %v576_v22 = vshrl.u32 %v1126_v15, 16  ;;  %v1221_v8 = vld [vmem:[%s1278_s18 + $0x48] sm:$0xff]  }
  0x34   : > { %v579_v23 = vshll.u32 %v1126_v15, 16  ;;  %v379_v24 = vmax.f32 %v347_v16, 0.0  ;;  %v348_v25 = vadd.f32 %v1361_v10, %v309_v17  ;;  %v349_v35 = vadd.f32 %v1361_v10, %v310_v18 }
  0x35   : > { %v570_v19 = vrot.slane %v568_v11, 7  ;;  %v585_v30 = vshrl.u32 %v1127_v20, 16  ;;  %v588_v31 = vshll.u32 %v1127_v20, 16  ;;  %v578_v32 = vrot.slane %v576_v22, 7 }
  0x36   : > { %v1128_v33 = vpack.c.bf16 %v379_v24, %v379_v24  ;;  %v380_v34 = vmax.f32 %v348_v25, 0.0  ;;  %v350_v43 = vadd.f32 %v1361_v10, %v311_v21  ;;  %v312_v44 = vmul.f32 %v1180_v28, %v1283_v0  ;;  %v1069_v25 = vld [vmem:[%s1288_s23 + $0x60] sm:$0xf] }
  0x37   : > { %v573_v26 = vor.u32 %v571_v12, %v570_v19  ;;  %v574_v29 = vrot.slane %v570_v19, 4  ;;  %v587_v42 = vrot.slane %v585_v30, 7  ;;  %v581_v45 = vor.u32 %v579_v23, %v578_v32  ;;  %v1064_v12 = vld [vmem:[%s1288_s23 + $0x54] sm:$0xf]  ;;  %v1067_v19 = vld [vmem:[%s1288_s23 + $0x5c] sm:$0x1] }
  0x38   : > { %v583_v46 = vrot.slane %v578_v32, 4  ;;  %v593_v48 = vshrl.u32 %v1128_v33, 16  ;;  %v596_v49 = vshll.u32 %v1128_v33, 16  ;;  %v1129_v51 = vpack.c.bf16 %v380_v34, %v380_v34  ;;  %v1222_v33 = vld [vmem:[%s1278_s18 + $0x50] sm:$0xff]  }
  0x39   : > { %v854_v36 = vsel %vm1393_vm5, %v573_v26, %v1054_v40  ;;  %v590_v50 = vor.u32 %v588_v31, %v587_v42  ;;  %v591_v37 = vrot.slane %v587_v42, 4  ;;  %v381_v52 = vmax.f32 %v349_v35, 0.0  ;;  %v1518_v42 = vld [vmem:[%s1278_s18 + $0x58] sm:$0xff]  }
  0x3a   : > { %1055 = vst [vmem:[%s1288_s23 + $0x3c] sm:$0xf] %v854_v36  ;;  %v582_v54 = vsel %vm1399_vm6, %v574_v29, %v581_v45  ;;  %v858_v55 = vsel %vm1406_vm7, %v583_v46, %v1057_v41  ;;  %v595_v56 = vrot.slane %v593_v48, 7  ;;  %v382_v57 = vmax.f32 %v350_v43, 0.0 }
  0x3b   : > { %1056 = vst [vmem:[%s1288_s23 + $0x40] sm:$0xf] %v582_v54  ;;  %1058 = vst [vmem:[%s1288_s23 + $0x44] sm:$0x1] %v858_v55  ;;  %v861_v38 = vsel %vm1393_vm5, %v590_v50, %v1059_v47  ;;  %v602_v39 = vshrl.u32 %v1129_v51, 16  ;;  %v605_v60 = vshll.u32 %v1129_v51, 16  ;;  %v1130_v61 = vpack.c.bf16 %v381_v52, %v381_v52 }
  0x3c   : > { %1060 = vst [vmem:[%s1288_s23 + $0x48] sm:$0xf] %v861_v38  ;;  %v598_v62 = vor.u32 %v596_v49, %v595_v56  ;;  %v600_v63 = vrot.slane %v595_v56, 4  ;;  %v1131_v2 = vpack.c.bf16 %v382_v57, %v382_v57  ;;  %v351_v3 = vadd.f32 %v1361_v10, %v312_v44 }
  0x3d   : > { %v604_v4 = vrot.slane %v602_v39, 7  ;;  %v610_v5 = vshrl.u32 %v1130_v61, 16  ;;  %v613_v6 = vshll.u32 %v1130_v61, 16  ;;  %v1183_v7 = vunpack.c.l.bf16 %v1220_v27 }
  0x3e   : > { %v599_v9 = vsel %vm1399_vm6, %v591_v37, %v598_v62  ;;  %v865_v11 = vsel %vm1406_vm7, %v600_v63, %v1062_v58  ;;  %v619_v13 = vshrl.u32 %v1131_v2, 16  ;;  %v622_v14 = vshll.u32 %v1131_v2, 16  ;;  %v1072_v37 = vld [vmem:[%s1288_s23 + $0x68] sm:$0x1] }
  0x3f   : > { %1061 = vst [vmem:[%s1288_s23 + $0x4c] sm:$0xf] %v599_v9  ;;  %1063 = vst [vmem:[%s1288_s23 + $0x50] sm:$0x1] %v865_v11  ;;  %v607_v15 = vor.u32 %v605_v60, %v604_v4  ;;  %v608_v16 = vrot.slane %v604_v4, 4  ;;  %v612_v17 = vrot.slane %v610_v5, 7  ;;  %v313_v21 = vmul.f32 %v1183_v7, %v1283_v0 }
  0x40   : > { %v383_v18 = vmax.f32 %v351_v3, 0.0  ;;  %v621_v20 = vrot.slane %v619_v13, 7  ;;  %v1184_v28 = vunpack.c.h.bf16 %v1220_v27  ;;  %v1187_v40 = vunpack.c.l.bf16 %v1221_v8 }
  0x41   : > { %v868_v22 = vsel %vm1393_vm5, %v607_v15, %v1064_v12  ;;  %v615_v23 = vor.u32 %v613_v6, %v612_v17  ;;  %v617_v24 = vrot.slane %v612_v17, 4  ;;  %v352_v31 = vadd.f32 %v1361_v10, %v313_v21 }
  0x42   : > { %v1132_v26 = vpack.c.bf16 %v383_v18, %v383_v18  ;;  %1065 = vst [vmem:[%s1288_s23 + $0x54] sm:$0xf] %v868_v22  ;;  %v624_v29 = vor.u32 %v622_v14, %v621_v20  ;;  %v625_v30 = vrot.slane %v621_v20, 4  ;;  %v314_v32 = vmul.f32 %v1184_v28, %v1283_v0  ;;  %v1077_v18 = vld [vmem:[%s1288_s23 + $0x74] sm:$0x1] }
  0x43   : > { %v616_v34 = vsel %vm1399_vm6, %v608_v16, %v615_v23  ;;  %v872_v35 = vsel %vm1406_vm7, %v617_v24, %v1067_v19  ;;  %v384_v44 = vmax.f32 %v352_v31, 0.0  ;;  %v315_v46 = vmul.f32 %v1187_v40, %v1283_v0 }
  0x44   : > { %v627_v36 = vshrl.u32 %v1132_v26, 16  ;;  %v630_v41 = vshll.u32 %v1132_v26, 16  ;;  %1066 = vst [vmem:[%s1288_s23 + $0x58] sm:$0xf] %v616_v34  ;;  %1068 = vst [vmem:[%s1288_s23 + $0x5c] sm:$0x1] %v872_v35  ;;  %v875_v43 = vsel %vm1393_vm5, %v624_v29, %v1069_v25  ;;  %v353_v45 = vadd.f32 %v1361_v10, %v314_v32 }
  0x45   : > { %1070 = vst [vmem:[%s1288_s23 + $0x60] sm:$0xf] %v875_v43  ;;  %v1188_v48 = vunpack.c.h.bf16 %v1221_v8  ;;  %v1191_v49 = vunpack.c.l.bf16 %v1222_v33  ;;  %v1192_v50 = vunpack.c.h.bf16 %v1222_v33  ;;  %v1133_v51 = vpack.c.bf16 %v384_v44, %v384_v44  ;;  %v1074_v8 = vld [vmem:[%s1288_s23 + $0x6c] sm:$0xf]  ;;  %v1224_v25 = vld [vmem:[%s1278_s18 + $0x60] sm:$0xff]  }
  0x46   : > { %v629_v47 = vrot.slane %v627_v36, 7  ;;  %v385_v52 = vmax.f32 %v353_v45, 0.0  ;;  %v354_v54 = vadd.f32 %v1361_v10, %v315_v46  ;;  %v1195_v55 = vunpack.c.l.bf16 %v1518_v42  ;;  %v1079_v26 = vld [vmem:[%s1288_s23 + $0x78] sm:$0xf] }
  0x47   : > { %v316_v27 = vmul.f32 %v1188_v48, %v1283_v0  ;;  %v317_v38 = vmul.f32 %v1191_v49, %v1283_v0  ;;  %v636_v58 = vshrl.u32 %v1133_v51, 16  ;;  %v639_v39 = vshll.u32 %v1133_v51, 16  ;;  %v1084_v48 = vld [vmem:[%s1288_s23 + $0x84] sm:$0xf] }
  0x48   : > { %v632_v56 = vor.u32 %v630_v41, %v629_v47  ;;  %v634_v57 = vrot.slane %v629_v47, 4  ;;  %v1134_v60 = vpack.c.bf16 %v385_v52, %v385_v52  ;;  %v386_v61 = vmax.f32 %v354_v54, 0.0  ;;  %v1082_v47 = vld [vmem:[%s1288_s23 + $0x80] sm:$0x1] }
  0x49   : > { %v355_v2 = vadd.f32 %v1361_v10, %v316_v27  ;;  %v356_v3 = vadd.f32 %v1361_v10, %v317_v38  ;;  %v638_v4 = vrot.slane %v636_v58, 7  ;;  %v318_v12 = vmul.f32 %v1192_v50, %v1283_v0  ;;  %v1225_v58 = vld [vmem:[%s1278_s18 + $0x68] sm:$0xff]  }
  0x4a   : > { %v633_v62 = vsel %vm1399_vm6, %v625_v30, %v632_v56  ;;  %v879_v63 = vsel %vm1406_vm7, %v634_v57, %v1072_v37  ;;  %v644_v5 = vshrl.u32 %v1134_v60, 16  ;;  %v647_v6 = vshll.u32 %v1134_v60, 16 }
  0x4b   : > { %1071 = vst [vmem:[%s1288_s23 + $0x64] sm:$0xf] %v633_v62  ;;  %1073 = vst [vmem:[%s1288_s23 + $0x68] sm:$0x1] %v879_v63  ;;  %v1135_v7 = vpack.c.bf16 %v386_v61, %v386_v61  ;;  %v387_v9 = vmax.f32 %v355_v2, 0.0  ;;  %v388_v11 = vmax.f32 %v356_v3, 0.0  ;;  %v319_v13 = vmul.f32 %v1195_v55, %v1283_v0 }
  0x4c   : > { %v641_v14 = vor.u32 %v639_v39, %v638_v4  ;;  %v642_v15 = vrot.slane %v638_v4, 4  ;;  %v646_v16 = vrot.slane %v644_v5, 7  ;;  %v357_v28 = vadd.f32 %v1361_v10, %v318_v12 }
  0x4d   : > { %v653_v17 = vshrl.u32 %v1135_v7, 16  ;;  %v656_v19 = vshll.u32 %v1135_v7, 16  ;;  %v1136_v20 = vpack.c.bf16 %v387_v9, %v387_v9  ;;  %v1137_v21 = vpack.c.bf16 %v388_v11, %v388_v11 }
  0x4e   : > { %v882_v40 = vsel %vm1393_vm5, %v641_v14, %v1074_v8  ;;  %v649_v22 = vor.u32 %v647_v6, %v646_v16  ;;  %v651_v23 = vrot.slane %v646_v16, 4  ;;  %v389_v44 = vmax.f32 %v357_v28, 0.0  ;;  %v1087_v8 = vld [vmem:[%s1288_s23 + $0x8c] sm:$0x1] }
  0x4f   : > { %v655_v24 = vrot.slane %v653_v17, 7  ;;  %1075 = vst [vmem:[%s1288_s23 + $0x6c] sm:$0xf] %v882_v40  ;;  %v661_v29 = vshrl.u32 %v1136_v20, 16  ;;  %v664_v30 = vshll.u32 %v1136_v20, 16  ;;  %v670_v31 = vshrl.u32 %v1137_v21, 16 }
  0x50   : > { %v673_v32 = vshll.u32 %v1137_v21, 16  ;;  %v650_v33 = vsel %vm1399_vm6, %v642_v15, %v649_v22  ;;  %v886_v34 = vsel %vm1406_vm7, %v651_v23, %v1077_v18  ;;  %v358_v45 = vadd.f32 %v1361_v10, %v319_v13  ;;  %v1089_v22 = vld [vmem:[%s1288_s23 + $0x90] sm:$0xf] }
  0x51   : > { %v658_v35 = vor.u32 %v656_v19, %v655_v24  ;;  %v659_v36 = vrot.slane %v655_v24, 4  ;;  %1076 = vst [vmem:[%s1288_s23 + $0x70] sm:$0xf] %v650_v33  ;;  %1078 = vst [vmem:[%s1288_s23 + $0x74] sm:$0x1] %v886_v34  ;;  %v663_v41 = vrot.slane %v661_v29, 7  ;;  %v1196_v49 = vunpack.c.h.bf16 %v1518_v42 }
  0x52   : > { %v672_v43 = vrot.slane %v670_v31, 7  ;;  %v1199_v50 = vunpack.c.l.bf16 %v1224_v25  ;;  %v1200_v37 = vunpack.c.h.bf16 %v1224_v25  ;;  %v1138_v55 = vpack.c.bf16 %v389_v44, %v389_v44  ;;  %v1226_v25 = vld [vmem:[%s1278_s18 + $0x70] sm:$0xff]  }
  0x53   : > { %v889_v46 = vsel %vm1393_vm5, %v658_v35, %v1079_v26  ;;  %v666_v51 = vor.u32 %v664_v30, %v663_v41  ;;  %v668_v52 = vrot.slane %v663_v41, 4  ;;  %v390_v57 = vmax.f32 %v358_v45, 0.0  ;;  %v1092_v45 = vld [vmem:[%s1288_s23 + $0x98] sm:$0x1] }
  0x54   : > { %1080 = vst [vmem:[%s1288_s23 + $0x78] sm:$0xf] %v889_v46  ;;  %v675_v54 = vor.u32 %v673_v32, %v672_v43  ;;  %v676_v56 = vrot.slane %v672_v43, 4  ;;  %v320_v27 = vmul.f32 %v1196_v49, %v1283_v0  ;;  %v321_v38 = vmul.f32 %v1199_v50, %v1283_v0 }
  0x55   : > { %v667_v42 = vsel %vm1399_vm6, %v659_v36, %v666_v51  ;;  %v893_v39 = vsel %vm1406_vm7, %v668_v52, %v1082_v47  ;;  %v678_v61 = vshrl.u32 %v1138_v55, 16  ;;  %v681_v62 = vshll.u32 %v1138_v55, 16  ;;  %v1094_v51 = vld [vmem:[%s1288_s23 + $0x9c] sm:$0xf] }
  0x56   : > { %v896_v60 = vsel %vm1393_vm5, %v675_v54, %v1084_v48  ;;  %1081 = vst [vmem:[%s1288_s23 + $0x7c] sm:$0xf] %v667_v42  ;;  %1083 = vst [vmem:[%s1288_s23 + $0x80] sm:$0x1] %v893_v39  ;;  %v1139_v63 = vpack.c.bf16 %v390_v57, %v390_v57  ;;  %v359_v2 = vadd.f32 %v1361_v10, %v320_v27  ;;  %v1203_v6 = vunpack.c.l.bf16 %v1225_v58  ;;  %v1097_v42 = vld [vmem:[%s1288_s23 + $0xa4] sm:$0x1] }
  0x57   : > { %1085 = vst [vmem:[%s1288_s23 + $0x84] sm:$0xf] %v896_v60  ;;  %v360_v3 = vadd.f32 %v1361_v10, %v321_v38  ;;  %v680_v4 = vrot.slane %v678_v61, 7  ;;  %v322_v5 = vmul.f32 %v1200_v37, %v1283_v0  ;;  %v1204_v7 = vunpack.c.h.bf16 %v1225_v58 }
  0x58   : > { %v687_v9 = vshrl.u32 %v1139_v63, 16  ;;  %v690_v11 = vshll.u32 %v1139_v63, 16  ;;  %v391_v12 = vmax.f32 %v359_v2, 0.0  ;;  %v323_v17 = vmul.f32 %v1203_v6, %v1283_v0 }
  0x59   : > { %v392_v13 = vmax.f32 %v360_v3, 0.0  ;;  %v683_v14 = vor.u32 %v681_v62, %v680_v4  ;;  %v685_v15 = vrot.slane %v680_v4, 4  ;;  %v361_v16 = vadd.f32 %v1361_v10, %v322_v5  ;;  %v1227_v3 = vld [vmem:[%s1278_s18 + $0x78] sm:$0xff]   ;;  %v1099_v4 = vld [vmem:[%s1288_s23 + $0xa8] sm:$0xf] }
  0x5a   : > { %v689_v18 = vrot.slane %v687_v9, 7  ;;  %v1140_v19 = vpack.c.bf16 %v391_v12, %v391_v12  ;;  %v324_v21 = vmul.f32 %v1204_v7, %v1283_v0  ;;  %v362_v24 = vadd.f32 %v1361_v10, %v323_v17 }
  0x5b   : > { %v1141_v20 = vpack.c.bf16 %v392_v13, %v392_v13  ;;  %v684_v28 = vsel %vm1399_vm6, %v676_v56, %v683_v14  ;;  %v900_v40 = vsel %vm1406_vm7, %v685_v15, %v1087_v8  ;;  %v393_v23 = vmax.f32 %v361_v16, 0.0 }
  0x5c   : > { %1086 = vst [vmem:[%s1288_s23 + $0x88] sm:$0xf] %v684_v28  ;;  %1088 = vst [vmem:[%s1288_s23 + $0x8c] sm:$0x1] %v900_v40  ;;  %v692_v26 = vor.u32 %v690_v11, %v689_v18  ;;  %v693_v29 = vrot.slane %v689_v18, 4  ;;  %v695_v30 = vshrl.u32 %v1140_v19, 16  ;;  %v363_v43 = vadd.f32 %v1361_v10, %v324_v21 }
  0x5d   : > { %v698_v31 = vshll.u32 %v1140_v19, 16  ;;  %v704_v32 = vshrl.u32 %v1141_v20, 16  ;;  %v707_v33 = vshll.u32 %v1141_v20, 16  ;;  %v1142_v34 = vpack.c.bf16 %v393_v23, %v393_v23  ;;  %v1102_v19 = vld [vmem:[%s1288_s23 + $0xb0] sm:$0x1] }
  0x5e   : > { %v394_v35 = vmax.f32 %v362_v24, 0.0  ;;  %v903_v36 = vsel %vm1393_vm5, %v692_v26, %v1089_v22  ;;  %v697_v41 = vrot.slane %v695_v30, 7  ;;  %v1207_v44 = vunpack.c.l.bf16 %v1226_v25 }
  0x5f   : > { %1090 = vst [vmem:[%s1288_s23 + $0x90] sm:$0xf] %v903_v36  ;;  %v706_v46 = vrot.slane %v704_v32, 7  ;;  %v712_v47 = vshrl.u32 %v1142_v34, 16  ;;  %v715_v48 = vshll.u32 %v1142_v34, 16  ;;  %v395_v52 = vmax.f32 %v363_v43, 0.0 }
  0x60   : > { %v1143_v49 = vpack.c.bf16 %v394_v35, %v394_v35  ;;  %v700_v50 = vor.u32 %v698_v31, %v697_v41  ;;  %v702_v37 = vrot.slane %v697_v41, 4  ;;  %v325_v54 = vmul.f32 %v1207_v44, %v1283_v0  ;;  %v1104_v35 = vld [vmem:[%s1288_s23 + $0xb4] sm:$0xf] }
  0x61   : > { %v709_v55 = vor.u32 %v707_v33, %v706_v46  ;;  %v710_v56 = vrot.slane %v706_v46, 4  ;;  %v714_v57 = vrot.slane %v712_v47, 7  ;;  %v1144_v60 = vpack.c.bf16 %v395_v52, %v395_v52  ;;  %v1107_v52 = vld [vmem:[%s1288_s23 + $0xbc] sm:$0x1] }
  0x62   : > { %v721_v27 = vshrl.u32 %v1143_v49, 16  ;;  %v701_v38 = vsel %vm1399_vm6, %v693_v29, %v700_v50  ;;  %v907_v58 = vsel %vm1406_vm7, %v702_v37, %v1092_v45  ;;  %v724_v39 = vshll.u32 %v1143_v49, 16 }
  0x63   : > { %1091 = vst [vmem:[%s1288_s23 + $0x94] sm:$0xf] %v701_v38  ;;  %1093 = vst [vmem:[%s1288_s23 + $0x98] sm:$0x1] %v907_v58  ;;  %v910_v61 = vsel %vm1393_vm5, %v709_v55, %v1094_v51  ;;  %v717_v62 = vor.u32 %v715_v48, %v714_v57  ;;  %v719_v63 = vrot.slane %v714_v57, 4  ;;  %v729_v5 = vshrl.u32 %v1144_v60, 16 }
  0x64   : > { %v723_v2 = vrot.slane %v721_v27, 7  ;;  %1095 = vst [vmem:[%s1288_s23 + $0x9c] sm:$0xf] %v910_v61  ;;  %v732_v6 = vshll.u32 %v1144_v60, 16  ;;  %v364_v7 = vadd.f32 %v1361_v10, %v325_v54  ;;  %v1208_v8 = vunpack.c.h.bf16 %v1226_v25  ;;  %v1109_v38 = vld [vmem:[%s1288_s23 + $0xc0] sm:$0xf] }
  0x65   : > { %v718_v9 = vsel %vm1399_vm6, %v710_v56, %v717_v62  ;;  %v914_v11 = vsel %vm1406_vm7, %v719_v63, %v1097_v42  ;;  %v731_v14 = vrot.slane %v729_v5, 7  ;;  %v1211_v17 = vunpack.c.l.bf16 %v1227_v3  ;;  %v1112_v61 = vld [vmem:[%s1288_s23 + $0xc8] sm:$0x1] }
  0x66   : > { %v726_v12 = vor.u32 %v724_v39, %v723_v2  ;;  %v727_v13 = vrot.slane %v723_v2, 4  ;;  %1096 = vst [vmem:[%s1288_s23 + $0xa0] sm:$0xf] %v718_v9  ;;  %1098 = vst [vmem:[%s1288_s23 + $0xa4] sm:$0x1] %v914_v11  ;;  %v396_v15 = vmax.f32 %v364_v7, 0.0  ;;  %v326_v16 = vmul.f32 %v1208_v8, %v1283_v0 }
  0x67   : > { %v1212_v20 = vunpack.c.h.bf16 %v1227_v3  ;;  %v734_v21 = vor.u32 %v732_v6, %v731_v14  ;;  %v736_v28 = vrot.slane %v731_v14, 4  ;;  %v327_v23 = vmul.f32 %v1211_v17, %v1283_v0 }
  0x68   : > { %v917_v18 = vsel %vm1393_vm5, %v726_v12, %v1099_v4  ;;  %v1145_v40 = vpack.c.bf16 %v396_v15, %v396_v15  ;;  %v365_v22 = vadd.f32 %v1361_v10, %v326_v16 }
  0x69   : > { %1100 = vst [vmem:[%s1288_s23 + $0xa8] sm:$0xf] %v917_v18  ;;  %v328_v24 = vmul.f32 %v1212_v20, %v1283_v0  ;;  %v735_v25 = vsel %vm1399_vm6, %v727_v13, %v734_v21  ;;  %v921_v26 = vsel %vm1406_vm7, %v736_v28, %v1102_v19  ;;  %v366_v32 = vadd.f32 %v1361_v10, %v327_v23 }
  0x6a   : > { %v738_v29 = vshrl.u32 %v1145_v40, 16  ;;  %v741_v30 = vshll.u32 %v1145_v40, 16  ;;  %1101 = vst [vmem:[%s1288_s23 + $0xac] sm:$0xf] %v735_v25  ;;  %1103 = vst [vmem:[%s1288_s23 + $0xb0] sm:$0x1] %v921_v26 }
  0x6b   : > { %v397_v31 = vmax.f32 %v365_v22, 0.0  ;;  %v367_v33 = vadd.f32 %v1361_v10, %v328_v24  ;;  %v398_v36 = vmax.f32 %v366_v32, 0.0 }
  0x6c   : > { %v740_v34 = vrot.slane %v738_v29, 7 }
  0x6d   : > { %v1146_v0 = vpack.c.bf16 %v397_v31, %v397_v31  ;;  %v399_v41 = vmax.f32 %v367_v33, 0.0  ;;  %v1147_v46 = vpack.c.bf16 %v398_v36, %v398_v36 }
  0x6e   : > { %v743_v43 = vor.u32 %v741_v30, %v740_v34  ;;  %v744_v49 = vrot.slane %v740_v34, 4 }
  0x6f   : > { %v746_v44 = vshrl.u32 %v1146_v0, 16  ;;  %v749_v45 = vshll.u32 %v1146_v0, 16  ;;  %v1148_v47 = vpack.c.bf16 %v399_v41, %v399_v41  ;;  %v755_v10 = vshrl.u32 %v1147_v46, 16 }
  0x70   : > { %v924_v48 = vsel %vm1393_vm5, %v743_v43, %v1104_v35  ;;  %v758_v37 = vshll.u32 %v1147_v46, 16 }
  0x71   : > { %1105 = vst [vmem:[%s1288_s23 + $0xb4] sm:$0xf] %v924_v48  ;;  %v748_v50 = vrot.slane %v746_v44, 7  ;;  %v763_v51 = vshrl.u32 %v1148_v47, 16  ;;  %v766_v54 = vshll.u32 %v1148_v47, 16  ;;  %v757_v57 = vrot.slane %v755_v10, 7 }
  0x73   : > { %v751_v55 = vor.u32 %v749_v45, %v748_v50  ;;  %v753_v56 = vrot.slane %v748_v50, 4  ;;  %v765_v27 = vrot.slane %v763_v51, 7  ;;  %v760_v39 = vor.u32 %v758_v37, %v757_v57 }
  0x74   : > { %v761_v60 = vrot.slane %v757_v57, 4 }
  0x75   : > { %v752_v58 = vsel %vm1399_vm6, %v744_v49, %v751_v55  ;;  %v928_v42 = vsel %vm1406_vm7, %v753_v56, %v1107_v52  ;;  %v768_v62 = vor.u32 %v766_v54, %v765_v27  ;;  %v770_v63 = vrot.slane %v765_v27, 4 }
  0x76   : > { %1106 = vst [vmem:[%s1288_s23 + $0xb8] sm:$0xf] %v752_v58  ;;  %1108 = vst [vmem:[%s1288_s23 + $0xbc] sm:$0x1] %v928_v42  ;;  %v931_v2 = vsel %vm1393_vm5, %v760_v39, %v1109_v38 }
  0x77   : > { %1110 = vst [vmem:[%s1288_s23 + $0xc0] sm:$0xf] %v931_v2  ;;  %v769_v3 = vsel %vm1399_vm6, %v761_v60, %v768_v62  ;;  %v935_v4 = vsel %vm1406_vm7, %v770_v63, %v1112_v61 }
  0x78   : > { %1111 = vst [vmem:[%s1288_s23 + $0xc4] sm:$0xf] %v769_v3  ;;  %1113 = vst [vmem:[%s1288_s23 + $0xc8] sm:$0x1] %v935_v4 }
  0x79 PF: > { %s13_s12 = sadd.s32 1, %s1244_s12  }
  0x7a   : > { %p10_p4 = scmp.ge.s32.totalorder %s13_s12, 4  }
  0x7c   :  { %12 = sbr.rel (!%p10_p4) target bundleno = 1 (0x1), region = 63 }

// kernel: bottleneck_forward.6
= control target key start
LH: loop header
LB: loop body
LE: loop exit
PB: predicated region body
PF: predicated region fallthrough
CT: control target
= control target key end

     0   :  { %s2124_s1 = inlined_call_operand.vmem [shape: bf16[128,128], index: 1, kind: input, shape index: {}]   ;;  %s2125_s0 = inlined_call_operand.vmem [shape: bf16[512,128], index: 0, kind: input, shape index: {}]   ;;  %s2126_s2 = inlined_call_operand.vmem [shape: bf16[512,128], index: 2, kind: output, shape index: {0}]   ;;  %s2127_s3 = inlined_call_operand.vmem [shape: f32[1,2,128], index: 3, kind: output, shape index: {1}]  }
   0x1   :  { %v1650_v0 = vld [vmem:[%s2124_s1 + $0x38] sm:$0xff]   ;;  %v1651_v1 = vld [vmem:[%s2124_s1 + $0x30] sm:$0xff]   ;;  %v1652_v2 = vld [vmem:[%s2124_s1 + $0x28] sm:$0xff]  }
   0x2   :  { %1554 = vmatprep.subr.bf16.mxu0 %v1650_v0  ;;  %1634 = vmatprep.subr.bf16.mxu1 %v1650_v0  ;;  %v1653_v3 = vld [vmem:[%s2124_s1 + $0x20] sm:$0xff]   ;;  %v1654_v5 = vld [vmem:[%s2124_s1 + $0x18] sm:$0xff]   ;;  %v1655_v6 = vld [vmem:[%s2124_s1 + $0x10] sm:$0xff]  }
   0x3   :  { %1555 = vmatpush3.bf16.msra.mxu0 %v1650_v0  ;;  %1642 = vmatpush3.bf16.msra.mxu1 %v1650_v0  ;;  %v1658_v4 = vld [vmem:[%s2125_s0] sm:$0xff]   ;;  %v1656_v7 = vld [vmem:[%s2124_s1 + $0x8] sm:$0xff]   ;;  %v1660_v11 = vld [vmem:[%s2125_s0 + $0x10] sm:$0xff]  }
   0x4   :  { %1556 = vmatprep.subr.bf16.mxu0 %v1651_v1  ;;  %1635 = vmatprep.subr.bf16.mxu1 %v1651_v1  ;;  %v1657_v8 = vld [vmem:[%s2124_s1] sm:$0xff]   ;;  %v1659_v10 = vld [vmem:[%s2125_s0 + $0x8] sm:$0xff]   ;;  %v1676_v13 = vld [vmem:[%s2125_s0 + $0x90] sm:$0xff]  }
   0x5   :  { %1570 = vmatprep.mubr.bf16.mxu0 %v1658_v4  ;;  %v1674_v9 = vld [vmem:[%s2125_s0 + $0x80] sm:$0xff]   ;;  %v1675_v12 = vld [vmem:[%s2125_s0 + $0x88] sm:$0xff]   ;;  %v1661_v14 = vld [vmem:[%s2125_s0 + $0x18] sm:$0xff]  }
   0x6   :  { %1602 = vmatprep.mubr.bf16.mxu1 %v1674_v9  ;;  %v1662_v15 = vld [vmem:[%s2125_s0 + $0x20] sm:$0xff]   ;;  %v1677_v16 = vld [vmem:[%s2125_s0 + $0x98] sm:$0xff]   ;;  %v1663_v18 = vld [vmem:[%s2125_s0 + $0x28] sm:$0xff]  }
   0x7   :  { %1557 = vmatpush3.bf16.msra.mxu0 %v1651_v1  ;;  %1643 = vmatpush3.bf16.msra.mxu1 %v1651_v1  ;;  %v1678_v17 = vld [vmem:[%s2125_s0 + $0xa0] sm:$0xff]   ;;  %v1679_v19 = vld [vmem:[%s2125_s0 + $0xa8] sm:$0xff]   ;;  %v1664_v20 = vld [vmem:[%s2125_s0 + $0x30] sm:$0xff]  }
   0x8   :  { %1558 = vmatprep.subr.bf16.mxu0 %v1652_v2  ;;  %1636 = vmatprep.subr.bf16.mxu1 %v1652_v2  ;;  %v1680_v21 = vld [vmem:[%s2125_s0 + $0xb0] sm:$0xff]   ;;  %v1665_v22 = vld [vmem:[%s2125_s0 + $0x38] sm:$0xff]   ;;  %v1666_v24 = vld [vmem:[%s2125_s0 + $0x40] sm:$0xff]  }
   0x9   :  { %v1681_v23 = vld [vmem:[%s2125_s0 + $0xb8] sm:$0xff]   ;;  %v1682_v25 = vld [vmem:[%s2125_s0 + $0xc0] sm:$0xff]   ;;  %v1667_v26 = vld [vmem:[%s2125_s0 + $0x48] sm:$0xff]  }
   0xa   :  { %v1683_v27 = vld [vmem:[%s2125_s0 + $0xc8] sm:$0xff]   ;;  %v1668_v28 = vld [vmem:[%s2125_s0 + $0x50] sm:$0xff]   ;;  %v1669_v30 = vld [vmem:[%s2125_s0 + $0x58] sm:$0xff]  }
   0xb   :  { %1559 = vmatpush3.bf16.msra.mxu0 %v1652_v2  ;;  %1644 = vmatpush3.bf16.msra.mxu1 %v1652_v2  ;;  %v1684_v29 = vld [vmem:[%s2125_s0 + $0xd0] sm:$0xff]   ;;  %v1685_v31 = vld [vmem:[%s2125_s0 + $0xd8] sm:$0xff]   ;;  %v1670_v32 = vld [vmem:[%s2125_s0 + $0x60] sm:$0xff]  }
   0xc   :  { %1560 = vmatprep.subr.bf16.mxu0 %v1653_v3  ;;  %1637 = vmatprep.subr.bf16.mxu1 %v1653_v3  ;;  %v1686_v33 = vld [vmem:[%s2125_s0 + $0xe0] sm:$0xff]   ;;  %v1671_v34 = vld [vmem:[%s2125_s0 + $0x68] sm:$0xff]   ;;  %v1672_v36 = vld [vmem:[%s2125_s0 + $0x70] sm:$0xff]  }
   0xd   :  { %v1687_v35 = vld [vmem:[%s2125_s0 + $0xe8] sm:$0xff]   ;;  %v1688_v37 = vld [vmem:[%s2125_s0 + $0xf0] sm:$0xff]   ;;  %v1673_v38 = vld [vmem:[%s2125_s0 + $0x78] sm:$0xff]  }
   0xe   :  { %v1689_v39 = vld [vmem:[%s2125_s0 + $0xf8] sm:$0xff]  }
   0xf   :  { %1561 = vmatpush3.bf16.msra.mxu0 %v1653_v3  ;;  %1645 = vmatpush3.bf16.msra.mxu1 %v1653_v3 }
  0x10   :  { %1562 = vmatprep.subr.bf16.mxu0 %v1654_v5  ;;  %1638 = vmatprep.subr.bf16.mxu1 %v1654_v5 }
  0x13   :  { %1563 = vmatpush3.bf16.msra.mxu0 %v1654_v5  ;;  %1646 = vmatpush3.bf16.msra.mxu1 %v1654_v5 }
  0x14   :  { %1564 = vmatprep.subr.bf16.mxu0 %v1655_v6  ;;  %1639 = vmatprep.subr.bf16.mxu1 %v1655_v6 }
  0x17   :  { %1565 = vmatpush3.bf16.msra.mxu0 %v1655_v6  ;;  %1647 = vmatpush3.bf16.msra.mxu1 %v1655_v6 }
  0x18   :  { %1566 = vmatprep.subr.bf16.mxu0 %v1656_v7  ;;  %1640 = vmatprep.subr.bf16.mxu1 %v1656_v7 }
  0x1b   :  { %1567 = vmatpush3.bf16.msra.mxu0 %v1656_v7  ;;  %1648 = vmatpush3.bf16.msra.mxu1 %v1656_v7 }
  0x1c   :  { %1568 = vmatprep.subr.bf16.mxu0 %v1657_v8  ;;  %1641 = vmatprep.subr.bf16.mxu1 %v1657_v8 }
  0x1f   :  { %1569 = vmatpush3.bf16.msra.mxu0 %v1657_v8  ;;  %1649 = vmatpush3.bf16.msra.mxu1 %v1657_v8 }
  0x22   :  { %1571 = vmatmul.mubr.bf16.vlgmr.msra.gmra.mxu0 %v1659_v10  ;;  %1603 = vmatmul.mubr.bf16.vlgmr.msra.gmra.mxu1 %v1675_v12 }
  0x23   :  { %1574 = vmatprep.mubr.bf16.mxu0 %v1660_v11  ;;  %1606 = vmatprep.mubr.bf16.mxu1 %v1676_v13 }
  0x2a   :  { %1575 = vmatmul.mubr.bf16.gmra.mxu0 %v1661_v14  ;;  %1607 = vmatmul.mubr.bf16.gmra.mxu1 %v1677_v16 }
  0x2b   :  { %1578 = vmatprep.mubr.bf16.mxu0 %v1662_v15  ;;  %1610 = vmatprep.mubr.bf16.mxu1 %v1678_v17 }
  0x32   :  { %1579 = vmatmul.mubr.bf16.gmra.mxu0 %v1663_v18  ;;  %1611 = vmatmul.mubr.bf16.gmra.mxu1 %v1679_v19 }
  0x33   :  { %1582 = vmatprep.mubr.bf16.mxu0 %v1664_v20  ;;  %1614 = vmatprep.mubr.bf16.mxu1 %v1680_v21 }
  0x3a   :  { %1583 = vmatmul.mubr.bf16.gmra.mxu0 %v1665_v22  ;;  %1615 = vmatmul.mubr.bf16.gmra.mxu1 %v1681_v23 }
  0x3b   :  { %1586 = vmatprep.mubr.bf16.mxu0 %v1666_v24  ;;  %1618 = vmatprep.mubr.bf16.mxu1 %v1682_v25 }
  0x42   :  { %1587 = vmatmul.mubr.bf16.gmra.mxu0 %v1667_v26  ;;  %1619 = vmatmul.mubr.bf16.gmra.mxu1 %v1683_v27 }
  0x43   :  { %1590 = vmatprep.mubr.bf16.mxu0 %v1668_v28  ;;  %1622 = vmatprep.mubr.bf16.mxu1 %v1684_v29 }
  0x4a   :  { %1591 = vmatmul.mubr.bf16.gmra.mxu0 %v1669_v30  ;;  %1623 = vmatmul.mubr.bf16.gmra.mxu1 %v1685_v31 }
  0x4b   :  { %1594 = vmatprep.mubr.bf16.mxu0 %v1670_v32  ;;  %1626 = vmatprep.mubr.bf16.mxu1 %v1686_v33 }
  0x52   :  { %1595 = vmatmul.mubr.bf16.gmra.mxu0 %v1671_v34  ;;  %1627 = vmatmul.mubr.bf16.gmra.mxu1 %v1687_v35 }
  0x53   :  { %1598 = vmatprep.mubr.bf16.mxu0 %v1672_v36  ;;  %1630 = vmatprep.mubr.bf16.mxu1 %v1688_v37 }
  0x5a   :  { %1599 = vmatmul.mubr.bf16.gmra.mxu0 %v1673_v38  ;;  %1631 = vmatmul.mubr.bf16.gmra.mxu1 %v1689_v39 }
  0xe2   :  { %v1572_v40 = vpop.f32.mrf.mxu0  ;;  %v1830_v41 = vpop.f32.mrf.mxu1 }
  0xe3   :  { %v1015_v57 = vmul.f32 %v1572_v40, %v1572_v40 }
  0xe4   :  { %v368_v42 = vpop.f32.mrf.mxu0  ;;  %v1832_v43 = vpop.f32.mrf.mxu1 }
  0xe5   :  { %v1013_v48 = vmul.f32 %v368_v42, %v368_v42 }
  0xe6   :  { %v1573_v44 = vpop.f32.mrf.mxu0  ;;  %v1834_v45 = vpop.f32.mrf.mxu1 }
  0xe7   :  { %v1331_v46 = vpack.c.bf16 %v1573_v44, %v1572_v40  ;;  %v1411_v47 = vpack.c.bf16 %v1834_v45, %v1830_v41  ;;  %v1016_v62 = vmul.f32 %v1573_v44, %v1573_v44 }
  0xe8   :  { %v371_v49 = vpop.f32.mrf.mxu0  ;;  %v1838_v50 = vpop.f32.mrf.mxu1 }
  0xe9   :  { %1483 = vst [vmem:[%s2126_s2 + $0x8] sm:$0xff] %v1331_v46   ;;  %v1326_v51 = vpack.c.bf16 %v371_v49, %v368_v42  ;;  %v943_v52 = vadd.f32 %v371_v49, %v368_v42  ;;  %v1014_v53 = vmul.f32 %v371_v49, %v371_v49  ;;  %1499 = vst [vmem:[%s2126_s2 + $0x88] sm:$0xff] %v1411_v47  }
  0xea   :  { %v1406_v54 = vpack.c.bf16 %v1838_v50, %v1832_v43  ;;  %v1576_v55 = vpop.f32.mrf.mxu0  ;;  %v1848_v56 = vpop.f32.mrf.mxu1 }
  0xeb   :  { %1327 = vst [vmem:[%s2126_s2] sm:$0xff] %v1326_v51   ;;  %v944_v58 = vadd.f32 %v1572_v40, %v943_v52  ;;  %v1077_v59 = vadd.f32 %v1014_v53, %v1013_v48  ;;  %v1019_v17 = vmul.f32 %v1576_v55, %v1576_v55 }
  0xec   :  { %1498 = vst [vmem:[%s2126_s2 + $0x80] sm:$0xff] %v1406_v54   ;;  %v384_v60 = vpop.f32.mrf.mxu0  ;;  %v1856_v61 = vpop.f32.mrf.mxu1 }
  0xed   :  { %v1078_v63 = vadd.f32 %v1077_v59, %v1015_v57  ;;  %v945_v0 = vadd.f32 %v1573_v44, %v944_v58  ;;  %v1017_v4 = vmul.f32 %v384_v60, %v384_v60 }
  0xee   :  { %v1577_v1 = vpop.f32.mrf.mxu0  ;;  %v1858_v2 = vpop.f32.mrf.mxu1 }
  0xef   :  { %v946_v3 = vadd.f32 %v945_v0, %v384_v60  ;;  %v1079_v5 = vadd.f32 %v1078_v63, %v1016_v62  ;;  %v1341_v6 = vpack.c.bf16 %v1577_v1, %v1576_v55  ;;  %v1421_v8 = vpack.c.bf16 %v1858_v2, %v1848_v56 }
  0xf0   :  { %v387_v7 = vpop.f32.mrf.mxu0  ;;  %v1862_v9 = vpop.f32.mrf.mxu1  ;;  %v1020_v22 = vmul.f32 %v1577_v1, %v1577_v1 }
  0xf1   :  { %v1080_v10 = vadd.f32 %v1079_v5, %v1017_v4  ;;  %1485 = vst [vmem:[%s2126_s2 + $0x18] sm:$0xff] %v1341_v6   ;;  %v1336_v11 = vpack.c.bf16 %v387_v7, %v384_v60  ;;  %v947_v12 = vadd.f32 %v946_v3, %v387_v7  ;;  %v1018_v13 = vmul.f32 %v387_v7, %v387_v7 }
  0xf2   :  { %v1580_v14 = vpop.f32.mrf.mxu0  ;;  %1501 = vst [vmem:[%s2126_s2 + $0x98] sm:$0xff] %v1421_v8   ;;  %v1416_v15 = vpack.c.bf16 %v1862_v9, %v1856_v61  ;;  %v1872_v16 = vpop.f32.mrf.mxu1 }
  0xf3   :  { %1484 = vst [vmem:[%s2126_s2 + $0x10] sm:$0xff] %v1336_v11   ;;  %v948_v18 = vadd.f32 %v1576_v55, %v947_v12  ;;  %v1081_v19 = vadd.f32 %v1080_v10, %v1018_v13  ;;  %v1023_v42 = vmul.f32 %v1580_v14, %v1580_v14 }
  0xf4   :  { %v400_v20 = vpop.f32.mrf.mxu0  ;;  %1500 = vst [vmem:[%s2126_s2 + $0x90] sm:$0xff] %v1416_v15   ;;  %v1880_v21 = vpop.f32.mrf.mxu1 }
  0xf5   :  { %v1082_v23 = vadd.f32 %v1081_v19, %v1019_v17  ;;  %v949_v24 = vadd.f32 %v1577_v1, %v948_v18  ;;  %v1021_v28 = vmul.f32 %v400_v20, %v400_v20 }
  0xf6   :  { %v1581_v25 = vpop.f32.mrf.mxu0  ;;  %v1882_v26 = vpop.f32.mrf.mxu1 }
  0xf7   :  { %v950_v27 = vadd.f32 %v949_v24, %v400_v20  ;;  %v1083_v29 = vadd.f32 %v1082_v23, %v1020_v22  ;;  %v1351_v30 = vpack.c.bf16 %v1581_v25, %v1580_v14  ;;  %v1431_v32 = vpack.c.bf16 %v1882_v26, %v1872_v16 }
  0xf8   :  { %v403_v31 = vpop.f32.mrf.mxu0  ;;  %v1886_v33 = vpop.f32.mrf.mxu1  ;;  %v1024_v49 = vmul.f32 %v1581_v25, %v1581_v25 }
  0xf9   :  { %v1084_v34 = vadd.f32 %v1083_v29, %v1021_v28  ;;  %1487 = vst [vmem:[%s2126_s2 + $0x28] sm:$0xff] %v1351_v30   ;;  %v1346_v35 = vpack.c.bf16 %v403_v31, %v400_v20  ;;  %v951_v36 = vadd.f32 %v950_v27, %v403_v31  ;;  %v1022_v37 = vmul.f32 %v403_v31, %v403_v31 }
  0xfa   :  { %v1584_v38 = vpop.f32.mrf.mxu0  ;;  %1503 = vst [vmem:[%s2126_s2 + $0xa8] sm:$0xff] %v1431_v32   ;;  %v1426_v39 = vpack.c.bf16 %v1886_v33, %v1880_v21  ;;  %v1896_v40 = vpop.f32.mrf.mxu1 }
  0xfb   :  { %1486 = vst [vmem:[%s2126_s2 + $0x20] sm:$0xff] %v1346_v35   ;;  %v952_v44 = vadd.f32 %v1580_v14, %v951_v36  ;;  %v1085_v46 = vadd.f32 %v1084_v34, %v1022_v37  ;;  %v1027_v8 = vmul.f32 %v1584_v38, %v1584_v38 }
  0xfc   :  { %v416_v47 = vpop.f32.mrf.mxu0  ;;  %1502 = vst [vmem:[%s2126_s2 + $0xa0] sm:$0xff] %v1426_v39   ;;  %v1904_v48 = vpop.f32.mrf.mxu1 }
  0xfd   :  { %v1086_v51 = vadd.f32 %v1085_v46, %v1023_v42  ;;  %v953_v52 = vadd.f32 %v1581_v25, %v952_v44  ;;  %v1025_v57 = vmul.f32 %v416_v47, %v416_v47 }
  0xfe   :  { %v1585_v53 = vpop.f32.mrf.mxu0  ;;  %v1906_v54 = vpop.f32.mrf.mxu1 }
  0xff   :  { %v954_v55 = vadd.f32 %v953_v52, %v416_v47  ;;  %v1087_v58 = vadd.f32 %v1086_v51, %v1024_v49  ;;  %v1361_v59 = vpack.c.bf16 %v1585_v53, %v1584_v38  ;;  %v1441_v62 = vpack.c.bf16 %v1906_v54, %v1896_v40 }
 0x100   :  { %v419_v60 = vpop.f32.mrf.mxu0  ;;  %v1910_v63 = vpop.f32.mrf.mxu1  ;;  %v1028_v14 = vmul.f32 %v1585_v53, %v1585_v53 }
 0x101   :  { %v1088_v0 = vadd.f32 %v1087_v58, %v1025_v57  ;;  %1489 = vst [vmem:[%s2126_s2 + $0x38] sm:$0xff] %v1361_v59   ;;  %v1356_v1 = vpack.c.bf16 %v419_v60, %v416_v47  ;;  %v955_v3 = vadd.f32 %v954_v55, %v419_v60  ;;  %v1026_v4 = vmul.f32 %v419_v60, %v419_v60 }
 0x102   :  { %v1588_v5 = vpop.f32.mrf.mxu0  ;;  %1505 = vst [vmem:[%s2126_s2 + $0xb8] sm:$0xff] %v1441_v62   ;;  %v1436_v6 = vpack.c.bf16 %v1910_v63, %v1904_v48  ;;  %v1920_v7 = vpop.f32.mrf.mxu1 }
 0x103   :  { %1488 = vst [vmem:[%s2126_s2 + $0x30] sm:$0xff] %v1356_v1   ;;  %v956_v10 = vadd.f32 %v1584_v38, %v955_v3  ;;  %v1089_v11 = vadd.f32 %v1088_v0, %v1026_v4  ;;  %v1031_v37 = vmul.f32 %v1588_v5, %v1588_v5 }
 0x104   :  { %v432_v12 = vpop.f32.mrf.mxu0  ;;  %1504 = vst [vmem:[%s2126_s2 + $0xb0] sm:$0xff] %v1436_v6   ;;  %v1928_v13 = vpop.f32.mrf.mxu1 }
 0x105   :  { %v1090_v15 = vadd.f32 %v1089_v11, %v1027_v8  ;;  %v957_v17 = vadd.f32 %v1585_v53, %v956_v10  ;;  %v1029_v22 = vmul.f32 %v432_v12, %v432_v12 }
 0x106   :  { %v1589_v18 = vpop.f32.mrf.mxu0  ;;  %v1930_v19 = vpop.f32.mrf.mxu1 }
 0x107   :  { %v958_v20 = vadd.f32 %v957_v17, %v432_v12  ;;  %v1091_v23 = vadd.f32 %v1090_v15, %v1028_v14  ;;  %v1371_v24 = vpack.c.bf16 %v1589_v18, %v1588_v5  ;;  %v1451_v27 = vpack.c.bf16 %v1930_v19, %v1920_v7 }
 0x108   :  { %v435_v25 = vpop.f32.mrf.mxu0  ;;  %v1934_v28 = vpop.f32.mrf.mxu1  ;;  %v1032_v46 = vmul.f32 %v1589_v18, %v1589_v18 }
 0x109   :  { %v1092_v29 = vadd.f32 %v1091_v23, %v1029_v22  ;;  %1491 = vst [vmem:[%s2126_s2 + $0x48] sm:$0xff] %v1371_v24   ;;  %v1366_v30 = vpack.c.bf16 %v435_v25, %v432_v12  ;;  %v959_v31 = vadd.f32 %v958_v20, %v435_v25  ;;  %v1030_v32 = vmul.f32 %v435_v25, %v435_v25 }
 0x10a   :  { %v1592_v34 = vpop.f32.mrf.mxu0  ;;  %1507 = vst [vmem:[%s2126_s2 + $0xc8] sm:$0xff] %v1451_v27   ;;  %v1446_v35 = vpack.c.bf16 %v1934_v28, %v1928_v13  ;;  %v1944_v36 = vpop.f32.mrf.mxu1 }
 0x10b   :  { %1490 = vst [vmem:[%s2126_s2 + $0x40] sm:$0xff] %v1366_v30   ;;  %v960_v38 = vadd.f32 %v1588_v5, %v959_v31  ;;  %v1093_v39 = vadd.f32 %v1092_v29, %v1030_v32  ;;  %v1035_v10 = vmul.f32 %v1592_v34, %v1592_v34 }
 0x10c   :  { %v448_v42 = vpop.f32.mrf.mxu0  ;;  %1506 = vst [vmem:[%s2126_s2 + $0xc0] sm:$0xff] %v1446_v35   ;;  %v1952_v44 = vpop.f32.mrf.mxu1 }
 0x10d   :  { %v1094_v47 = vadd.f32 %v1093_v39, %v1031_v37  ;;  %v961_v49 = vadd.f32 %v1589_v18, %v960_v38  ;;  %v1033_v55 = vmul.f32 %v448_v42, %v448_v42 }
 0x10e   :  { %v1593_v51 = vpop.f32.mrf.mxu0  ;;  %v1954_v52 = vpop.f32.mrf.mxu1 }
 0x10f   :  { %v962_v53 = vadd.f32 %v961_v49, %v448_v42  ;;  %v1095_v57 = vadd.f32 %v1094_v47, %v1032_v46  ;;  %v1381_v58 = vpack.c.bf16 %v1593_v51, %v1592_v34  ;;  %v1461_v60 = vpack.c.bf16 %v1954_v52, %v1944_v36 }
 0x110   :  { %v451_v59 = vpop.f32.mrf.mxu0  ;;  %v1958_v62 = vpop.f32.mrf.mxu1  ;;  %v1036_v17 = vmul.f32 %v1593_v51, %v1593_v51 }
 0x111   :  { %v1096_v0 = vadd.f32 %v1095_v57, %v1033_v55  ;;  %1493 = vst [vmem:[%s2126_s2 + $0x58] sm:$0xff] %v1381_v58   ;;  %v1376_v1 = vpack.c.bf16 %v451_v59, %v448_v42  ;;  %v963_v3 = vadd.f32 %v962_v53, %v451_v59  ;;  %v1034_v4 = vmul.f32 %v451_v59, %v451_v59 }
 0x112   :  { %v1596_v5 = vpop.f32.mrf.mxu0  ;;  %1509 = vst [vmem:[%s2126_s2 + $0xd8] sm:$0xff] %v1461_v60   ;;  %v1456_v6 = vpack.c.bf16 %v1958_v62, %v1952_v44  ;;  %v1968_v8 = vpop.f32.mrf.mxu1 }
 0x113   :  { %1492 = vst [vmem:[%s2126_s2 + $0x50] sm:$0xff] %v1376_v1   ;;  %v964_v11 = vadd.f32 %v1592_v34, %v963_v3  ;;  %v1097_v12 = vadd.f32 %v1096_v0, %v1034_v4  ;;  %v1039_v47 = vmul.f32 %v1596_v5, %v1596_v5 }
 0x114   :  { %v464_v14 = vpop.f32.mrf.mxu0  ;;  %1508 = vst [vmem:[%s2126_s2 + $0xd0] sm:$0xff] %v1456_v6   ;;  %v1976_v15 = vpop.f32.mrf.mxu1 }
 0x115   :  { %v1098_v18 = vadd.f32 %v1097_v12, %v1035_v10  ;;  %v965_v20 = vadd.f32 %v1593_v51, %v964_v11  ;;  %v1037_v25 = vmul.f32 %v464_v14, %v464_v14 }
 0x116   :  { %v1597_v22 = vpop.f32.mrf.mxu0  ;;  %v1978_v23 = vpop.f32.mrf.mxu1 }
 0x117   :  { %v966_v24 = vadd.f32 %v965_v20, %v464_v14  ;;  %v1099_v27 = vadd.f32 %v1098_v18, %v1036_v17  ;;  %v1391_v29 = vpack.c.bf16 %v1597_v22, %v1596_v5  ;;  %v1471_v31 = vpack.c.bf16 %v1978_v23, %v1968_v8 }
 0x118   :  { %v467_v30 = vpop.f32.mrf.mxu0  ;;  %v1982_v32 = vpop.f32.mrf.mxu1  ;;  %v1040_v57 = vmul.f32 %v1597_v22, %v1597_v22 }
 0x119   :  { %v1100_v34 = vadd.f32 %v1099_v27, %v1037_v25  ;;  %1495 = vst [vmem:[%s2126_s2 + $0x68] sm:$0xff] %v1391_v29   ;;  %v1386_v35 = vpack.c.bf16 %v467_v30, %v464_v14  ;;  %v967_v37 = vadd.f32 %v966_v24, %v467_v30  ;;  %v1038_v38 = vmul.f32 %v467_v30, %v467_v30 }
 0x11a   :  { %v1600_v39 = vpop.f32.mrf.mxu0  ;;  %1511 = vst [vmem:[%s2126_s2 + $0xe8] sm:$0xff] %v1471_v31   ;;  %v1466_v42 = vpack.c.bf16 %v1982_v32, %v1976_v15  ;;  %v1992_v46 = vpop.f32.mrf.mxu1  ;;  %v1045_v31 = vmul.f32 %v1832_v43, %v1832_v43 }
 0x11b   :  { %1494 = vst [vmem:[%s2126_s2 + $0x60] sm:$0xff] %v1386_v35   ;;  %v968_v49 = vadd.f32 %v1596_v5, %v967_v37  ;;  %v1101_v51 = vadd.f32 %v1100_v34, %v1038_v38  ;;  %v1046_v38 = vmul.f32 %v1838_v50, %v1838_v50 }
 0x11c   :  { %v480_v53 = vpop.f32.mrf.mxu0  ;;  %1510 = vst [vmem:[%s2126_s2 + $0xe0] sm:$0xff] %v1466_v42   ;;  %v2000_v55 = vpop.f32.mrf.mxu1  ;;  %v1047_v42 = vmul.f32 %v1830_v41, %v1830_v41 }
 0x11d   :  { %v1102_v58 = vadd.f32 %v1101_v51, %v1039_v47  ;;  %v969_v59 = vadd.f32 %v1597_v22, %v968_v49  ;;  %v1041_v3 = vmul.f32 %v480_v53, %v480_v53  ;;  %v1043_v22 = vmul.f32 %v1600_v39, %v1600_v39 }
 0x11e   :  { %v1601_v60 = vpop.f32.mrf.mxu0  ;;  %v2002_v0 = vpop.f32.mrf.mxu1  ;;  %v1048_v51 = vmul.f32 %v1834_v45, %v1834_v45 }
 0x11f   :  { %v970_v1 = vadd.f32 %v969_v59, %v480_v53  ;;  %v1103_v4 = vadd.f32 %v1102_v58, %v1040_v57  ;;  %v1401_v6 = vpack.c.bf16 %v1601_v60, %v1600_v39  ;;  %v1481_v5 = vpack.c.bf16 %v2002_v0, %v1992_v46 }
 0x120   :  { %v483_v10 = vpop.f32.mrf.mxu0  ;;  %v2006_v11 = vpop.f32.mrf.mxu1  ;;  %v1044_v27 = vmul.f32 %v1601_v60, %v1601_v60  ;;  %v1049_v58 = vmul.f32 %v1856_v61, %v1856_v61 }
 0x121   :  { %v1104_v12 = vadd.f32 %v1103_v4, %v1041_v3  ;;  %1497 = vst [vmem:[%s2126_s2 + $0x78] sm:$0xff] %v1401_v6   ;;  %v1396_v14 = vpack.c.bf16 %v483_v10, %v480_v53  ;;  %v971_v17 = vadd.f32 %v970_v1, %v483_v10  ;;  %v1042_v18 = vmul.f32 %v483_v10, %v483_v10 }
 0x122   :  { %1513 = vst [vmem:[%s2126_s2 + $0xf8] sm:$0xff] %v1481_v5   ;;  %v1476_v20 = vpack.c.bf16 %v2006_v11, %v2000_v55  ;;  %v1050_v1 = vmul.f32 %v1862_v9, %v1862_v9  ;;  %v1053_v5 = vmul.f32 %v1880_v21, %v1880_v21 }
 0x123   :  { %1496 = vst [vmem:[%s2126_s2 + $0x70] sm:$0xff] %v1396_v14   ;;  %v972_v24 = vadd.f32 %v1600_v39, %v971_v17  ;;  %v1105_v25 = vadd.f32 %v1104_v12, %v1042_v18  ;;  %v1054_v17 = vmul.f32 %v1886_v33, %v1886_v33 }
 0x124   :  { %1512 = vst [vmem:[%s2126_s2 + $0xf0] sm:$0xff] %v1476_v20  }
 0x125   :  { %v973_v29 = vadd.f32 %v1601_v60, %v972_v24  ;;  %v1106_v30 = vadd.f32 %v1105_v25, %v1043_v22  ;;  %v1057_v25 = vmul.f32 %v1904_v48, %v1904_v48 }
 0x127   :  { %v1107_v34 = vadd.f32 %v1106_v30, %v1044_v27  ;;  %v974_v35 = vadd.f32 %v973_v29, %v1832_v43  ;;  %v1058_v30 = vmul.f32 %v1910_v63, %v1910_v63 }
 0x129   :  { %v975_v37 = vadd.f32 %v974_v35, %v1838_v50  ;;  %v1108_v39 = vadd.f32 %v1107_v34, %v1045_v31 }
 0x12b   :  { %v976_v47 = vadd.f32 %v1830_v41, %v975_v37  ;;  %v1109_v49 = vadd.f32 %v1108_v39, %v1046_v38  ;;  %v1051_v41 = vmul.f32 %v1848_v56, %v1848_v56  ;;  %v1061_v38 = vmul.f32 %v1928_v13, %v1928_v13 }
 0x12d   :  { %v1110_v53 = vadd.f32 %v1109_v49, %v1047_v42  ;;  %v977_v57 = vadd.f32 %v1834_v45, %v976_v47  ;;  %v1052_v45 = vmul.f32 %v1858_v2, %v1858_v2  ;;  %v1062_v47 = vmul.f32 %v1934_v28, %v1934_v28 }
 0x12f   :  { %v978_v43 = vadd.f32 %v977_v57, %v1856_v61  ;;  %v1111_v59 = vadd.f32 %v1110_v53, %v1048_v51 }
 0x131   :  { %v1112_v50 = vadd.f32 %v1111_v59, %v1049_v58  ;;  %v979_v60 = vadd.f32 %v978_v43, %v1862_v9  ;;  %v1065_v43 = vmul.f32 %v1952_v44, %v1952_v44 }
 0x133   :  { %v980_v3 = vadd.f32 %v1848_v56, %v979_v60  ;;  %v1113_v4 = vadd.f32 %v1112_v50, %v1050_v1  ;;  %v1055_v56 = vmul.f32 %v1872_v16, %v1872_v16  ;;  %v1066_v50 = vmul.f32 %v1958_v62, %v1958_v62 }
 0x135   :  { %v1114_v6 = vadd.f32 %v1113_v4, %v1051_v41  ;;  %v981_v10 = vadd.f32 %v1858_v2, %v980_v3  ;;  %v1056_v2 = vmul.f32 %v1882_v26, %v1882_v26  ;;  %v1069_v4 = vmul.f32 %v1976_v15, %v1976_v15 }
 0x137   :  { %v982_v61 = vadd.f32 %v981_v10, %v1880_v21  ;;  %v1115_v12 = vadd.f32 %v1114_v6, %v1052_v45  ;;  %v1070_v10 = vmul.f32 %v1982_v32, %v1982_v32 }
 0x139   :  { %v1116_v14 = vadd.f32 %v1115_v12, %v1053_v5  ;;  %v983_v9 = vadd.f32 %v982_v61, %v1886_v33 }
 0x13b   :  { %v984_v18 = vadd.f32 %v1872_v16, %v983_v9  ;;  %v1117_v20 = vadd.f32 %v1116_v14, %v1054_v17  ;;  %v1059_v16 = vmul.f32 %v1896_v40, %v1896_v40  ;;  %v1073_v9 = vmul.f32 %v2000_v55, %v2000_v55 }
 0x13d   :  { %v1118_v22 = vadd.f32 %v1117_v20, %v1055_v56  ;;  %v985_v24 = vadd.f32 %v1882_v26, %v984_v18  ;;  %v1060_v26 = vmul.f32 %v1906_v54, %v1906_v54  ;;  %v1074_v18 = vmul.f32 %v2006_v11, %v2006_v11 }
 0x13f   :  { %v986_v21 = vadd.f32 %v985_v24, %v1904_v48  ;;  %v1119_v27 = vadd.f32 %v1118_v22, %v1056_v2 }
 0x141   :  { %v1120_v29 = vadd.f32 %v1119_v27, %v1057_v25  ;;  %v987_v33 = vadd.f32 %v986_v21, %v1910_v63 }
 0x143   :  { %v988_v31 = vadd.f32 %v1896_v40, %v987_v33  ;;  %v1121_v34 = vadd.f32 %v1120_v29, %v1058_v30  ;;  %v1063_v40 = vmul.f32 %v1920_v7, %v1920_v7 }
 0x145   :  { %v1122_v35 = vadd.f32 %v1121_v34, %v1059_v16  ;;  %v989_v37 = vadd.f32 %v1906_v54, %v988_v31  ;;  %v1064_v54 = vmul.f32 %v1930_v19, %v1930_v19 }
 0x147   :  { %v990_v48 = vadd.f32 %v989_v37, %v1928_v13  ;;  %v1123_v39 = vadd.f32 %v1122_v35, %v1060_v26 }
 0x149   :  { %v1124_v42 = vadd.f32 %v1123_v39, %v1061_v38  ;;  %v991_v63 = vadd.f32 %v990_v48, %v1934_v28 }
 0x14b   :  { %v992_v49 = vadd.f32 %v1920_v7, %v991_v63  ;;  %v1125_v51 = vadd.f32 %v1124_v42, %v1062_v47  ;;  %v1067_v7 = vmul.f32 %v1944_v36, %v1944_v36 }
 0x14d   :  { %v1126_v53 = vadd.f32 %v1125_v51, %v1063_v40  ;;  %v993_v57 = vadd.f32 %v1930_v19, %v992_v49  ;;  %v1068_v19 = vmul.f32 %v1954_v52, %v1954_v52 }
 0x14f   :  { %v994_v13 = vadd.f32 %v993_v57, %v1952_v44  ;;  %v1127_v58 = vadd.f32 %v1126_v53, %v1064_v54 }
 0x151   :  { %v1128_v59 = vadd.f32 %v1127_v58, %v1065_v43  ;;  %v995_v28 = vadd.f32 %v994_v13, %v1958_v62 }
 0x153   :  { %v996_v60 = vadd.f32 %v1944_v36, %v995_v28  ;;  %v1129_v1 = vadd.f32 %v1128_v59, %v1066_v50  ;;  %v1071_v36 = vmul.f32 %v1968_v8, %v1968_v8 }
 0x155   :  { %v1130_v41 = vadd.f32 %v1129_v1, %v1067_v7  ;;  %v997_v3 = vadd.f32 %v1954_v52, %v996_v60  ;;  %v1072_v52 = vmul.f32 %v1978_v23, %v1978_v23 }
 0x157   :  { %v998_v44 = vadd.f32 %v997_v3, %v1976_v15  ;;  %v1131_v45 = vadd.f32 %v1130_v41, %v1068_v19 }
 0x159   :  { %v1132_v6 = vadd.f32 %v1131_v45, %v1069_v4  ;;  %v999_v62 = vadd.f32 %v998_v44, %v1982_v32 }
 0x15b   :  { %v1000_v61 = vadd.f32 %v1968_v8, %v999_v62  ;;  %v1133_v5 = vadd.f32 %v1132_v6, %v1070_v10  ;;  %v1075_v8 = vmul.f32 %v1992_v46, %v1992_v46 }
 0x15d   :  { %v1134_v12 = vadd.f32 %v1133_v5, %v1071_v36  ;;  %v1001_v14 = vadd.f32 %v1978_v23, %v1000_v61  ;;  %v1076_v23 = vmul.f32 %v2002_v0, %v2002_v0 }
 0x15f   :  { %v1002_v15 = vadd.f32 %v1001_v14, %v2000_v55  ;;  %v1135_v17 = vadd.f32 %v1134_v12, %v1072_v52 }
 0x161   :  { %v1136_v56 = vadd.f32 %v1135_v17, %v1073_v9  ;;  %v1003_v32 = vadd.f32 %v1002_v15, %v2006_v11 }
 0x163   :  { %v1004_v20 = vadd.f32 %v1992_v46, %v1003_v32  ;;  %v1137_v2 = vadd.f32 %v1136_v56, %v1074_v18 }
 0x165   :  { %v1005_v22 = vadd.f32 %v2002_v0, %v1004_v20  ;;  %v1138_v24 = vadd.f32 %v1137_v2, %v1075_v8 }
 0x167   :  { %v1006_v55 = vrot.slane %v1005_v22, 4  ;;  %v1139_v21 = vadd.f32 %v1138_v24, %v1076_v23 }
 0x169   :  { %v1007_v25 = vadd.f32 %v1006_v55, %v1005_v22  ;;  %v1140_v27 = vrot.slane %v1139_v21, 4 }
 0x16b   :  { %v1008_v29 = vrot.slane %v1007_v25, 2  ;;  %v1141_v33 = vadd.f32 %v1140_v27, %v1139_v21 }
 0x16d   :  { %v1009_v30 = vadd.f32 %v1008_v29, %v1007_v25  ;;  %v1142_v11 = vrot.slane %v1141_v33, 2 }
 0x16f   :  { %v1010_v16 = vrot.slane %v1009_v30, 1  ;;  %v1143_v31 = vadd.f32 %v1142_v11, %v1141_v33 }
 0x171   :  { %v1011_v34 = vadd.f32 %v1010_v16, %v1009_v30  ;;  %v1144_v26 = vrot.slane %v1143_v31, 1 }
 0x173   :  { %1012 = vst [vmem:[%s2127_s3] sm:$0x1] %v1011_v34  ;;  %v1145_v46 = vadd.f32 %v1144_v26, %v1143_v31 }
 0x175   :  { %1146 = vst [vmem:[%s2127_s3 + $0x1] sm:$0x1] %v1145_v46 }

// kernel: bottleneck_forward.10
= control target key start
LH: loop header
LB: loop body
LE: loop exit
PB: predicated region body
PF: predicated region fallthrough
CT: control target
= control target key end

     0   :  { %s783_s12 = smov 0   ;;  %s785_s13 = smov 0   ;;  %s868_s0 = inlined_call_operand.vmem [shape: bf16[2,8,2,8,256], index: 0, kind: input, shape index: {}]   ;;  %s869_s1 = inlined_call_operand.vmem [shape: bf16[128,128], index: 1, kind: input, shape index: {}]   ;;  %s870_s2 = inlined_call_operand.vmem [shape: bf16[2,64,128], index: 2, kind: output, shape index: {0}]   ;;  %s871_s3 = inlined_call_operand.vmem [shape: f32[2,2,128], index: 3, kind: output, shape index: {1}]  }
   0x1   :  { %s787_s14 = smov 0  }
   0x2 LB: > { %s584_s15 = sadd.s32 4294967295, %s761_s14   ;;  %s800_s16 = sadd.s32 1, %s761_s14   ;;  %s761_s14 = sphi %s787_s14, %s874_s14   ;;  %s757_s13 = sphi %s785_s13, %s873_s13   ;;  %s753_s12 = sphi %s783_s12, %s872_s12  }
   0x3   : > { %s18_s17 = ssub.s32 %s761_s14, %s800_s16  ;;  %s21_s18 = sadd.s32 1, %s757_s13 }
   0x4   : > { %p19_p0 = scmp.eq.s32.totalorder %s18_s17, 0  ;;  %p28_p1 = scmp.ne.s32.totalorder %s757_s13, %s753_s12 }
   0x5   : > { %p29_p2 = scmp.eq.s32.totalorder %s761_s14, 0  ;;  %p587_p4 = scmp.ge.s32.totalorder %s761_s14, 2 }
   0x6   : > { %s809_s19 = scalar_select %p19_p0, %s757_s13, %s21_s18  }
   0x7   : > { %p30_p3 = por %p29_p2, %p28_p1  ;;  %130 = sbr.rel (%p587_p4) target bundleno = 21 (0x15), region = 20 }
   0xc   : > { %133 = sbr.rel (!%p30_p3) target bundleno = 21 (0x15), region = 24  ;;  %s135_s20 = sand.u32 (%p30_p3), 1, %s757_s13  }
   0xd   : > { %s618_s21 = sshll.u32 (%p30_p3), %s761_s14, 7  ;;  %s588_s22 = sshll.u32 (%p30_p3), %s135_s20, 5 }
   0xe   : > { %s140_s25 = scalar_lea.vmem (%p30_p3), %s868_s0, %s618_s21  ;;  %s137_s26 = scalar_lea.vmem (%p30_p3), [#allocation2], %s588_s22 }
   0xf   : > { %v157_v0 = vld [vmem:[%s140_s25] sm:$0xf] (%p30_p3)  ;;  %v159_v1 = vld [vmem:[%s140_s25 + $0x10] sm:$0xf] (%p30_p3) }
  0x10   : > { %158 = vst [vmem:[%s137_s26] sm:$0xf] (%p30_p3), %v157_v0  ;;  %160 = vst [vmem:[%s137_s26 + $0x4] sm:$0xf] (%p30_p3), %v159_v1  ;;  %v161_v2 = vld [vmem:[%s140_s25 + $0x20] sm:$0xf] (%p30_p3) }
  0x11   : > { %v163_v3 = vld [vmem:[%s140_s25 + $0x30] sm:$0xf]  ;;  %v165_v4 = vld [vmem:[%s140_s25 + $0x40] sm:$0xf]  ;;  %162 = vst [vmem:[%s137_s26 + $0x8] sm:$0xf] %v161_v2 }
  0x12   : > { %164 = vst [vmem:[%s137_s26 + $0xc] sm:$0xf] %v163_v3  ;;  %166 = vst [vmem:[%s137_s26 + $0x10] sm:$0xf] %v165_v4  ;;  %v167_v5 = vld [vmem:[%s140_s25 + $0x50] sm:$0xf] }
  0x13   : > { %v169_v6 = vld [vmem:[%s140_s25 + $0x60] sm:$0xf]  ;;  %v171_v7 = vld [vmem:[%s140_s25 + $0x70] sm:$0xf]  ;;  %168 = vst [vmem:[%s137_s26 + $0x14] sm:$0xf] %v167_v5 }
  0x14   : > { %170 = vst [vmem:[%s137_s26 + $0x18] sm:$0xf] %v169_v6  ;;  %172 = vst [vmem:[%s137_s26 + $0x1c] sm:$0xf] %v171_v7 }
  0x15 PF: > { %p591_p5 = scmp.ge.s32.totalorder %s761_s14, 1  ;;  %p211_p6 = scmp.lt.s32.totalorder %s761_s14, 3 }
  0x17   : > { %p212_p7 = pnand %p591_p5, %p211_p6 }
  0x18   : > { %s218_s29 = sand.u32 (!%p212_p7), 1, %s753_s12   ;;  %p245_p8 = scmp.lt.s32.totalorder (!%p212_p7), %s584_s15, 1 }
  0x19   : > { %215 = sbr.rel (%p212_p7) target bundleno = 291 (0x123), region = 65  ;;  %s592_s5 = sshll.u32 (!%p212_p7), %s218_s29, 5 }
  0x1a   : > { %s220_s10 = scalar_lea.vmem (!%p212_p7), [#allocation2], %s592_s5 }
  0x1e   : > { %v727_v8 = vld [vmem:[%s869_s1 + $0x38] sm:$0xff]   ;;  %v728_v9 = vld [vmem:[%s869_s1 + $0x30] sm:$0xff]   ;;  %v729_v10 = vld [vmem:[%s869_s1 + $0x28] sm:$0xff]   ;;  %s876_s15 = smov (!%p245_p8, %s584_s15), 1 }
  0x1f   : > { %663 = vmatprep.subr.bf16.mxu0 %v727_v8  ;;  %687 = vmatprep.subr.bf16.mxu1 %v727_v8  ;;  %v730_v11 = vld [vmem:[%s869_s1 + $0x20] sm:$0xff]   ;;  %v737_v13 = vld [vmem:[%s220_s10 + $0x10] sm:$0xff]   ;;  %v731_v14 = vld [vmem:[%s869_s1 + $0x18] sm:$0xff]   ;;  %s619_s24 = sshll.u32 %s876_s15, 5  ;;  %s595_s14 = sshll.u32 %s876_s15, 1 }
  0x20   : > { %664 = vmatpush3.bf16.msra.mxu0 %v727_v8  ;;  %695 = vmatpush3.bf16.msra.mxu1 %v727_v8  ;;  %v735_v12 = vld [vmem:[%s220_s10] sm:$0xff]   ;;  %v732_v15 = vld [vmem:[%s869_s1 + $0x10] sm:$0xff]   ;;  %v733_v16 = vld [vmem:[%s869_s1 + $0x8] sm:$0xff]   ;;  %s249_s27 = scalar_lea.vmem %s870_s2, %s619_s24  ;;  %s253_s30 = scalar_lea.vmem %s871_s3, %s595_s14 }
  0x21   : > { %665 = vmatprep.subr.bf16.mxu0 %v728_v9  ;;  %688 = vmatprep.subr.bf16.mxu1 %v728_v9  ;;  %v734_v17 = vld [vmem:[%s869_s1] sm:$0xff]   ;;  %v736_v18 = vld [vmem:[%s220_s10 + $0x8] sm:$0xff]   ;;  %v738_v19 = vld [vmem:[%s220_s10 + $0x18] sm:$0xff]  }
  0x22   : > { %679 = vmatprep.mubr.bf16.mxu0 %v735_v12  ;;  %683 = vmatprep.mubr.bf16.mxu1 %v737_v13 }
  0x24   : > { %666 = vmatpush3.bf16.msra.mxu0 %v728_v9  ;;  %696 = vmatpush3.bf16.msra.mxu1 %v728_v9 }
  0x25   : > { %667 = vmatprep.subr.bf16.mxu0 %v729_v10  ;;  %689 = vmatprep.subr.bf16.mxu1 %v729_v10 }
  0x28   : > { %668 = vmatpush3.bf16.msra.mxu0 %v729_v10  ;;  %697 = vmatpush3.bf16.msra.mxu1 %v729_v10 }
  0x29   : > { %669 = vmatprep.subr.bf16.mxu0 %v730_v11  ;;  %690 = vmatprep.subr.bf16.mxu1 %v730_v11 }
  0x2c   : > { %670 = vmatpush3.bf16.msra.mxu0 %v730_v11  ;;  %698 = vmatpush3.bf16.msra.mxu1 %v730_v11 }
  0x2d   : > { %671 = vmatprep.subr.bf16.mxu0 %v731_v14  ;;  %691 = vmatprep.subr.bf16.mxu1 %v731_v14 }
  0x30   : > { %672 = vmatpush3.bf16.msra.mxu0 %v731_v14  ;;  %699 = vmatpush3.bf16.msra.mxu1 %v731_v14 }
  0x31   : > { %673 = vmatprep.subr.bf16.mxu0 %v732_v15  ;;  %692 = vmatprep.subr.bf16.mxu1 %v732_v15 }
  0x34   : > { %674 = vmatpush3.bf16.msra.mxu0 %v732_v15  ;;  %700 = vmatpush3.bf16.msra.mxu1 %v732_v15 }
  0x35   : > { %675 = vmatprep.subr.bf16.mxu0 %v733_v16  ;;  %693 = vmatprep.subr.bf16.mxu1 %v733_v16 }
  0x38   : > { %676 = vmatpush3.bf16.msra.mxu0 %v733_v16  ;;  %701 = vmatpush3.bf16.msra.mxu1 %v733_v16 }
  0x39   : > { %677 = vmatprep.subr.bf16.mxu0 %v734_v17  ;;  %694 = vmatprep.subr.bf16.mxu1 %v734_v17 }
  0x3c   : > { %678 = vmatpush3.bf16.msra.mxu0 %v734_v17  ;;  %702 = vmatpush3.bf16.msra.mxu1 %v734_v17 }
  0x3f   : > { %680 = vmatmul.mubr.bf16.vlgmr.msra.gmra.mxu0 %v736_v18  ;;  %684 = vmatmul.mubr.bf16.vlgmr.msra.gmra.mxu1 %v738_v19 }
  0xff   : > { %v681_v20 = vpop.f32.mrf.mxu0  ;;  %v685_v21 = vpop.f32.mrf.mxu1 }
 0x100   : > { %v472_v35 = vmul.f32 %v681_v20, %v681_v20  ;;  %v476_v47 = vmul.f32 %v685_v21, %v685_v21 }
 0x101   : > { %v385_v22 = vpop.f32.mrf.mxu0  ;;  %v401_v23 = vpop.f32.mrf.mxu1 }
 0x102   : > { %v470_v28 = vmul.f32 %v385_v22, %v385_v22  ;;  %v474_v41 = vmul.f32 %v401_v23, %v401_v23 }
 0x103   : > { %v682_v24 = vpop.f32.mrf.mxu0  ;;  %v686_v25 = vpop.f32.mrf.mxu1 }
 0x104   : > { %v636_v26 = vpack.c.bf16 %v682_v24, %v681_v20  ;;  %v646_v27 = vpack.c.bf16 %v686_v25, %v685_v21  ;;  %v473_v38 = vmul.f32 %v682_v24, %v682_v24  ;;  %v477_v50 = vmul.f32 %v686_v25, %v686_v25 }
 0x105   : > { %v388_v29 = vpop.f32.mrf.mxu0  ;;  %v404_v30 = vpop.f32.mrf.mxu1 }
 0x106   : > { %648 = vst [vmem:[%s249_s27 + $0x8] sm:$0xff] %v636_v26   ;;  %v631_v31 = vpack.c.bf16 %v388_v29, %v385_v22  ;;  %v456_v32 = vadd.f32 %v388_v29, %v385_v22  ;;  %v471_v33 = vmul.f32 %v388_v29, %v388_v29  ;;  %650 = vst [vmem:[%s249_s27 + $0x18] sm:$0xff] %v646_v27  }
 0x107   : > { %v641_v34 = vpack.c.bf16 %v404_v30, %v401_v23  ;;  %v475_v45 = vmul.f32 %v404_v30, %v404_v30 }
 0x108   : > { %632 = vst [vmem:[%s249_s27] sm:$0xff] %v631_v31   ;;  %v457_v36 = vadd.f32 %v681_v20, %v456_v32  ;;  %v478_v37 = vadd.f32 %v471_v33, %v470_v28 }
 0x109   : > { %649 = vst [vmem:[%s249_s27 + $0x10] sm:$0xff] %v641_v34  }
 0x10a   : > { %v479_v39 = vadd.f32 %v478_v37, %v472_v35  ;;  %v458_v40 = vadd.f32 %v682_v24, %v457_v36 }
 0x10c   : > { %v459_v42 = vadd.f32 %v458_v40, %v401_v23  ;;  %v480_v43 = vadd.f32 %v479_v39, %v473_v38 }
 0x10e   : > { %v460_v44 = vadd.f32 %v459_v42, %v404_v30  ;;  %v481_v46 = vadd.f32 %v480_v43, %v474_v41 }
 0x110   : > { %v461_v48 = vadd.f32 %v685_v21, %v460_v44  ;;  %v482_v49 = vadd.f32 %v481_v46, %v475_v45 }
 0x112   : > { %v462_v51 = vadd.f32 %v686_v25, %v461_v48  ;;  %v483_v52 = vadd.f32 %v482_v49, %v476_v47 }
 0x114   : > { %v463_v53 = vrot.slane %v462_v51, 4  ;;  %v484_v54 = vadd.f32 %v483_v52, %v477_v50 }
 0x116   : > { %v464_v55 = vadd.f32 %v463_v53, %v462_v51  ;;  %v485_v56 = vrot.slane %v484_v54, 4 }
 0x118   : > { %v465_v57 = vrot.slane %v464_v55, 2  ;;  %v486_v58 = vadd.f32 %v485_v56, %v484_v54 }
 0x11a   : > { %v466_v59 = vadd.f32 %v465_v57, %v464_v55  ;;  %v487_v60 = vrot.slane %v486_v58, 2 }
 0x11c   : > { %v467_v61 = vrot.slane %v466_v59, 1  ;;  %v488_v62 = vadd.f32 %v487_v60, %v486_v58 }
 0x11e   : > { %v468_v63 = vadd.f32 %v467_v61, %v466_v59  ;;  %v489_v0 = vrot.slane %v488_v62, 1 }
 0x120   : > { %469 = vst [vmem:[%s253_s30] sm:$0x1] %v468_v63  ;;  %v490_v1 = vadd.f32 %v489_v0, %v488_v62 }
 0x122   : > { %491 = vst [vmem:[%s253_s30 + $0x1] sm:$0x1] %v490_v1 }
 0x123 PF: > { %p11_p9 = scmp.ge.s32.totalorder %s800_s16, 4   ;;  %s872_s12 = smov %s757_s13 }
 0x124   : > { %s873_s13 = smov %s809_s19  ;;  %s874_s14 = smov %s800_s16 }
 0x125   :  { %13 = sbr.rel (!%p11_p9) target bundleno = 2 (0x2), region = 116 }

// kernel: bottleneck_forward.9
= control target key start
LH: loop header
LB: loop body
LE: loop exit
PB: predicated region body
PF: predicated region fallthrough
CT: control target
= control target key end

     0   :  { %s781_s1 = inlined_call_operand.vmem [shape: bf16[128,128], index: 1, kind: input, shape index: {}]   ;;  %s782_s0 = inlined_call_operand.vmem [shape: bf16[128,128], index: 0, kind: input, shape index: {}]   ;;  %s783_s2 = inlined_call_operand.vmem [shape: f32[1,128], index: 2, kind: input, shape index: {}]   ;;  %s784_s3 = inlined_call_operand.vmem [shape: f32[1,128], index: 3, kind: input, shape index: {}]   ;;  %s785_s4 = inlined_call_operand.vmem [shape: bf16[128,128], index: 4, kind: output, shape index: {0}]   ;;  %s786_s5 = inlined_call_operand.vmem [shape: f32[1,2,128], index: 5, kind: output, shape index: {1}]  }
   0x1   :  { %v623_v0 = vld [vmem:[%s781_s1 + $0x38] sm:$0xff]   ;;  %v624_v1 = vld [vmem:[%s781_s1 + $0x30] sm:$0xff]   ;;  %v625_v2 = vld [vmem:[%s781_s1 + $0x28] sm:$0xff]  }
   0x2   :  { %575 = vmatprep.subr.bf16.mxu0 %v623_v0  ;;  %607 = vmatprep.subr.bf16.mxu1 %v623_v0  ;;  %v626_v3 = vld [vmem:[%s781_s1 + $0x20] sm:$0xff]   ;;  %v545_v8 = vld [vmem:[%s782_s0 + $0x8] sm:$0xff]   ;;  %v546_v9 = vld [vmem:[%s782_s0 + $0x10] sm:$0xff]  }
   0x3   :  { %576 = vmatpush3.bf16.msra.mxu0 %v623_v0  ;;  %615 = vmatpush3.bf16.msra.mxu1 %v623_v0  ;;  %v474_v4 = vld [vmem:[%s782_s0] sm:$0xff]   ;;  %v479_v11 = vunpack.c.l.bf16 %v545_v8  ;;  %v480_v14 = vunpack.c.h.bf16 %v545_v8  ;;  %v627_v16 = vld [vmem:[%s781_s1 + $0x18] sm:$0xff]   ;;  %v483_v17 = vunpack.c.l.bf16 %v546_v9  ;;  %v484_v21 = vunpack.c.h.bf16 %v546_v9  ;;  %v549_v27 = vld [vmem:[%s782_s0 + $0x28] sm:$0xff]  }
   0x4   :  { %577 = vmatprep.subr.bf16.mxu0 %v624_v1  ;;  %608 = vmatprep.subr.bf16.mxu1 %v624_v1  ;;  %v679_v5 = vld [vmem:[%s783_s2] ss:$0 sm:$0xff]  ;;  %v475_v6 = vunpack.c.l.bf16 %v474_v4  ;;  %v476_v7 = vunpack.c.h.bf16 %v474_v4  ;;  %v547_v22 = vld [vmem:[%s782_s0 + $0x18] sm:$0xff]   ;;  %v628_v28 = vld [vmem:[%s781_s1 + $0x10] sm:$0xff]   ;;  %v495_v38 = vunpack.c.l.bf16 %v549_v27  ;;  %v496_v42 = vunpack.c.h.bf16 %v549_v27 }
   0x5   :  { %v690_v10 = vld [vmem:[%s784_s3] ss:$0 sm:$0xff]  ;;  %v61_v20 = vmul.f32 %v479_v11, %v679_v5  ;;  %v62_v26 = vmul.f32 %v480_v14, %v679_v5  ;;  %v63_v29 = vmul.f32 %v483_v17, %v679_v5  ;;  %v550_v30 = vld [vmem:[%s782_s0 + $0x30] sm:$0xff]   ;;  %v487_v32 = vunpack.c.l.bf16 %v547_v22  ;;  %v551_v39 = vld [vmem:[%s782_s0 + $0x38] sm:$0xff]  }
   0x6   :  { %v59_v12 = vmul.f32 %v475_v6, %v679_v5  ;;  %v60_v13 = vmul.f32 %v476_v7, %v679_v5  ;;  %v548_v15 = vld [vmem:[%s782_s0 + $0x20] sm:$0xff]   ;;  %v488_v33 = vunpack.c.h.bf16 %v547_v22  ;;  %v64_v36 = vmul.f32 %v484_v21, %v679_v5  ;;  %v629_v44 = vld [vmem:[%s781_s1 + $0x8] sm:$0xff]  }
   0x7   :  { %578 = vmatpush3.bf16.msra.mxu0 %v624_v1  ;;  %616 = vmatpush3.bf16.msra.mxu1 %v624_v1  ;;  %v491_v23 = vunpack.c.l.bf16 %v548_v15  ;;  %v492_v34 = vunpack.c.h.bf16 %v548_v15  ;;  %v84_v35 = vadd.f32 %v690_v10, %v61_v20  ;;  %v85_v40 = vadd.f32 %v690_v10, %v62_v26  ;;  %v630_v61 = vld [vmem:[%s781_s1] sm:$0xff]  }
   0x8   :  { %579 = vmatprep.subr.bf16.mxu0 %v625_v2  ;;  %609 = vmatprep.subr.bf16.mxu1 %v625_v2  ;;  %v82_v18 = vadd.f32 %v690_v10, %v59_v12  ;;  %v83_v19 = vadd.f32 %v690_v10, %v60_v13  ;;  %v499_v43 = vunpack.c.l.bf16 %v550_v30  ;;  %v86_v45 = vadd.f32 %v690_v10, %v63_v29 }
   0x9   :  { %v67_v37 = vmul.f32 %v491_v23, %v679_v5  ;;  %v68_v41 = vmul.f32 %v492_v34, %v679_v5  ;;  %v69_v47 = vmul.f32 %v495_v38, %v679_v5  ;;  %v500_v48 = vunpack.c.h.bf16 %v550_v30 }
   0xa   :  { %v98_v24 = vmax.f32 %v82_v18, 0.0  ;;  %v99_v25 = vmax.f32 %v83_v19, 0.0  ;;  %v70_v50 = vmul.f32 %v496_v42, %v679_v5  ;;  %v71_v51 = vmul.f32 %v499_v43, %v679_v5 }
   0xb   :  { %580 = vmatpush3.bf16.msra.mxu0 %v625_v2  ;;  %617 = vmatpush3.bf16.msra.mxu1 %v625_v2  ;;  %v90_v46 = vadd.f32 %v690_v10, %v67_v37  ;;  %v91_v49 = vadd.f32 %v690_v10, %v68_v41  ;;  %v503_v52 = vunpack.c.l.bf16 %v551_v39  ;;  %v92_v54 = vadd.f32 %v690_v10, %v69_v47 }
   0xc   :  { %581 = vmatprep.subr.bf16.mxu0 %v626_v3  ;;  %610 = vmatprep.subr.bf16.mxu1 %v626_v3  ;;  %v114_v31 = vpack.c.bf16 %v99_v25, %v98_v24  ;;  %v72_v55 = vmul.f32 %v500_v48, %v679_v5  ;;  %v504_v56 = vunpack.c.h.bf16 %v551_v39  ;;  %v87_v57 = vadd.f32 %v690_v10, %v64_v36 }
   0xd   :  { %v106_v53 = vmax.f32 %v90_v46, 0.0  ;;  %v107_v58 = vmax.f32 %v91_v49, 0.0  ;;  %v93_v59 = vadd.f32 %v690_v10, %v70_v50  ;;  %v94_v60 = vadd.f32 %v690_v10, %v71_v51 }
   0xe   :  { %591 = vmatprep.mubr.bf16.mxu0 %v114_v31  ;;  %v65_v62 = vmul.f32 %v487_v32, %v679_v5  ;;  %v95_v63 = vadd.f32 %v690_v10, %v72_v55  ;;  %v100_v0 = vmax.f32 %v84_v35, 0.0  ;;  %v101_v1 = vmax.f32 %v85_v40, 0.0 }
   0xf   :  { %582 = vmatpush3.bf16.msra.mxu0 %v626_v3  ;;  %618 = vmatpush3.bf16.msra.mxu1 %v626_v3  ;;  %v66_v2 = vmul.f32 %v488_v33, %v679_v5  ;;  %v118_v3 = vpack.c.bf16 %v107_v58, %v106_v53  ;;  %v108_v4 = vmax.f32 %v92_v54, 0.0  ;;  %v109_v6 = vmax.f32 %v93_v59, 0.0 }
  0x10   :  { %583 = vmatprep.subr.bf16.mxu0 %v627_v16  ;;  %611 = vmatprep.subr.bf16.mxu1 %v627_v16  ;;  %v73_v7 = vmul.f32 %v503_v52, %v679_v5  ;;  %v74_v8 = vmul.f32 %v504_v56, %v679_v5  ;;  %v102_v9 = vmax.f32 %v86_v45, 0.0  ;;  %v103_v11 = vmax.f32 %v87_v57, 0.0 }
  0x11   :  { %v110_v12 = vmax.f32 %v94_v60, 0.0  ;;  %v111_v13 = vmax.f32 %v95_v63, 0.0  ;;  %v88_v14 = vadd.f32 %v690_v10, %v65_v62  ;;  %v89_v15 = vadd.f32 %v690_v10, %v66_v2  ;;  %599 = vmatprep.mubr.bf16.mxu1 %v118_v3 }
  0x12   :  { %v119_v17 = vpack.c.bf16 %v109_v6, %v108_v4  ;;  %v96_v18 = vadd.f32 %v690_v10, %v73_v7  ;;  %v97_v19 = vadd.f32 %v690_v10, %v74_v8  ;;  %v116_v5 = vpack.c.bf16 %v103_v11, %v102_v9 }
  0x13   :  { %584 = vmatpush3.bf16.msra.mxu0 %v627_v16  ;;  %619 = vmatpush3.bf16.msra.mxu1 %v627_v16  ;;  %v115_v16 = vpack.c.bf16 %v101_v1, %v100_v0  ;;  %v120_v20 = vpack.c.bf16 %v111_v13, %v110_v12  ;;  %v104_v21 = vmax.f32 %v88_v14, 0.0  ;;  %v105_v22 = vmax.f32 %v89_v15, 0.0 }
  0x14   :  { %585 = vmatprep.subr.bf16.mxu0 %v628_v28  ;;  %612 = vmatprep.subr.bf16.mxu1 %v628_v28  ;;  %v112_v23 = vmax.f32 %v96_v18, 0.0  ;;  %v113_v24 = vmax.f32 %v97_v19, 0.0 }
  0x15   :  { %v117_v25 = vpack.c.bf16 %v105_v22, %v104_v21 }
  0x16   :  { %v121_v26 = vpack.c.bf16 %v113_v24, %v112_v23 }
  0x17   :  { %586 = vmatpush3.bf16.msra.mxu0 %v628_v28  ;;  %620 = vmatpush3.bf16.msra.mxu1 %v628_v28 }
  0x18   :  { %587 = vmatprep.subr.bf16.mxu0 %v629_v44  ;;  %613 = vmatprep.subr.bf16.mxu1 %v629_v44 }
  0x1b   :  { %588 = vmatpush3.bf16.msra.mxu0 %v629_v44  ;;  %621 = vmatpush3.bf16.msra.mxu1 %v629_v44 }
  0x1c   :  { %589 = vmatprep.subr.bf16.mxu0 %v630_v61  ;;  %614 = vmatprep.subr.bf16.mxu1 %v630_v61 }
  0x1f   :  { %590 = vmatpush3.bf16.msra.mxu0 %v630_v61  ;;  %622 = vmatpush3.bf16.msra.mxu1 %v630_v61 }
  0x22   :  { %592 = vmatmul.mubr.bf16.vlgmr.msra.gmra.mxu0 %v115_v16  ;;  %600 = vmatmul.mubr.bf16.vlgmr.msra.gmra.mxu1 %v119_v17 }
  0x23   :  { %595 = vmatprep.mubr.bf16.mxu0 %v116_v5  ;;  %603 = vmatprep.mubr.bf16.mxu1 %v120_v20 }
  0x2a   :  { %596 = vmatmul.mubr.bf16.gmra.mxu0 %v117_v25  ;;  %604 = vmatmul.mubr.bf16.gmra.mxu1 %v121_v26 }
  0xe2   :  { %v593_v27 = vpop.f32.mrf.mxu0  ;;  %v601_v28 = vpop.f32.mrf.mxu1 }
  0xe3   :  { %v387_v43 = vmul.f32 %v593_v27, %v593_v27  ;;  %v395_v15 = vmul.f32 %v601_v28, %v601_v28 }
  0xe4   :  { %v220_v29 = vpop.f32.mrf.mxu0  ;;  %v252_v10 = vpop.f32.mrf.mxu1 }
  0xe5   :  { %v385_v34 = vmul.f32 %v220_v29, %v220_v29  ;;  %v393_v8 = vmul.f32 %v252_v10, %v252_v10 }
  0xe6   :  { %v594_v30 = vpop.f32.mrf.mxu0  ;;  %v602_v31 = vpop.f32.mrf.mxu1 }
  0xe7   :  { %v513_v32 = vpack.c.bf16 %v594_v30, %v593_v27  ;;  %v533_v33 = vpack.c.bf16 %v602_v31, %v601_v28  ;;  %v388_v48 = vmul.f32 %v594_v30, %v594_v30  ;;  %v396_v18 = vmul.f32 %v602_v31, %v602_v31 }
  0xe8   :  { %v223_v35 = vpop.f32.mrf.mxu0  ;;  %v255_v36 = vpop.f32.mrf.mxu1 }
  0xe9   :  { %552 = vst [vmem:[%s785_s4 + $0x8] sm:$0xff] %v513_v32   ;;  %v508_v37 = vpack.c.bf16 %v223_v35, %v220_v29  ;;  %v363_v38 = vadd.f32 %v223_v35, %v220_v29  ;;  %v386_v39 = vmul.f32 %v223_v35, %v223_v35  ;;  %556 = vst [vmem:[%s785_s4 + $0x28] sm:$0xff] %v533_v33  }
  0xea   :  { %v528_v40 = vpack.c.bf16 %v255_v36, %v252_v10  ;;  %v597_v41 = vpop.f32.mrf.mxu0  ;;  %v605_v42 = vpop.f32.mrf.mxu1  ;;  %v394_v13 = vmul.f32 %v255_v36, %v255_v36 }
  0xeb   :  { %509 = vst [vmem:[%s785_s4] sm:$0xff] %v508_v37   ;;  %v364_v44 = vadd.f32 %v593_v27, %v363_v38  ;;  %v401_v45 = vadd.f32 %v386_v39, %v385_v34  ;;  %v391_v1 = vmul.f32 %v597_v41, %v597_v41  ;;  %v399_v26 = vmul.f32 %v605_v42, %v605_v42 }
  0xec   :  { %555 = vst [vmem:[%s785_s4 + $0x20] sm:$0xff] %v528_v40   ;;  %v236_v46 = vpop.f32.mrf.mxu0  ;;  %v268_v47 = vpop.f32.mrf.mxu1 }
  0xed   :  { %v402_v49 = vadd.f32 %v401_v45, %v387_v43  ;;  %v365_v50 = vadd.f32 %v594_v30, %v364_v44  ;;  %v389_v54 = vmul.f32 %v236_v46, %v236_v46  ;;  %v397_v21 = vmul.f32 %v268_v47, %v268_v47 }
  0xee   :  { %v598_v51 = vpop.f32.mrf.mxu0  ;;  %v606_v52 = vpop.f32.mrf.mxu1 }
  0xef   :  { %v366_v53 = vadd.f32 %v365_v50, %v236_v46  ;;  %v403_v55 = vadd.f32 %v402_v49, %v388_v48  ;;  %v523_v56 = vpack.c.bf16 %v598_v51, %v597_v41  ;;  %v543_v58 = vpack.c.bf16 %v606_v52, %v605_v42 }
  0xf0   :  { %v239_v57 = vpop.f32.mrf.mxu0  ;;  %v271_v59 = vpop.f32.mrf.mxu1  ;;  %v392_v4 = vmul.f32 %v598_v51, %v598_v51  ;;  %v400_v30 = vmul.f32 %v606_v52, %v606_v52 }
  0xf1   :  { %v404_v60 = vadd.f32 %v403_v55, %v389_v54  ;;  %554 = vst [vmem:[%s785_s4 + $0x18] sm:$0xff] %v523_v56   ;;  %v518_v61 = vpack.c.bf16 %v239_v57, %v236_v46  ;;  %v367_v62 = vadd.f32 %v366_v53, %v239_v57  ;;  %v390_v63 = vmul.f32 %v239_v57, %v239_v57 }
  0xf2   :  { %558 = vst [vmem:[%s785_s4 + $0x38] sm:$0xff] %v543_v58   ;;  %v538_v0 = vpack.c.bf16 %v271_v59, %v268_v47  ;;  %v398_v25 = vmul.f32 %v271_v59, %v271_v59 }
  0xf3   :  { %553 = vst [vmem:[%s785_s4 + $0x10] sm:$0xff] %v518_v61   ;;  %v368_v2 = vadd.f32 %v597_v41, %v367_v62  ;;  %v405_v3 = vadd.f32 %v404_v60, %v390_v63 }
  0xf4   :  { %557 = vst [vmem:[%s785_s4 + $0x30] sm:$0xff] %v538_v0  }
  0xf5   :  { %v369_v6 = vadd.f32 %v598_v51, %v368_v2  ;;  %v406_v7 = vadd.f32 %v405_v3, %v391_v1 }
  0xf7   :  { %v407_v9 = vadd.f32 %v406_v7, %v392_v4  ;;  %v370_v11 = vadd.f32 %v369_v6, %v252_v10 }
  0xf9   :  { %v371_v12 = vadd.f32 %v370_v11, %v255_v36  ;;  %v408_v14 = vadd.f32 %v407_v9, %v393_v8 }
  0xfb   :  { %v372_v16 = vadd.f32 %v601_v28, %v371_v12  ;;  %v409_v17 = vadd.f32 %v408_v14, %v394_v13 }
  0xfd   :  { %v410_v19 = vadd.f32 %v409_v17, %v395_v15  ;;  %v373_v5 = vadd.f32 %v602_v31, %v372_v16 }
  0xff   :  { %v374_v20 = vadd.f32 %v373_v5, %v268_v47  ;;  %v411_v22 = vadd.f32 %v410_v19, %v396_v18 }
 0x101   :  { %v412_v23 = vadd.f32 %v411_v22, %v397_v21  ;;  %v375_v24 = vadd.f32 %v374_v20, %v271_v59 }
 0x103   :  { %v376_v27 = vadd.f32 %v605_v42, %v375_v24  ;;  %v413_v29 = vadd.f32 %v412_v23, %v398_v25 }
 0x105   :  { %v377_v10 = vadd.f32 %v606_v52, %v376_v27  ;;  %v414_v32 = vadd.f32 %v413_v29, %v399_v26 }
 0x107   :  { %v378_v33 = vrot.slane %v377_v10, 4  ;;  %v415_v34 = vadd.f32 %v414_v32, %v400_v30 }
 0x109   :  { %v379_v35 = vadd.f32 %v378_v33, %v377_v10  ;;  %v416_v28 = vrot.slane %v415_v34, 4 }
 0x10b   :  { %v380_v36 = vrot.slane %v379_v35, 2  ;;  %v417_v37 = vadd.f32 %v416_v28, %v415_v34 }
 0x10d   :  { %v381_v38 = vadd.f32 %v380_v36, %v379_v35  ;;  %v418_v31 = vrot.slane %v417_v37, 2 }
 0x10f   :  { %v382_v39 = vrot.slane %v381_v38, 1  ;;  %v419_v40 = vadd.f32 %v418_v31, %v417_v37 }
 0x111   :  { %v383_v41 = vadd.f32 %v382_v39, %v381_v38  ;;  %v420_v43 = vrot.slane %v419_v40, 1 }
 0x113   :  { %384 = vst [vmem:[%s786_s5] sm:$0x1] %v383_v41  ;;  %v421_v42 = vadd.f32 %v420_v43, %v419_v40 }
 0x115   :  { %422 = vst [vmem:[%s786_s5 + $0x1] sm:$0x1] %v421_v42 }

// kernel: bottleneck_forward.11
= control target key start
LH: loop header
LB: loop body
LE: loop exit
PB: predicated region body
PF: predicated region fallthrough
CT: control target
= control target key end

     0   :  { %s667_s0 = inlined_call_operand.vmem [shape: bf16[128,128], index: 0, kind: input, shape index: {}]   ;;  %s668_s1 = inlined_call_operand.vmem [shape: f32[1,128], index: 1, kind: input, shape index: {}]   ;;  %s669_s2 = inlined_call_operand.vmem [shape: f32[1,128], index: 2, kind: input, shape index: {}]   ;;  %s670_s3 = inlined_call_operand.vmem [shape: bf16[128,128], index: 3, kind: input, shape index: {}]   ;;  %s671_s4 = inlined_call_operand.vmem [shape: f32[1,128], index: 4, kind: input, shape index: {}]   ;;  %s672_s5 = inlined_call_operand.vmem [shape: f32[1,128], index: 5, kind: input, shape index: {}]   ;;  %s673_s6 = inlined_call_operand.hbm [shape: bf16[128,128], index: 6, kind: output, shape index: {}]  }
   0x1   :  { %v345_v0 = vld [vmem:[%s667_s0] sm:$0xff]   ;;  %v448_v9 = vld [vmem:[%s667_s0 + $0x8] sm:$0xff]   ;;  %v449_v20 = vld [vmem:[%s667_s0 + $0x10] sm:$0xff]  }
   0x2   :  { %v538_v1 = vld [vmem:[%s668_s1] ss:$0 sm:$0xff]  ;;  %v346_v2 = vunpack.c.l.bf16 %v345_v0  ;;  %v347_v3 = vunpack.c.h.bf16 %v345_v0  ;;  %v455_v10 = vld [vmem:[%s670_s3 + $0x8] sm:$0xff]   ;;  %v350_v14 = vunpack.c.l.bf16 %v448_v9  ;;  %v351_v15 = vunpack.c.h.bf16 %v448_v9  ;;  %v456_v29 = vld [vmem:[%s670_s3 + $0x10] sm:$0xff]  }
   0x3   :  { %v377_v4 = vld [vmem:[%s670_s3] sm:$0xff]   ;;  %v382_v18 = vunpack.c.l.bf16 %v455_v10  ;;  %v383_v19 = vunpack.c.h.bf16 %v455_v10 }
   0x4   :  { %v546_v5 = vld [vmem:[%s671_s4] ss:$0 sm:$0xff]  ;;  %v378_v7 = vunpack.c.l.bf16 %v377_v4  ;;  %v379_v8 = vunpack.c.h.bf16 %v377_v4  ;;  %v63_v11 = vmul.f32 %v346_v2, %v538_v1  ;;  %v64_v12 = vmul.f32 %v347_v3, %v538_v1 }
   0x5   :  { %v551_v6 = vld [vmem:[%s669_s2] ss:$0 sm:$0xff]  ;;  %v65_v23 = vmul.f32 %v350_v14, %v538_v1  ;;  %v66_v24 = vmul.f32 %v351_v15, %v538_v1  ;;  %v143_v27 = vmul.f32 %v382_v18, %v546_v5  ;;  %v144_v28 = vmul.f32 %v383_v19, %v546_v5 }
   0x6   :  { %v564_v13 = vld [vmem:[%s672_s5] ss:$0 sm:$0xff]  ;;  %v141_v16 = vmul.f32 %v378_v7, %v546_v5  ;;  %v142_v17 = vmul.f32 %v379_v8, %v546_v5  ;;  %v86_v21 = vadd.f32 %v551_v6, %v63_v11  ;;  %v87_v22 = vadd.f32 %v551_v6, %v64_v12 }
   0x8   :  { %v164_v25 = vadd.f32 %v564_v13, %v141_v16  ;;  %v165_v26 = vadd.f32 %v564_v13, %v142_v17 }
   0x9   :  { %11 = vsyncpa [#allocation3], 0  ;;  %v88_v30 = vadd.f32 %v551_v6, %v65_v23  ;;  %v89_v31 = vadd.f32 %v551_v6, %v66_v24  ;;  %v354_v32 = vunpack.c.l.bf16 %v449_v20  ;;  %v355_v33 = vunpack.c.h.bf16 %v449_v20  ;;  %v450_v42 = vld [vmem:[%s667_s0 + $0x18] sm:$0xff]   ;;  %v451_v52 = vld [vmem:[%s667_s0 + $0x20] sm:$0xff]  }
   0xa   :  { %v180_v34 = vadd.f32 %v164_v25, %v86_v21  ;;  %v181_v35 = vadd.f32 %v165_v26, %v87_v22  ;;  %v166_v36 = vadd.f32 %v564_v13, %v143_v27  ;;  %v167_v37 = vadd.f32 %v564_v13, %v144_v28  ;;  %v457_v47 = vld [vmem:[%s670_s3 + $0x18] sm:$0xff]   ;;  %v458_v8 = vld [vmem:[%s670_s3 + $0x20] sm:$0xff]   ;;  %v452_v14 = vld [vmem:[%s667_s0 + $0x28] sm:$0xff]  }
   0xb   :  { %v67_v38 = vmul.f32 %v354_v32, %v538_v1  ;;  %v68_v39 = vmul.f32 %v355_v33, %v538_v1  ;;  %v386_v40 = vunpack.c.l.bf16 %v456_v29  ;;  %v387_v41 = vunpack.c.h.bf16 %v456_v29  ;;  %v459_v23 = vld [vmem:[%s670_s3 + $0x28] sm:$0xff]   ;;  %v453_v32 = vld [vmem:[%s667_s0 + $0x30] sm:$0xff]  }
   0xc   :  { %v196_v43 = vmax.f32 %v180_v34, 0.0  ;;  %v197_v44 = vmax.f32 %v181_v35, 0.0  ;;  %v182_v45 = vadd.f32 %v166_v36, %v88_v30  ;;  %v183_v46 = vadd.f32 %v167_v37, %v89_v31 }
   0xd   :  { %v90_v48 = vadd.f32 %v551_v6, %v67_v38  ;;  %v91_v49 = vadd.f32 %v551_v6, %v68_v39  ;;  %v145_v50 = vmul.f32 %v386_v40, %v546_v5  ;;  %v146_v51 = vmul.f32 %v387_v41, %v546_v5 }
   0xe   :  { %v411_v53 = vpack.c.bf16 %v197_v44, %v196_v43  ;;  %v198_v54 = vmax.f32 %v182_v45, 0.0  ;;  %v199_v55 = vmax.f32 %v183_v46, 0.0  ;;  %v358_v56 = vunpack.c.l.bf16 %v450_v42  ;;  %v460_v45 = vld [vmem:[%s670_s3 + $0x30] sm:$0xff]  }
   0xf   :  { %v168_v57 = vadd.f32 %v564_v13, %v145_v50  ;;  %v169_v58 = vadd.f32 %v564_v13, %v146_v51  ;;  %v359_v59 = vunpack.c.h.bf16 %v450_v42  ;;  %v390_v60 = vunpack.c.l.bf16 %v457_v47 }
  0x10   :  { %412 = vst [vmem:[#allocation2] sm:$0xff] %v411_v53   ;;  %v416_v61 = vpack.c.bf16 %v199_v55, %v198_v54  ;;  %v69_v62 = vmul.f32 %v358_v56, %v538_v1  ;;  %v391_v63 = vunpack.c.h.bf16 %v457_v47  ;;  %v362_v0 = vunpack.c.l.bf16 %v451_v52  ;;  %v454_v54 = vld [vmem:[%s667_s0 + $0x38] sm:$0xff]  }
  0x11   :  { %v184_v2 = vadd.f32 %v168_v57, %v90_v48  ;;  %v185_v3 = vadd.f32 %v169_v58, %v91_v49  ;;  %v70_v4 = vmul.f32 %v359_v59, %v538_v1  ;;  %v147_v7 = vmul.f32 %v390_v60, %v546_v5 }
  0x12   :  { %462 = vst [vmem:[#allocation2 + $0x8] sm:$0xff] %v416_v61   ;;  %v92_v9 = vadd.f32 %v551_v6, %v69_v62  ;;  %v148_v10 = vmul.f32 %v391_v63, %v546_v5  ;;  %v363_v11 = vunpack.c.h.bf16 %v451_v52  ;;  %v71_v12 = vmul.f32 %v362_v0, %v538_v1 }
  0x13   :  { %v200_v15 = vmax.f32 %v184_v2, 0.0  ;;  %v201_v16 = vmax.f32 %v185_v3, 0.0  ;;  %v93_v17 = vadd.f32 %v551_v6, %v70_v4  ;;  %v170_v18 = vadd.f32 %v564_v13, %v147_v7  ;;  %v461_v4 = vld [vmem:[%s670_s3 + $0x38] sm:$0xff]   ;;  %s494_s3 = smov [#allocation2]  }
  0x14   :  { %v171_v19 = vadd.f32 %v564_v13, %v148_v10  ;;  %v72_v20 = vmul.f32 %v363_v11, %v538_v1  ;;  %v94_v21 = vadd.f32 %v551_v6, %v71_v12  ;;  %v394_v22 = vunpack.c.l.bf16 %v458_v8  ;;  %s297_s7 = sshll.u32 %s494_s3, 4  ;;  %s298_s7 = int_to_ptr.vmem [resolvable:$true] %s297_s7 }
  0x15   :  { %v421_v24 = vpack.c.bf16 %v201_v16, %v200_v15  ;;  %v186_v25 = vadd.f32 %v170_v18, %v92_v9  ;;  %v395_v26 = vunpack.c.h.bf16 %v458_v8  ;;  %v366_v27 = vunpack.c.l.bf16 %v452_v14  ;;  %s472_s8 = scalar_lea.vmem %s298_s7, 1024  ;;  %p477_p1 = scmp.lt.s32.totalorder %s298_s7, %s298_s7 }
  0x16   :  { %v187_v28 = vadd.f32 %v171_v19, %v93_v17  ;;  %v95_v29 = vadd.f32 %v551_v6, %v72_v20  ;;  %v149_v30 = vmul.f32 %v394_v22, %v546_v5  ;;  %v367_v31 = vunpack.c.h.bf16 %v452_v14  ;;  %p473_p0 = scmp.ne.s32.totalorder %s298_s7, %s472_s8  ;;  %p478_p2 = scmp.lt.s32.totalorder %s472_s8, %s472_s8 }
  0x17   :  { %463 = vst [vmem:[#allocation2 + $0x10] sm:$0xff] %v421_v24   ;;  %v202_v33 = vmax.f32 %v186_v25, 0.0  ;;  %v150_v34 = vmul.f32 %v395_v26, %v546_v5  ;;  %v73_v35 = vmul.f32 %v366_v27, %v538_v1  ;;  %v398_v36 = vunpack.c.l.bf16 %v459_v23 }
  0x18   :  { %v203_v37 = vmax.f32 %v187_v28, 0.0  ;;  %v172_v38 = vadd.f32 %v564_v13, %v149_v30  ;;  %v74_v39 = vmul.f32 %v367_v31, %v538_v1  ;;  %v399_v40 = vunpack.c.h.bf16 %v459_v23  ;;  %p479_p3 = por %p478_p2, %p477_p1 }
  0x19   :  { %v173_v41 = vadd.f32 %v564_v13, %v150_v34  ;;  %v96_v42 = vadd.f32 %v551_v6, %v73_v35  ;;  %v151_v43 = vmul.f32 %v398_v36, %v546_v5  ;;  %v370_v44 = vunpack.c.l.bf16 %v453_v32 }
  0x1a   :  { %v426_v46 = vpack.c.bf16 %v203_v37, %v202_v33  ;;  %v188_v47 = vadd.f32 %v172_v38, %v94_v21  ;;  %v97_v48 = vadd.f32 %v551_v6, %v74_v39  ;;  %v152_v49 = vmul.f32 %v399_v40, %v546_v5  ;;  %p480_p4 = pnand %p479_p3, %p473_p0 }
  0x1b   :  { %v189_v50 = vadd.f32 %v173_v41, %v95_v29  ;;  %v174_v51 = vadd.f32 %v564_v13, %v151_v43  ;;  %v371_v52 = vunpack.c.h.bf16 %v453_v32  ;;  %v75_v53 = vmul.f32 %v370_v44, %v538_v1 }
  0x1c   :  { %464 = vst [vmem:[#allocation2 + $0x18] sm:$0xff] %v426_v46   ;;  %v204_v55 = vmax.f32 %v188_v47, 0.0  ;;  %v175_v56 = vadd.f32 %v564_v13, %v152_v49  ;;  %v402_v57 = vunpack.c.l.bf16 %v460_v45  ;;  %v403_v58 = vunpack.c.h.bf16 %v460_v45 }
  0x1d   :  { %v205_v59 = vmax.f32 %v189_v50, 0.0  ;;  %v190_v60 = vadd.f32 %v174_v51, %v96_v42  ;;  %v76_v61 = vmul.f32 %v371_v52, %v538_v1  ;;  %v98_v62 = vadd.f32 %v551_v6, %v75_v53 }
  0x1e   :  { %v191_v63 = vadd.f32 %v175_v56, %v97_v48  ;;  %v153_v0 = vmul.f32 %v402_v57, %v546_v5  ;;  %v154_v2 = vmul.f32 %v403_v58, %v546_v5  ;;  %v374_v3 = vunpack.c.l.bf16 %v454_v54 }
  0x1f   :  { %v431_v7 = vpack.c.bf16 %v205_v59, %v204_v55  ;;  %v206_v8 = vmax.f32 %v190_v60, 0.0  ;;  %v99_v9 = vadd.f32 %v551_v6, %v76_v61  ;;  %v375_v10 = vunpack.c.h.bf16 %v454_v54 }
  0x20   :  { %v207_v11 = vmax.f32 %v191_v63, 0.0  ;;  %v176_v12 = vadd.f32 %v564_v13, %v153_v0  ;;  %v177_v14 = vadd.f32 %v564_v13, %v154_v2  ;;  %v77_v15 = vmul.f32 %v374_v3, %v538_v1 }
  0x21   :  { %465 = vst [vmem:[#allocation2 + $0x20] sm:$0xff] %v431_v7   ;;  %v78_v16 = vmul.f32 %v375_v10, %v538_v1  ;;  %v406_v17 = vunpack.c.l.bf16 %v461_v4  ;;  %v407_v18 = vunpack.c.h.bf16 %v461_v4 }
  0x22   :  { %v436_v19 = vpack.c.bf16 %v207_v11, %v206_v8  ;;  %v192_v20 = vadd.f32 %v176_v12, %v98_v62  ;;  %v193_v21 = vadd.f32 %v177_v14, %v99_v9  ;;  %v100_v22 = vadd.f32 %v551_v6, %v77_v15 }
  0x23   :  { %v101_v23 = vadd.f32 %v551_v6, %v78_v16  ;;  %v155_v24 = vmul.f32 %v406_v17, %v546_v5  ;;  %v156_v25 = vmul.f32 %v407_v18, %v546_v5 }
  0x24   :  { %466 = vst [vmem:[#allocation2 + $0x28] sm:$0xff] %v436_v19   ;;  %v208_v26 = vmax.f32 %v192_v20, 0.0  ;;  %v209_v27 = vmax.f32 %v193_v21, 0.0 }
  0x25   :  { %v178_v28 = vadd.f32 %v564_v13, %v155_v24  ;;  %v179_v1 = vadd.f32 %v564_v13, %v156_v25 }
  0x26   :  { %v441_v29 = vpack.c.bf16 %v209_v27, %v208_v26 }
  0x27   :  { %v194_v30 = vadd.f32 %v178_v28, %v100_v22  ;;  %v195_v31 = vadd.f32 %v179_v1, %v101_v23 }
  0x28   :  { %467 = vst [vmem:[#allocation2 + $0x30] sm:$0xff] %v441_v29  }
  0x29   :  { %v210_v32 = vmax.f32 %v194_v30, 0.0  ;;  %v211_v33 = vmax.f32 %v195_v31, 0.0 }
  0x2b   :  { %v446_v6 = vpack.c.bf16 %v211_v33, %v210_v32 }
  0x2d   :  { %468 = vst [vmem:[#allocation2 + $0x38] sm:$0xff] %v446_v6  }
  0x2e   :  { %483 = shalt.err (!%p480_p4)
}
  0x2f   :  { %s495_s9 = smov 64   ;;  %s496_s4 = smov 4  }
  0x30   :  { %303 = dma.vmem_to_hbm [thread:$0]  %s298_s7, 1024, %s673_s6, [#allocation3], %s495_s9, %s495_s9, %s496_s4  }
  0x31   :  { %492 = dma.done.wait [#allocation3], 1024  }
  0x32   :  { %493 = vsyncadd [#allocation3], 4294966272 }
  0x33   :  { %307 = vsyncpa [#allocation3], 1 }

// kernel: bottleneck_forward.8
= control target key start
LH: loop header
LB: loop body
LE: loop exit
PB: predicated region body
PF: predicated region fallthrough
CT: control target
= control target key end

     0   :  { %s2593_s12 = smov 0   ;;  %s2595_s13 = smov 0   ;;  %s2987_s0 = inlined_call_operand.vmem [shape: bf16[2,9,2,9,256], index: 0, kind: input, shape index: {}]   ;;  %s2988_s1 = inlined_call_operand.vmem [shape: bf16[3,384,128], index: 1, kind: input, shape index: {}]   ;;  %s2989_s2 = inlined_call_operand.vmem [shape: bf16[2,8,8,128], index: 2, kind: output, shape index: {0}]   ;;  %s2990_s3 = inlined_call_operand.vmem [shape: f32[2,1,2,128], index: 3, kind: output, shape index: {1}]  }
   0x1   :  { %s2597_s14 = smov 0  }
   0x2 LB: > { %s26_s15 = sadd.s32 1, %s2567_s13  ;;  %p1893_p0 = scmp.ge.s32.totalorder %s2571_s14, 1  ;;  %s2571_s14 = sphi %s2597_s14, %s14_s14   ;;  %s2567_s13 = sphi %s2595_s13, %s2994_s13   ;;  %s2563_s12 = sphi %s2593_s12, %s2993_s12  }
   0x3   : > { %p28_p1 = scmp.ge.s32.totalorder %s26_s15, 2  ;;  %p156_p2 = scmp.lt.s32.totalorder %s2571_s14, 3 }
   0x5   : > { %s2996_s15 = smov (%p28_p1, %s26_s15), 0  ;;  %p157_p3 = pnand %p1893_p0, %p156_p2 }
   0x7   : > { %160 = sbr.rel (%p157_p3) target bundleno = 355 (0x163), region = 28 }
   0xc   : > { %v2453_v0 = vld [vmem:[%s2988_s1 + $0x138] sm:$0xff]   ;;  %v2456_v3 = vld [vmem:[%s2988_s1 + $0x130] sm:$0xff]   ;;  %v2459_v6 = vld [vmem:[%s2988_s1 + $0x128] sm:$0xff]   ;;  %p191_p4 = scmp.lt.s32.totalorder %s2563_s12, 1 }
   0xd   : > { %v2454_v1 = vld [vmem:[%s2988_s1 + $0xf8] sm:$0xff]   ;;  %2200 = vmatprep.subr.bf16.mxu0 %v2453_v0  ;;  %v2457_v4 = vld [vmem:[%s2988_s1 + $0xf0] sm:$0xff]   ;;  %v2460_v7 = vld [vmem:[%s2988_s1 + $0xe8] sm:$0xff]  }
   0xe   : > { %v2455_v2 = vld [vmem:[%s2988_s1 + $0x178] sm:$0xff]   ;;  %2201 = vmatpush3.bf16.msra.mxu0 %v2454_v1  ;;  %v2458_v5 = vld [vmem:[%s2988_s1 + $0x170] sm:$0xff]   ;;  %v2461_v8 = vld [vmem:[%s2988_s1 + $0x168] sm:$0xff]   ;;  %s2998_s12 = smov (!%p191_p4, %s2563_s12), 1 }
   0xf   : > { %2356 = vmatprep.subr.bf16.mxu1 %v2455_v2  ;;  %2202 = vmatprep.subr.bf16.mxu0 %v2456_v3  ;;  %v2462_v9 = vld [vmem:[%s2988_s1 + $0x120] sm:$0xff]   ;;  %v2465_v12 = vld [vmem:[%s2988_s1 + $0x118] sm:$0xff]   ;;  %v2468_v15 = vld [vmem:[%s2988_s1 + $0x110] sm:$0xff]   ;;  %s2428_s25 = smul.u32 288, %s2998_s12  ;;  %s1897_s6 = sshll.u32 %s2998_s12, 1 }
  0x10   : > { %2357 = vmatpush3.bf16.msra.mxu1 %v2455_v2  ;;  %v2463_v10 = vld [vmem:[%s2988_s1 + $0xe0] sm:$0xff]   ;;  %v2467_v13 = vld [vmem:[%s2988_s1 + $0x158] sm:$0xff]   ;;  %v2470_v16 = vld [vmem:[%s2988_s1 + $0x150] sm:$0xff]   ;;  %s212_s10 = scalar_lea.vmem %s2990_s3, %s1897_s6 }
  0x11   : > { %2358 = vmatprep.subr.bf16.mxu1 %v2458_v5  ;;  %v2464_v11 = vld [vmem:[%s2988_s1 + $0x160] sm:$0xff]   ;;  %v2466_v14 = vld [vmem:[%s2988_s1 + $0xd8] sm:$0xff]   ;;  %v2469_v17 = vld [vmem:[%s2988_s1 + $0xd0] sm:$0xff]   ;;  %s2681_s9 = scalar_lea.vmem %s2987_s0, %s2428_s25 }
  0x12   : > { %2203 = vmatpush3.bf16.msra.mxu0 %v2457_v4  ;;  %v2471_v18 = vld [vmem:[%s2988_s1 + $0x108] sm:$0xff]   ;;  %v2474_v21 = vld [vmem:[%s2988_s1 + $0x100] sm:$0xff]   ;;  %v1914_v22 = vld [vmem:[%s2681_s9 + $0x14] sm:$0xf] }
  0x13   : > { %2204 = vmatprep.subr.bf16.mxu0 %v2459_v6  ;;  %v2472_v19 = vld [vmem:[%s2988_s1 + $0xc8] sm:$0xff]   ;;  %v1915_v23 = vld [vmem:[%s2681_s9 + $0x34] sm:$0xf]  ;;  %v1906_v24 = vld [vmem:[%s2681_s9 + $0x10] sm:$0xf] }
  0x14   : > { %2359 = vmatpush3.bf16.msra.mxu1 %v2458_v5  ;;  %v2473_v20 = vld [vmem:[%s2988_s1 + $0x148] sm:$0xff]   ;;  %v2475_v25 = vld [vmem:[%s2988_s1 + $0xc0] sm:$0xff]   ;;  %v1987_v26 = vcombine.low %v1914_v22, %v1915_v23  ;;  %v1907_v27 = vld [vmem:[%s2681_s9 + $0x30] sm:$0xf] }
  0x15   : > { %2360 = vmatprep.subr.bf16.mxu1 %v2461_v8  ;;  %v2476_v28 = vld [vmem:[%s2988_s1 + $0x140] sm:$0xff]   ;;  %v1922_v29 = vld [vmem:[%s2681_s9 + $0x18] sm:$0x1]  ;;  %v1908_v34 = vld [vmem:[%s2681_s9 + $0x50] sm:$0xf]  ;;  %v1986_v43 = vcombine.low %v1906_v24, %v1907_v27 }
  0x16   : > { %2205 = vmatpush3.bf16.msra.mxu0 %v2460_v7  ;;  %v1923_v30 = vld [vmem:[%s2681_s9 + $0x38] sm:$0x1]  ;;  %806 = vmatprep.mubr.bf16.mxu0 %v1987_v26  ;;  %v1930_v32 = vcombine.low %v1906_v24, %v1922_v29  ;;  %v1909_v35 = vld [vmem:[%s2681_s9 + $0x70] sm:$0xf]  ;;  %v2487_v59 = vld [vmem:[%s2988_s1 + $0x68] sm:$0xff]  }
  0x17   : > { %2206 = vmatprep.subr.bf16.mxu0 %v2462_v9  ;;  %v2477_v31 = vld [vmem:[%s2988_s1 + $0x78] sm:$0xff]   ;;  %v1931_v33 = vcombine.low %v1907_v27, %v1923_v30  ;;  %v2484_v53 = vld [vmem:[%s2988_s1 + $0x70] sm:$0xff]   ;;  %v1989_v4 = vcombine.low %v1908_v34, %v1909_v35  ;;  %v2488_v5 = vld [vmem:[%s2988_s1 + $0x28] sm:$0xff]  }
  0x18   : > { %2361 = vmatpush3.bf16.msra.mxu1 %v2461_v8  ;;  %v1924_v36 = vld [vmem:[%s2681_s9 + $0x58] sm:$0x1]  ;;  %v478_v37 = vshrl.u32 %v1930_v32, 16  ;;  %v480_v38 = vshll.u32 %v1930_v32, 16  ;;  %v2485_v58 = vld [vmem:[%s2988_s1 + $0x30] sm:$0xff]   ;;  %v2489_v6 = vld [vmem:[%s2988_s1 + $0xa8] sm:$0xff]  }
  0x19   : > { %2362 = vmatprep.subr.bf16.mxu1 %v2464_v11  ;;  %v485_v39 = vshrl.u32 %v1931_v33, 16  ;;  %v487_v40 = vshll.u32 %v1931_v33, 16  ;;  %v2480_v41 = vld [vmem:[%s2988_s1 + $0x38] sm:$0xff]   ;;  %v1932_v44 = vcombine.low %v1908_v34, %v1924_v36  ;;  %v1916_v61 = vld [vmem:[%s2681_s9 + $0x54] sm:$0xf]  ;;  %v2490_v7 = vld [vmem:[%s2988_s1 + $0x60] sm:$0xff]  }
  0x1a   : > { %2207 = vmatpush3.bf16.msra.mxu0 %v2463_v10  ;;  %v1925_v42 = vld [vmem:[%s2681_s9 + $0x78] sm:$0x1]  ;;  %v482_v47 = vrot.slane %v480_v38, 1  ;;  %v1917_v62 = vld [vmem:[%s2681_s9 + $0x74] sm:$0xf]  ;;  %v2491_v8 = vld [vmem:[%s2988_s1 + $0x20] sm:$0xff]  }
  0x1b   : > { %2208 = vmatprep.subr.bf16.mxu0 %v2465_v12  ;;  %v1933_v45 = vcombine.low %v1909_v35, %v1925_v42  ;;  %v2483_v46 = vld [vmem:[%s2988_s1 + $0xb8] sm:$0xff]   ;;  %v489_v48 = vrot.slane %v487_v40, 1  ;;  %v492_v49 = vshrl.u32 %v1932_v44, 16  ;;  %v494_v50 = vshll.u32 %v1932_v44, 16  ;;  %v2486_v3 = vld [vmem:[%s2988_s1 + $0xb0] sm:$0xff]  }
  0x1c   : > { %2363 = vmatpush3.bf16.msra.mxu1 %v2464_v11  ;;  %v483_v54 = vor.u32 %v482_v47, %v478_v37  ;;  %v1990_v1 = vcombine.low %v1916_v61, %v1917_v62  ;;  %v1918_v9 = vld [vmem:[%s2681_s9 + $0x94] sm:$0xf]  ;;  %v1910_v12 = vld [vmem:[%s2681_s9 + $0x90] sm:$0xf]  ;;  %v1928_v27 = vld [vmem:[%s2681_s9 + $0xd8] sm:$0x1] }
  0x1d   : > { %2364 = vmatprep.subr.bf16.mxu1 %v2467_v13  ;;  %v499_v51 = vshrl.u32 %v1933_v45, 16  ;;  %v501_v52 = vshll.u32 %v1933_v45, 16  ;;  %v490_v55 = vor.u32 %v489_v48, %v485_v39  ;;  %v496_v56 = vrot.slane %v494_v50, 1  ;;  %v1919_v10 = vld [vmem:[%s2681_s9 + $0xb4] sm:$0xf]  ;;  %v2496_v29 = vld [vmem:[%s2988_s1 + $0x18] sm:$0xff]  }
  0x1e   : > { %2209 = vmatpush3.bf16.msra.mxu0 %v2466_v14  ;;  %v1993_v11 = vcombine.low %v1918_v9, %v1919_v10  ;;  %v1926_v14 = vld [vmem:[%s2681_s9 + $0x98] sm:$0x1]  ;;  %v1912_v22 = vld [vmem:[%s2681_s9 + $0xd0] sm:$0xf]  ;;  %v1920_v44 = vld [vmem:[%s2681_s9 + $0xd4] sm:$0xf] }
  0x1f   : > { %2210 = vmatprep.subr.bf16.mxu0 %v2468_v15  ;;  %v503_v57 = vrot.slane %v501_v52, 1  ;;  %v1988_v60 = vcombine.low %v483_v54, %v490_v55  ;;  %v497_v63 = vor.u32 %v496_v56, %v492_v49  ;;  %v1927_v15 = vld [vmem:[%s2681_s9 + $0xb8] sm:$0x1]  ;;  %v1913_v26 = vld [vmem:[%s2681_s9 + $0xf0] sm:$0xf]  ;;  %v2503_v48 = vld [vmem:[%s2988_s1 + $0x48] sm:$0xff]  }
  0x20   : > { %2365 = vmatpush3.bf16.msra.mxu1 %v2467_v13  ;;  %v1911_v13 = vld [vmem:[%s2681_s9 + $0xb0] sm:$0xf]  ;;  %v1929_v30 = vld [vmem:[%s2681_s9 + $0xf8] sm:$0x1]  ;;  %v1921_v47 = vld [vmem:[%s2681_s9 + $0xf4] sm:$0xf] }
  0x21   : > { %2366 = vmatprep.subr.bf16.mxu1 %v2470_v16  ;;  %v504_v0 = vor.u32 %v503_v57, %v499_v51  ;;  %2372 = vmatprep.mubr.bf16.mxu1 %v1988_v60  ;;  %v1992_v24 = vcombine.low %v1910_v12, %v1911_v13  ;;  %v1937_v33 = vcombine.low %v1913_v26, %v1929_v30  ;;  %v2499_v34 = vld [vmem:[%s2988_s1 + $0x98] sm:$0xff]   ;;  %v2500_v35 = vld [vmem:[%s2988_s1 + $0x50] sm:$0xff]   ;;  %v2504_v55 = vld [vmem:[%s2988_s1 + $0x8] sm:$0xff]  }
  0x22   : > { %2211 = vmatpush3.bf16.msra.mxu0 %v2469_v17  ;;  %v1935_v17 = vcombine.low %v1911_v13, %v1927_v15  ;;  %v1996_v50 = vcombine.low %v1920_v44, %v1921_v47  ;;  %v2502_v52 = vld [vmem:[%s2988_s1 + $0x90] sm:$0xff]   ;;  %v2506_v56 = vld [vmem:[%s2988_s1 + $0x40] sm:$0xff]   ;;  %v2505_v57 = vld [vmem:[%s2988_s1 + $0x88] sm:$0xff]  }
  0x23   : > { %2212 = vmatprep.subr.bf16.mxu0 %v2471_v18  ;;  %v1991_v2 = vcombine.low %v497_v63, %v504_v0  ;;  %v2495_v18 = vld [vmem:[%s2988_s1 + $0x58] sm:$0xff]   ;;  %v527_v40 = vshrl.u32 %v1937_v33, 16  ;;  %v2507_v60 = vld [vmem:[%s2988_s1] sm:$0xff]   ;;  %v236_v13 = vld [vmem:[%s2681_s9 + $0x48] sm:$0x1] }
  0x24   : > { %2367 = vmatpush3.bf16.msra.mxu1 %v2470_v16  ;;  %v1934_v16 = vcombine.low %v1910_v12, %v1926_v14  ;;  %v515_v23 = vshll.u32 %v1935_v17, 16  ;;  %v218_v62 = vld [vmem:[%s2681_s9] sm:$0xf]  ;;  %v2513_v12 = vld [vmem:[%s2988_s1 + $0x238] sm:$0xff]   ;;  %v237_v14 = vld [vmem:[%s2681_s9 + $0x68] sm:$0x1] }
  0x25   : > { %2368 = vmatprep.subr.bf16.mxu1 %v2473_v20  ;;  %v2508_v63 = vld [vmem:[%s2988_s1 + $0x80] sm:$0xff]  }
  0x26   : > { %2213 = vmatpush3.bf16.msra.mxu0 %v2472_v19  ;;  %v2492_v19 = vld [vmem:[%s2988_s1 + $0xa0] sm:$0xff]   ;;  %v517_v32 = vrot.slane %v515_v23, 1 }
  0x27   : > { %2214 = vmatprep.subr.bf16.mxu0 %v2474_v21  ;;  %v506_v21 = vshrl.u32 %v1934_v16, 16  ;;  %v219_v0 = vld [vmem:[%s2681_s9 + $0x20] sm:$0xf]  ;;  %v228_v30 = vld [vmem:[%s2681_s9 + $0x44] sm:$0xf] }
  0x28   : > { %2369 = vmatpush3.bf16.msra.mxu1 %v2473_v20  ;;  %v508_v20 = vshll.u32 %v1934_v16, 16  ;;  %v221_v9 = vld [vmem:[%s2681_s9 + $0x60] sm:$0xf]  ;;  %v230_v44 = vld [vmem:[%s2681_s9 + $0x84] sm:$0xf] }
  0x29   : > { %2370 = vmatprep.subr.bf16.mxu1 %v2476_v28 }
  0x2a   : > { %2215 = vmatpush3.bf16.msra.mxu0 %v2475_v25  ;;  %v513_v25 = vshrl.u32 %v1935_v17, 16 }
  0x2b   : > { %2252 = vmatprep.subr.bf16.mxu0 %v2477_v31  ;;  %v1936_v31 = vcombine.low %v1912_v22, %v1928_v27  ;;  %v2517_v27 = vld [vmem:[%s2988_s1 + $0x1b0] sm:$0xff]  }
  0x2c   : > { %2371 = vmatpush3.bf16.msra.mxu1 %v2476_v28  ;;  %v510_v28 = vrot.slane %v508_v20, 1  ;;  %v518_v39 = vor.u32 %v517_v32, %v513_v25  ;;  %v2516_v20 = vld [vmem:[%s2988_s1 + $0x1f0] sm:$0xff]   ;;  %v2519_v32 = vld [vmem:[%s2988_s1 + $0x1e8] sm:$0xff]  }
  0x2d   : > { %807 = vmatmul.mubr.bf16.vlgmr.msra.gmra.mxu0 %v1986_v43  ;;  %2380 = vmatprep.subr.bf16.mxu1 %v2483_v46  ;;  %v520_v37 = vshrl.u32 %v1936_v31, 16  ;;  %v522_v38 = vshll.u32 %v1936_v31, 16  ;;  %v2501_v43 = vld [vmem:[%s2988_s1 + $0x10] sm:$0xff]   ;;  %v229_v31 = vld [vmem:[%s2681_s9 + $0x64] sm:$0xf] }
  0x2e   : > { %2253 = vmatpush3.bf16.msra.mxu0 %v2480_v41  ;;  %814 = vmatprep.mubr.bf16.mxu0 %v1990_v1  ;;  %v511_v36 = vor.u32 %v510_v28, %v506_v21  ;;  %v529_v41 = vshll.u32 %v1937_v33, 16  ;;  %v2509_v1 = vld [vmem:[%s2988_s1 + $0x1f8] sm:$0xff]  }
  0x2f   : > { %2254 = vmatprep.subr.bf16.mxu0 %v2484_v53  ;;  %2373 = vmatmul.mubr.bf16.vlgmr.msra.gmra.mxu1 %v1991_v2  ;;  %v524_v42 = vrot.slane %v522_v38, 1  ;;  %v1995_v53 = vcombine.low %v1912_v22, %v1913_v26  ;;  %v234_v2 = vld [vmem:[%s2681_s9 + $0x8] sm:$0x1] }
  0x30   : > { %2381 = vmatpush3.bf16.msra.mxu1 %v2483_v46  ;;  %v1994_v45 = vcombine.low %v511_v36, %v518_v39  ;;  %v531_v46 = vrot.slane %v529_v41, 1 }
  0x31   : > { %2382 = vmatprep.subr.bf16.mxu1 %v2486_v3  ;;  %v525_v49 = vor.u32 %v524_v42, %v520_v37  ;;  %v2518_v42 = vld [vmem:[%s2988_s1 + $0x230] sm:$0xff]  }
  0x32   : > { %2255 = vmatpush3.bf16.msra.mxu0 %v2485_v58  ;;  %2376 = vmatprep.mubr.bf16.mxu1 %v1994_v45  ;;  %v532_v51 = vor.u32 %v531_v46, %v527_v40  ;;  %v226_v58 = vld [vmem:[%s2681_s9 + $0x4] sm:$0xf]  ;;  %v2521_v46 = vld [vmem:[%s2988_s1 + $0x228] sm:$0xff]  }
  0x33   : > { %2256 = vmatprep.subr.bf16.mxu0 %v2487_v59  ;;  %v227_v59 = vld [vmem:[%s2681_s9 + $0x24] sm:$0xf] }
  0x34   : > { %2383 = vmatpush3.bf16.msra.mxu1 %v2486_v3  ;;  %v1997_v54 = vcombine.low %v525_v49, %v532_v51  ;;  %v2023_v61 = vcombine.low %v226_v58, %v227_v59  ;;  %v235_v3 = vld [vmem:[%s2681_s9 + $0x28] sm:$0x1]  ;;  %v2522_v40 = vld [vmem:[%s2988_s1 + $0x1e0] sm:$0xff]   ;;  %v2528_v59 = vld [vmem:[%s2988_s1 + $0x198] sm:$0xff]  }
  0x35   : > { %815 = vmatmul.mubr.bf16.gmra.mxu0 %v1989_v4  ;;  %2384 = vmatprep.subr.bf16.mxu1 %v2489_v6  ;;  %v1898_v4 = vcombine.low %v218_v62, %v234_v2  ;;  %v231_v45 = vld [vmem:[%s2681_s9 + $0xa4] sm:$0xf]  ;;  %v223_v49 = vld [vmem:[%s2681_s9 + $0xa0] sm:$0xf]  ;;  %v239_v51 = vld [vmem:[%s2681_s9 + $0xa8] sm:$0x1] }
  0x36   : > { %2257 = vmatpush3.bf16.msra.mxu0 %v2488_v5  ;;  %822 = vmatprep.mubr.bf16.mxu0 %v1993_v11  ;;  %v2022_v5 = vcombine.low %v218_v62, %v219_v0  ;;  %v2029_v47 = vcombine.low %v230_v44, %v231_v45  ;;  %v224_v62 = vld [vmem:[%s2681_s9 + $0xc0] sm:$0xf]  ;;  %v2532_v2 = vld [vmem:[%s2988_s1 + $0x1d0] sm:$0xff]   ;;  %v2077_v44 = vld [vmem:[%s2681_s9 + $0x88] sm:$0x1] }
  0x37   : > { %2258 = vmatprep.subr.bf16.mxu0 %v2490_v7  ;;  %2377 = vmatmul.mubr.bf16.gmra.mxu1 %v1997_v54  ;;  %v1899_v7 = vcombine.low %v219_v0, %v235_v3  ;;  %v283_v10 = vshrl.u32 %v1898_v4, 16  ;;  %v285_v11 = vshll.u32 %v1898_v4, 16  ;;  %v2527_v54 = vld [vmem:[%s2988_s1 + $0x1d8] sm:$0xff]   ;;  %v225_v0 = vld [vmem:[%s2681_s9 + $0xe0] sm:$0xf] }
  0x38   : > { %2385 = vmatpush3.bf16.msra.mxu1 %v2489_v6  ;;  %v2510_v6 = vld [vmem:[%s2988_s1 + $0x1b8] sm:$0xff]   ;;  %v241_v4 = vld [vmem:[%s2681_s9 + $0xe8] sm:$0x1] }
  0x39   : > { %2386 = vmatprep.subr.bf16.mxu1 %v2492_v19  ;;  %v290_v15 = vshrl.u32 %v1899_v7, 16  ;;  %v292_v16 = vshll.u32 %v1899_v7, 16 }
  0x3a   : > { %2259 = vmatpush3.bf16.msra.mxu0 %v2491_v8  ;;  %v220_v8 = vld [vmem:[%s2681_s9 + $0x40] sm:$0xf] }
  0x3b   : > { %2260 = vmatprep.subr.bf16.mxu0 %v2495_v18  ;;  %v1900_v17 = vcombine.low %v220_v8, %v236_v13  ;;  %v1901_v18 = vcombine.low %v221_v9, %v237_v14  ;;  %v294_v21 = vrot.slane %v292_v16, 1  ;;  %v2025_v38 = vcombine.low %v220_v8, %v221_v9 }
  0x3c   : > { %2387 = vmatpush3.bf16.msra.mxu1 %v2492_v19  ;;  %v287_v19 = vrot.slane %v285_v11, 1  ;;  %v1905_v8 = vcombine.low %v225_v0, %v241_v4 }
  0x3d   : > { %823 = vmatmul.mubr.bf16.gmra.mxu0 %v1992_v24  ;;  %2388 = vmatprep.subr.bf16.mxu1 %v2499_v34  ;;  %v297_v22 = vshrl.u32 %v1900_v17, 16  ;;  %v299_v23 = vshll.u32 %v1900_v17, 16  ;;  %v304_v24 = vshrl.u32 %v1901_v18, 16  ;;  %v306_v26 = vshll.u32 %v1901_v18, 16  ;;  %v233_v18 = vld [vmem:[%s2681_s9 + $0xe4] sm:$0xf] }
  0x3e   : > { %2261 = vmatpush3.bf16.msra.mxu0 %v2496_v29  ;;  %830 = vmatprep.mubr.bf16.mxu0 %v1996_v50  ;;  %v288_v25 = vor.u32 %v287_v19, %v283_v10  ;;  %v295_v28 = vor.u32 %v294_v21, %v290_v15  ;;  %v238_v50 = vld [vmem:[%s2681_s9 + $0x88] sm:$0x1]  ;;  %v332_v13 = vshrl.u32 %v1905_v8, 16  ;;  %v334_v14 = vshll.u32 %v1905_v8, 16  ;;  %v232_v15 = vld [vmem:[%s2681_s9 + $0xc4] sm:$0xf] }
  0x3f   : > { %2262 = vmatprep.subr.bf16.mxu0 %v2500_v35  ;;  %v301_v29 = vrot.slane %v299_v23, 1  ;;  %v308_v33 = vrot.slane %v306_v26, 1  ;;  %v2520_v35 = vld [vmem:[%s2988_s1 + $0x1a8] sm:$0xff]   ;;  %v2032_v21 = vcombine.low %v232_v15, %v233_v18  ;;  %v2538_v26 = vld [vmem:[%s2988_s1 + $0x1c0] sm:$0xff]  }
  0x40   : > { %2389 = vmatpush3.bf16.msra.mxu1 %v2499_v34  ;;  %v2026_v34 = vcombine.low %v228_v30, %v229_v31  ;;  %v2024_v36 = vcombine.low %v288_v25, %v295_v28  ;;  %v2535_v19 = vld [vmem:[%s2988_s1 + $0x1c8] sm:$0xff]   ;;  %v2066_v31 = vld [vmem:[%s2681_s9 + $0x24] sm:$0xf]  ;;  %v2064_v8 = vld [vmem:[%s2681_s9 + $0xe0] sm:$0xf] }
  0x41   : > { %2390 = vmatprep.subr.bf16.mxu1 %v2502_v52  ;;  %v302_v37 = vor.u32 %v301_v29, %v297_v22  ;;  %v309_v39 = vor.u32 %v308_v33, %v304_v24  ;;  %v2031_v22 = vcombine.low %v224_v62, %v225_v0  ;;  %v2536_v23 = vld [vmem:[%s2988_s1 + $0x188] sm:$0xff]   ;;  %v2539_v29 = vld [vmem:[%s2988_s1 + $0x180] sm:$0xff]  }
  0x42   : > { %2263 = vmatpush3.bf16.msra.mxu0 %v2501_v43  ;;  %2396 = vmatprep.mubr.bf16.mxu1 %v2024_v36  ;;  %v2523_v43 = vld [vmem:[%s2988_s1 + $0x1a0] sm:$0xff]   ;;  %v2537_v30 = vld [vmem:[%s2988_s1 + $0x208] sm:$0xff]  }
  0x43   : > { %2264 = vmatprep.subr.bf16.mxu0 %v2503_v48  ;;  %v2027_v41 = vcombine.low %v302_v37, %v309_v39  ;;  %v222_v48 = vld [vmem:[%s2681_s9 + $0x80] sm:$0xf]  ;;  %v2074_v36 = vld [vmem:[%s2681_s9 + $0x28] sm:$0x1] }
  0x44   : > { %2391 = vmatpush3.bf16.msra.mxu1 %v2502_v52  ;;  %v1902_v52 = vcombine.low %v222_v48, %v238_v50  ;;  %v2058_v33 = vld [vmem:[%s2681_s9 + $0x20] sm:$0xf]  ;;  %v2075_v37 = vld [vmem:[%s2681_s9 + $0x48] sm:$0x1] }
  0x45   : > { %831 = vmatmul.mubr.bf16.gmra.mxu0 %v1995_v53  ;;  %2392 = vmatprep.subr.bf16.mxu1 %v2505_v57  ;;  %v1903_v53 = vcombine.low %v223_v49, %v239_v51  ;;  %v2081_v15 = vld [vmem:[%s2681_s9 + $0x108] sm:$0x1] }
  0x46   : > { %2265 = vmatpush3.bf16.msra.mxu0 %v2504_v55  ;;  %1104 = vmatprep.mubr.bf16.mxu0 %v2023_v61  ;;  %v313_v55 = vshll.u32 %v1902_v52, 16 }
  0x47   : > { %2266 = vmatprep.subr.bf16.mxu0 %v2506_v56  ;;  %v2028_v56 = vcombine.low %v222_v48, %v223_v49  ;;  %v320_v58 = vshll.u32 %v1903_v53, 16  ;;  %v318_v61 = vshrl.u32 %v1903_v53, 16 }
  0x48   : > { %2393 = vmatpush3.bf16.msra.mxu1 %v2505_v57  ;;  %v2524_v57 = vld [vmem:[%s2988_s1 + $0x220] sm:$0xff]  }
  0x49   : > { %2394 = vmatprep.subr.bf16.mxu1 %v2508_v63  ;;  %v322_v3 = vrot.slane %v320_v58, 1 }
  0x4a   : > { %2267 = vmatpush3.bf16.msra.mxu0 %v2507_v60  ;;  %v311_v60 = vshrl.u32 %v1902_v52, 16  ;;  %v2540_v52 = vld [vmem:[%s2988_s1 + $0x200] sm:$0xff]  }
  0x4b   : > { %2304 = vmatprep.subr.bf16.mxu0 %v2509_v1  ;;  %v240_v1 = vld [vmem:[%s2681_s9 + $0xc8] sm:$0x1]  ;;  %v323_v9 = vor.u32 %v322_v3, %v318_v61 }
  0x4c   : > { %2395 = vmatpush3.bf16.msra.mxu1 %v2508_v63  ;;  %v315_v63 = vrot.slane %v313_v55, 1  ;;  %v2078_v61 = vld [vmem:[%s2681_s9 + $0xa8] sm:$0x1] }
  0x4d   : > { %1105 = vmatmul.mubr.bf16.vlgmr.msra.gmra.mxu0 %v2022_v5  ;;  %2404 = vmatprep.subr.bf16.mxu1 %v2513_v12  ;;  %v1904_v5 = vcombine.low %v224_v62, %v240_v1  ;;  %v2070_v1 = vld [vmem:[%s2681_s9 + $0xa4] sm:$0xf]  ;;  %v2079_v3 = vld [vmem:[%s2681_s9 + $0xc8] sm:$0x1] }
  0x4e   : > { %2305 = vmatpush3.bf16.msra.mxu0 %v2510_v6  ;;  %1112 = vmatprep.mubr.bf16.mxu0 %v2026_v34  ;;  %v2533_v6 = vld [vmem:[%s2988_s1 + $0x190] sm:$0xff]   ;;  %v316_v7 = vor.u32 %v315_v63, %v311_v60  ;;  %v2063_v60 = vld [vmem:[%s2681_s9 + $0xc0] sm:$0xf] }
  0x4f   : > { %2306 = vmatprep.subr.bf16.mxu0 %v2516_v20  ;;  %2397 = vmatmul.mubr.bf16.vlgmr.msra.gmra.mxu1 %v2027_v41  ;;  %v325_v10 = vshrl.u32 %v1904_v5, 16  ;;  %v327_v11 = vshll.u32 %v1904_v5, 16  ;;  %v336_v20 = vrot.slane %v334_v14, 1  ;;  %v2894_v41 = vld [vmem:[%s2681_s9 + $0x80] sm:$0xf] }
  0x50   : > { %2405 = vmatpush3.bf16.msra.mxu1 %v2513_v12  ;;  %v2529_v12 = vld [vmem:[%s2988_s1 + $0x218] sm:$0xff]   ;;  %v2030_v16 = vcombine.low %v316_v7, %v323_v9  ;;  %v2085_v53 = vcombine.low %v2894_v41, %v2077_v44  ;;  %v2087_v7 = vcombine.low %v2063_v60, %v2079_v3  ;;  %v2065_v9 = vld [vmem:[%s2681_s9 + $0x100] sm:$0xf] }
  0x51   : > { %2406 = vmatprep.subr.bf16.mxu1 %v2518_v42  ;;  %v329_v17 = vrot.slane %v327_v11, 1  ;;  %v337_v25 = vor.u32 %v336_v20, %v332_v13 }
  0x52   : > { %2307 = vmatpush3.bf16.msra.mxu0 %v2517_v27  ;;  %2400 = vmatprep.mubr.bf16.mxu1 %v2030_v16  ;;  %v2534_v27 = vld [vmem:[%s2988_s1 + $0x210] sm:$0xff]   ;;  %v1292_v63 = vshrl.u32 %v2085_v53, 16  ;;  %v1294_v0 = vshll.u32 %v2085_v53, 16  ;;  %v1306_v18 = vshrl.u32 %v2087_v7, 16 }
  0x53   : > { %2308 = vmatprep.subr.bf16.mxu0 %v2519_v32  ;;  %v330_v24 = vor.u32 %v329_v17, %v325_v10  ;;  %v2067_v32 = vld [vmem:[%s2681_s9 + $0x44] sm:$0xf]  ;;  %v2080_v10 = vld [vmem:[%s2681_s9 + $0xe8] sm:$0x1]  ;;  %v1308_v17 = vshll.u32 %v2087_v7, 16 }
  0x54   : > { %2407 = vmatpush3.bf16.msra.mxu1 %v2518_v42  ;;  %v2139_v34 = vcombine.low %v2066_v31, %v2067_v32  ;;  %v2076_v42 = vld [vmem:[%s2681_s9 + $0x68] sm:$0x1] }
  0x55   : > { %1113 = vmatmul.mubr.bf16.gmra.mxu0 %v2025_v38  ;;  %2408 = vmatprep.subr.bf16.mxu1 %v2521_v46  ;;  %v2033_v28 = vcombine.low %v330_v24, %v337_v25  ;;  %v2082_v38 = vcombine.low %v2058_v33, %v2074_v36  ;;  %v1310_v25 = vrot.slane %v1308_v17, 1 }
  0x56   : > { %2309 = vmatpush3.bf16.msra.mxu0 %v2520_v35  ;;  %1120 = vmatprep.mubr.bf16.mxu0 %v2029_v47  ;;  %v2059_v35 = vld [vmem:[%s2681_s9 + $0x40] sm:$0xf]  ;;  %v2069_v47 = vld [vmem:[%s2681_s9 + $0x84] sm:$0xf] }
  0x57   : > { %2310 = vmatprep.subr.bf16.mxu0 %v2522_v40  ;;  %2401 = vmatmul.mubr.bf16.gmra.mxu1 %v2033_v28  ;;  %v2083_v39 = vcombine.low %v2059_v35, %v2075_v37  ;;  %v2891_v40 = vld [vmem:[%s2681_s9 + $0x60] sm:$0xf]  ;;  %v1271_v48 = vshrl.u32 %v2082_v38, 16  ;;  %v1273_v49 = vshll.u32 %v2082_v38, 16  ;;  %v1311_v32 = vor.u32 %v1310_v25, %v1306_v18  ;;  %v2072_v38 = vld [vmem:[%s2681_s9 + $0xe4] sm:$0xf] }
  0x58   : > { %2409 = vmatpush3.bf16.msra.mxu1 %v2521_v46  ;;  %v2084_v45 = vcombine.low %v2891_v40, %v2076_v42  ;;  %v2068_v46 = vld [vmem:[%s2681_s9 + $0x64] sm:$0xf] }
  0x59   : > { %2410 = vmatprep.subr.bf16.mxu1 %v2524_v57  ;;  %v1278_v50 = vshrl.u32 %v2083_v39, 16  ;;  %v1280_v51 = vshll.u32 %v2083_v39, 16  ;;  %v1275_v58 = vrot.slane %v1273_v49, 1  ;;  %v2073_v39 = vld [vmem:[%s2681_s9 + $0x104] sm:$0xf] }
  0x5a   : > { %2311 = vmatpush3.bf16.msra.mxu0 %v2523_v43  ;;  %v2138_v43 = vcombine.low %v2058_v33, %v2059_v35  ;;  %v1287_v55 = vshll.u32 %v2084_v45, 16  ;;  %v2148_v42 = vcombine.low %v2072_v38, %v2073_v39 }
  0x5b   : > { %2312 = vmatprep.subr.bf16.mxu0 %v2527_v54  ;;  %v1285_v54 = vshrl.u32 %v2084_v45, 16  ;;  %v1276_v5 = vor.u32 %v1275_v58, %v1271_v48 }
  0x5c   : > { %2411 = vmatpush3.bf16.msra.mxu1 %v2524_v57  ;;  %v2062_v57 = vld [vmem:[%s2681_s9 + $0xa0] sm:$0xf]  ;;  %v1289_v62 = vrot.slane %v1287_v55, 1 }
  0x5d   : > { %1121 = vmatmul.mubr.bf16.gmra.mxu0 %v2028_v56  ;;  %2412 = vmatprep.subr.bf16.mxu1 %v2529_v12  ;;  %v2142_v56 = vcombine.low %v2068_v46, %v2069_v47  ;;  %v2086_v4 = vcombine.low %v2062_v57, %v2078_v61 }
  0x5e   : > { %2313 = vmatpush3.bf16.msra.mxu0 %v2528_v59  ;;  %1128 = vmatprep.mubr.bf16.mxu0 %v2032_v21  ;;  %v1282_v59 = vrot.slane %v1280_v51, 1  ;;  %v1290_v11 = vor.u32 %v1289_v62, %v1285_v54  ;;  %v2141_v21 = vcombine.low %v2891_v40, %v2894_v41  ;;  %v2144_v40 = vcombine.low %v2062_v57, %v2063_v60 }
  0x5f   : > { %2314 = vmatprep.subr.bf16.mxu0 %v2532_v2  ;;  %v2071_v2 = vld [vmem:[%s2681_s9 + $0xc4] sm:$0xf]  ;;  %v1301_v13 = vshll.u32 %v2086_v4, 16  ;;  %v1299_v14 = vshrl.u32 %v2086_v4, 16  ;;  %s2176_s9 = sshll.u32 %s2998_s12, 5 }
  0x60   : > { %2413 = vmatpush3.bf16.msra.mxu1 %v2529_v12  ;;  %v1296_v12 = vrot.slane %v1294_v0, 1  ;;  %v2145_v24 = vcombine.low %v2070_v1, %v2071_v2  ;;  %s2956_s5 = scalar_lea.vmem %s2989_s2, %s2176_s9 }
  0x61   : > { %2414 = vmatprep.subr.bf16.mxu1 %v2534_v27 }
  0x62   : > { %2315 = vmatpush3.bf16.msra.mxu0 %v2533_v6  ;;  %v1283_v6 = vor.u32 %v1282_v59, %v1278_v50  ;;  %v1297_v20 = vor.u32 %v1296_v12, %v1292_v63 }
  0x63   : > { %2316 = vmatprep.subr.bf16.mxu0 %v2535_v19  ;;  %v2088_v19 = vcombine.low %v2064_v8, %v2080_v10 }
  0x64   : > { %2415 = vmatpush3.bf16.msra.mxu1 %v2534_v27  ;;  %v2140_v16 = vcombine.low %v1276_v5, %v1283_v6  ;;  %v2143_v28 = vcombine.low %v1290_v11, %v1297_v20 }
  0x65   : > { %1129 = vmatmul.mubr.bf16.gmra.mxu0 %v2031_v22  ;;  %2416 = vmatprep.subr.bf16.mxu1 %v2537_v30  ;;  %v1303_v22 = vrot.slane %v1301_v13, 1  ;;  %v1315_v27 = vshll.u32 %v2088_v19, 16 }
  0x66   : > { %2317 = vmatpush3.bf16.msra.mxu0 %v2536_v23  ;;  %1599 = vmatprep.mubr.bf16.mxu0 %v2139_v34  ;;  %v2089_v23 = vcombine.low %v2065_v9, %v2081_v15 }
  0x67   : > { %2318 = vmatprep.subr.bf16.mxu0 %v2538_v26  ;;  %2420 = vmatprep.mubr.bf16.mxu1 %v2140_v16  ;;  %v1313_v26 = vshrl.u32 %v2088_v19, 16  ;;  %v1317_v33 = vrot.slane %v1315_v27, 1 }
  0x68   : > { %2417 = vmatpush3.bf16.msra.mxu1 %v2537_v30  ;;  %v1320_v30 = vshrl.u32 %v2089_v23, 16  ;;  %v1322_v31 = vshll.u32 %v2089_v23, 16 }
  0x69   : > { %2418 = vmatprep.subr.bf16.mxu1 %v2540_v52  ;;  %v1318_v36 = vor.u32 %v1317_v33, %v1313_v26 }
  0x6a   : > { %2319 = vmatpush3.bf16.msra.mxu0 %v2539_v29  ;;  %v1304_v29 = vor.u32 %v1303_v22, %v1299_v14  ;;  %v1324_v34 = vrot.slane %v1322_v31, 1 }
  0x6c   : > { %2419 = vmatpush3.bf16.msra.mxu1 %v2540_v52  ;;  %v2146_v35 = vcombine.low %v1304_v29, %v1311_v32  ;;  %v1325_v37 = vor.u32 %v1324_v34, %v1320_v30 }
  0x6d   : > { %1600 = vmatmul.mubr.bf16.vlgmr.msra.gmra.mxu0 %v2138_v43  ;;  %v2147_v43 = vcombine.low %v2064_v8, %v2065_v9 }
  0x6e   : > { %1607 = vmatprep.mubr.bf16.mxu0 %v2142_v56  ;;  %v2149_v41 = vcombine.low %v1318_v36, %v1325_v37 }
  0x6f   : > { %2421 = vmatmul.mubr.bf16.vlgmr.msra.gmra.mxu1 %v2143_v28 }
  0x70   : > { %2424 = vmatprep.mubr.bf16.mxu1 %v2146_v35 }
  0x75   : > { %1608 = vmatmul.mubr.bf16.gmra.mxu0 %v2141_v21 }
  0x76   : > { %1615 = vmatprep.mubr.bf16.mxu0 %v2145_v24 }
  0x77   : > { %2425 = vmatmul.mubr.bf16.gmra.mxu1 %v2149_v41 }
  0x7d   : > { %1616 = vmatmul.mubr.bf16.gmra.mxu0 %v2144_v40 }
  0x7e   : > { %1623 = vmatprep.mubr.bf16.mxu0 %v2148_v42 }
  0x85   : > { %1624 = vmatmul.mubr.bf16.gmra.mxu0 %v2147_v43 }
  0xed   : > { %v2216_v44 = vpop.f32.mrf.mxu0 }
  0xef   : > { %v2217_v45 = vpop.f32.mrf.mxu0  ;;  %v2374_v56 = vpop.f32.mrf.mxu1 }
  0xf0   : > { %v2218_v46 = vadd.f32 %v2217_v45, %v2216_v44 }
  0xf1   : > { %v2219_v47 = vpop.f32.mrf.mxu0  ;;  %v873_v60 = vpop.f32.mrf.mxu1 }
  0xf2   : > { %v874_v37 = vadd.f32 %v2218_v46, %v873_v60 }
  0xf3   : > { %v2220_v48 = vpop.f32.mrf.mxu0  ;;  %v2375_v63 = vpop.f32.mrf.mxu1 }
  0xf4   : > { %v2221_v49 = vadd.f32 %v2220_v48, %v2219_v47 }
  0xf5   : > { %v2222_v50 = vpop.f32.mrf.mxu0  ;;  %v876_v2 = vpop.f32.mrf.mxu1 }
  0xf6   : > { %v877_v48 = vadd.f32 %v2221_v49, %v876_v2 }
  0xf7   : > { %v2223_v51 = vpop.f32.mrf.mxu0  ;;  %v2929_v4 = vpop.f32.mrf.mxu1 }
  0xf8   : > { %v2224_v52 = vadd.f32 %v2223_v51, %v2222_v50 }
  0xf9   : > { %v2225_v53 = vpop.f32.mrf.mxu0  ;;  %v889_v7 = vpop.f32.mrf.mxu1 }
  0xfa   : > { %v882_v40 = vadd.f32 %v2374_v56, %v2224_v52 }
  0xfb   : > { %v2226_v54 = vpop.f32.mrf.mxu0  ;;  %v2931_v10 = vpop.f32.mrf.mxu1 }
  0xfc   : > { %v2227_v38 = vadd.f32 %v2226_v54, %v2225_v53 }
  0xfd   : > { %v2228_v55 = vpop.f32.mrf.mxu0  ;;  %v892_v13 = vpop.f32.mrf.mxu1 }
  0xff   : > { %v2229_v57 = vpop.f32.mrf.mxu0 }
 0x100   : > { %v2919_v58 = vadd.f32 %v2229_v57, %v2228_v55  ;;  %v885_v55 = vadd.f32 %v2375_v63, %v2227_v38 }
 0x101   : > { %v2231_v59 = vpop.f32.mrf.mxu0 }
 0x102   : > { %v890_v49 = vadd.f32 %v2919_v58, %v889_v7 }
 0x103   : > { %v2232_v61 = vpop.f32.mrf.mxu0 }
 0x105   : > { %v2921_v62 = vpop.f32.mrf.mxu0 }
 0x107   : > { %v2923_v0 = vpop.f32.mrf.mxu0 }
 0x109   : > { %v2925_v1 = vpop.f32.mrf.mxu0 }
 0x10b   : > { %v2927_v3 = vpop.f32.mrf.mxu0 }
 0x10d   : > { %v2268_v5 = vpop.f32.mrf.mxu0 }
 0x10f   : > { %v2269_v6 = vpop.f32.mrf.mxu0  ;;  %v2398_v15 = vpop.f32.mrf.mxu1 }
 0x110   : > { %v2270_v34 = vadd.f32 %v2269_v6, %v2268_v5  ;;  %v2233_v5 = vadd.f32 %v2232_v61, %v2231_v59 }
 0x111   : > { %v2271_v8 = vpop.f32.mrf.mxu0  ;;  %v1171_v18 = vpop.f32.mrf.mxu1 }
 0x112   : > { %v1107_v44 = vadd.f32 %v2270_v34, %v874_v37 }
 0x113   : > { %v2272_v9 = vpop.f32.mrf.mxu0  ;;  %v2399_v21 = vpop.f32.mrf.mxu1 }
 0x114   : > { %v2273_v41 = vadd.f32 %v2272_v9, %v2271_v8  ;;  %v1172_v54 = vadd.f32 %v1171_v18, %v1107_v44 }
 0x115   : > { %v2274_v11 = vpop.f32.mrf.mxu0  ;;  %v1174_v24 = vpop.f32.mrf.mxu1 }
 0x116   : > { %v1110_v6 = vadd.f32 %v2273_v41, %v877_v48 }
 0x117   : > { %v2275_v12 = vpop.f32.mrf.mxu0  ;;  %v2937_v26 = vpop.f32.mrf.mxu1 }
 0x118   : > { %v2276_v35 = vadd.f32 %v2275_v12, %v2274_v11 }
 0x119   : > { %v2277_v14 = vpop.f32.mrf.mxu0  ;;  %v2943_v29 = vpop.f32.mrf.mxu1 }
 0x11a   : > { %v1115_v50 = vadd.f32 %v2276_v35, %v882_v40 }
 0x11b   : > { %v2278_v16 = vpop.f32.mrf.mxu0  ;;  %v2945_v32 = vpop.f32.mrf.mxu1 }
 0x11c   : > { %2991 = vst [vmem:[#allocation2_spill] sm:$0xff] %v2945_v32  ;;  %v2279_v45 = vadd.f32 %v2278_v16, %v2277_v14  ;;  %v1180_v9 = vadd.f32 %v2398_v15, %v1115_v50  ;;  %v2236_v15 = vadd.f32 %v2923_v0, %v2921_v62 }
 0x11d   : > { %v2280_v17 = vpop.f32.mrf.mxu0  ;;  %v2947_v39 = vpop.f32.mrf.mxu1 }
 0x11e   : > { %v1118_v52 = vadd.f32 %v2279_v45, %v885_v55  ;;  %v898_v50 = vadd.f32 %v2929_v4, %v2236_v15 }
 0x11f   : > { %v2281_v19 = vpop.f32.mrf.mxu0 }
 0x120   : > { %v2282_v56 = vadd.f32 %v2281_v19, %v2280_v17  ;;  %v1183_v34 = vadd.f32 %v2399_v21, %v1118_v52 }
 0x121   : > { %v2283_v20 = vpop.f32.mrf.mxu0 }
 0x122   : > { %v1123_v18 = vadd.f32 %v2282_v56, %v890_v49 }
 0x123   : > { %v2284_v22 = vpop.f32.mrf.mxu0 }
 0x124   : > { %v2285_v2 = vadd.f32 %v2284_v22, %v2283_v20  ;;  %v1188_v62 = vadd.f32 %v2943_v29, %v1123_v18 }
 0x125   : > { %v2933_v23 = vpop.f32.mrf.mxu0 }
 0x127   : > { %v2935_v25 = vpop.f32.mrf.mxu0 }
 0x128   : > { %v2288_v0 = vadd.f32 %v2935_v25, %v2933_v23 }
 0x129   : > { %v2939_v27 = vpop.f32.mrf.mxu0 }
 0x12b   : > { %v2941_v28 = vpop.f32.mrf.mxu0 }
 0x12c   : > { %v2291_v29 = vadd.f32 %v2941_v28, %v2939_v27 }
 0x12d   : > { %v2320_v30 = vpop.f32.mrf.mxu0 }
 0x12f   : > { %v2321_v31 = vpop.f32.mrf.mxu0  ;;  %v2422_v47 = vpop.f32.mrf.mxu1 }
 0x130   : > { %v2322_v42 = vadd.f32 %v2321_v31, %v2320_v30  ;;  %v1175_v30 = vadd.f32 %v1174_v24, %v1110_v6  ;;  %v1131_v6 = vadd.f32 %v2288_v0, %v898_v50 }
 0x131   : > { %v2323_v33 = vpop.f32.mrf.mxu0  ;;  %v1666_v57 = vpop.f32.mrf.mxu1 }
 0x132   : > { %v1667_v11 = vadd.f32 %v2322_v42, %v1666_v57  ;;  %v1196_v28 = vadd.f32 %v2937_v26, %v1131_v6 }
 0x133   : > { %v2324_v36 = vpop.f32.mrf.mxu0  ;;  %v2423_v60 = vpop.f32.mrf.mxu1 }
 0x134   : > { %v2325_v46 = vadd.f32 %v2324_v36, %v2323_v33  ;;  %v1697_v14 = vadd.f32 %v1667_v11, %v1172_v54  ;;  %v893_v33 = vadd.f32 %v2233_v5, %v892_v13 }
 0x135   : > { %v2326_v43 = vpop.f32.mrf.mxu0  ;;  %v1669_v63 = vpop.f32.mrf.mxu1 }
 0x136   : > { %v1670_v59 = vadd.f32 %v2325_v46, %v1669_v63  ;;  %v1126_v58 = vadd.f32 %v2285_v2, %v893_v33  ;;  %v1735_v7 = vmul.f32 %v1697_v14, %v1697_v14 }
 0x137   : > { %v2327_v51 = vpop.f32.mrf.mxu0  ;;  %v2426_v17 = vpop.f32.mrf.mxu1 }
 0x138   : > { %v2328_v32 = vadd.f32 %v2327_v51, %v2326_v43  ;;  %v1698_v19 = vadd.f32 %v1670_v59, %v1175_v30  ;;  %v2239_v43 = vadd.f32 %v2927_v3, %v2925_v1  ;;  %v1191_v1 = vadd.f32 %v2947_v39, %v1126_v58 }
 0x139   : > { %v2329_v53 = vpop.f32.mrf.mxu0  ;;  %v1682_v13 = vpop.f32.mrf.mxu1 }
 0x13a   : > { %v1675_v8 = vadd.f32 %v2422_v47, %v2328_v32  ;;  %v2180_v21 = vpack.c.bf16 %v1698_v19, %v1697_v14  ;;  %v1721_v24 = vadd.f32 %v1698_v19, %v1697_v14  ;;  %v1736_v36 = vmul.f32 %v1698_v19, %v1698_v19 }
 0x13b   : > { %v2330_v12 = vpop.f32.mrf.mxu0  ;;  %v2427_v42 = vpop.f32.mrf.mxu1  ;;  %v901_v46 = vadd.f32 %v2931_v10, %v2239_v43  ;;  %v2992_v10 = vld [vmem:[#allocation2_spill] sm:$0xff] }
 0x13c   : > { %v2331_v16 = vadd.f32 %v2330_v12, %v2329_v53  ;;  %v1699_v61 = vadd.f32 %v1675_v8, %v1180_v9  ;;  %2181 = vst [vmem:[%s2956_s5] sm:$0xff] %v2180_v21   ;;  %v1743_v44 = vadd.f32 %v1736_v36, %v1735_v7 }
 0x13d   : > { %v2332_v31 = vpop.f32.mrf.mxu0  ;;  %v1685_v57 = vpop.f32.mrf.mxu1 }
 0x13e   : > { %v1678_v35 = vadd.f32 %v2423_v60, %v2331_v16  ;;  %v1737_v37 = vmul.f32 %v1699_v61, %v1699_v61  ;;  %v1722_v45 = vadd.f32 %v1721_v24, %v1699_v61  ;;  %v1134_v60 = vadd.f32 %v2291_v29, %v901_v46 }
 0x13f   : > { %v2333_v32 = vpop.f32.mrf.mxu0 }
 0x140   : > { %v1700_v20 = vadd.f32 %v1678_v35, %v1183_v34  ;;  %v2334_v22 = vadd.f32 %v2333_v32, %v2332_v31  ;;  %v1744_v23 = vadd.f32 %v1743_v44, %v1737_v37  ;;  %v1199_v16 = vadd.f32 %v2992_v10, %v1134_v60 }
 0x141   : > { %v2335_v38 = vpop.f32.mrf.mxu0 }
 0x142   : > { %v2185_v40 = vpack.c.bf16 %v1700_v20, %v1699_v61  ;;  %v1683_v41 = vadd.f32 %v2334_v22, %v1682_v13  ;;  %v1738_v47 = vmul.f32 %v1700_v20, %v1700_v20  ;;  %v1723_v25 = vadd.f32 %v1722_v45, %v1700_v20 }
 0x143   : > { %v2336_v48 = vpop.f32.mrf.mxu0 }
 0x144   : > { %2197 = vst [vmem:[%s2956_s5 + $0x8] sm:$0xff] %v2185_v40   ;;  %v1701_v51 = vadd.f32 %v1683_v41, %v1188_v62  ;;  %v2337_v55 = vadd.f32 %v2336_v48, %v2335_v38  ;;  %v1745_v4 = vadd.f32 %v1744_v23, %v1738_v47 }
 0x145   : > { %v2338_v5 = vpop.f32.mrf.mxu0 }
 0x146   : > { %v1739_v3 = vmul.f32 %v1701_v51, %v1701_v51  ;;  %v1686_v11 = vadd.f32 %v2337_v55, %v1685_v57  ;;  %v1724_v53 = vadd.f32 %v1723_v25, %v1701_v51 }
 0x147   : > { %v2339_v54 = vpop.f32.mrf.mxu0 }
 0x148   : > { %v1702_v52 = vadd.f32 %v1686_v11, %v1191_v1  ;;  %v2340_v56 = vadd.f32 %v2339_v54, %v2338_v5  ;;  %v1746_v8 = vadd.f32 %v1745_v4, %v1739_v3 }
 0x149   : > { %v2341_v27 = vpop.f32.mrf.mxu0 }
 0x14a   : > { %v2190_v9 = vpack.c.bf16 %v1702_v52, %v1701_v51  ;;  %v1740_v12 = vmul.f32 %v1702_v52, %v1702_v52  ;;  %v1691_v49 = vadd.f32 %v2426_v17, %v2340_v56  ;;  %v1725_v2 = vadd.f32 %v1724_v53, %v1702_v52 }
 0x14b   : > { %v2342_v39 = vpop.f32.mrf.mxu0 }
 0x14c   : > { %2198 = vst [vmem:[%s2956_s5 + $0x10] sm:$0xff] %v2190_v9   ;;  %v1703_v14 = vadd.f32 %v1691_v49, %v1196_v28  ;;  %v2343_v63 = vadd.f32 %v2342_v39, %v2341_v27  ;;  %v1747_v30 = vadd.f32 %v1746_v8, %v1740_v12 }
 0x14e   : > { %v1726_v59 = vadd.f32 %v1725_v2, %v1703_v14  ;;  %v1741_v61 = vmul.f32 %v1703_v14, %v1703_v14  ;;  %v1694_v31 = vadd.f32 %v2427_v42, %v2343_v63 }
 0x150   : > { %v1748_v33 = vadd.f32 %v1747_v30, %v1741_v61  ;;  %v1704_v34 = vadd.f32 %v1694_v31, %v1199_v16 }
 0x152   : > { %v2195_v18 = vpack.c.bf16 %v1704_v34, %v1703_v14  ;;  %v1727_v26 = vadd.f32 %v1726_v59, %v1704_v34  ;;  %v1742_v35 = vmul.f32 %v1704_v34, %v1704_v34 }
 0x154   : > { %2199 = vst [vmem:[%s2956_s5 + $0x18] sm:$0xff] %v2195_v18   ;;  %v1728_v17 = vrot.slane %v1727_v26, 4  ;;  %v1749_v15 = vadd.f32 %v1748_v33, %v1742_v35 }
 0x156   : > { %v1729_v19 = vadd.f32 %v1728_v17, %v1727_v26  ;;  %v1750_v32 = vrot.slane %v1749_v15, 4 }
 0x158   : > { %v1730_v58 = vrot.slane %v1729_v19, 2  ;;  %v1751_v7 = vadd.f32 %v1750_v32, %v1749_v15 }
 0x15a   : > { %v1731_v20 = vadd.f32 %v1730_v58, %v1729_v19  ;;  %v1752_v22 = vrot.slane %v1751_v7, 2 }
 0x15c   : > { %v1732_v13 = vrot.slane %v1731_v20, 1  ;;  %v1753_v21 = vadd.f32 %v1752_v22, %v1751_v7 }
 0x15e   : > { %v1733_v24 = vadd.f32 %v1732_v13, %v1731_v20  ;;  %v1754_v36 = vrot.slane %v1753_v21, 1 }
 0x160   : > { %1734 = vst [vmem:[%s212_s10] sm:$0x1] %v1733_v24  ;;  %v1755_v37 = vadd.f32 %v1754_v36, %v1753_v21 }
 0x162   : > { %1756 = vst [vmem:[%s212_s10 + $0x1] sm:$0x1] %v1755_v37 }
 0x163 PF: > { %s14_s14 = sadd.s32 1, %s2571_s14   ;;  %s2993_s12 = smov %s2567_s13 }
 0x164   : > { %p11_p5 = scmp.ge.s32.totalorder %s14_s14, 4   ;;  %s2994_s13 = smov %s2996_s15 }
 0x166   :  { %13 = sbr.rel (!%p11_p5) target bundleno = 2 (0x2), region = 75 }

</bundles_post_ra>
